<compile_context>
chip_gen: v5e
topology: v5e:2x2
jax: 0.10.0
libtpu: 0.0.40
codegen_flags: <defaults>
</compile_context>

<pallas_src>
import jax
import jax.numpy as jnp
from jax.experimental import pallas as pl
from jax.experimental.pallas import tpu as pltpu

FEATURE_DIM = 128                      # feature_dim
HIDDEN_DIM = 64                        # position-embedding dim
NUM_HEADS = 8
NUM_LAYERS = 2
EMBED_DIM = FEATURE_DIM + HIDDEN_DIM   # 192 real features entering LN1
HEAD_DIM = EMBED_DIM // NUM_HEADS      # 24
HEAD_DIM_PAD = 32                      # padded per-head width (lane aligned)
EMBED_PAD = NUM_HEADS * HEAD_DIM_PAD   # 256 lane-dense working width
FF_DIM = FEATURE_DIM * 2               # 256
LN_EPS = 1e-5                          # PyTorch LayerNorm default
VOCAB = 1000                           # nn.Embedding(1000, hidden_dim)
ROWS_TARGET = 256                      # target matmul rows per grid step

_WKEYS = ("wqkv", "bqkv", "wo", "w1", "w2", "vec")
NEG_INF = jnp.float32(-1e30)


# ------------------------------- kernel -------------------------------------
def _layer_norm(x, g, b, n_real):
    """Single-pass LayerNorm over the first `n_real` (all non-padded) lanes.

    Padded lanes of `x` are zero, so sum/sum-sq over the full width equal the
    sums over the real features; g/b are zero on padded lanes, which keeps the
    padded lanes of the output at exactly 0.
    """
    inv_n = jnp.float32(1.0 / n_real)
    mu = jnp.sum(x, axis=-1, keepdims=True) * inv_n
    ex2 = jnp.sum(x * x, axis=-1, keepdims=True) * inv_n
    var = ex2 - mu * mu
    return (x - mu) * jax.lax.rsqrt(var + LN_EPS) * g + b


def _one_layer(feat3, pos3, add_mask, wqkv, bqkv, wo, w1, w2, vec):
    """One InterLineRelationship layer on a (Bt, S, 128) batch block."""
    Bt, S, F = feat3.shape
    R = Bt * S

    # Lane-aligned concat: feat (128 lanes) ++ zero-padded pos (128 lanes).
    x2 = jnp.concatenate([feat3, pos3], axis=-1).reshape(R, EMBED_PAD)  # (R,256)

    # Fused QKV projection; 1/sqrt(HEAD_DIM) is folded into the Q weights/bias.
    qkv = jnp.dot(x2.astype(jnp.bfloat16), wqkv,
                  preferred_element_type=jnp.float32) + bqkv            # (R,768)
    qkv = qkv.astype(jnp.bfloat16)

    # Per-head attention on the flattened (R, R) score matrix with a
    # block-diagonal mask: M=R-row matmuls and a lane-dense softmax.
    heads = []
    for h in range(NUM_HEADS):                                          # static unroll
        c = h * HEAD_DIM_PAD
        qh = qkv[:, c:c + HEAD_DIM_PAD]                                 # (R,32)
        kh = qkv[:, EMBED_PAD + c:EMBED_PAD + c + HEAD_DIM_PAD]
        vh = qkv[:, 2 * EMBED_PAD + c:2 * EMBED_PAD + c + HEAD_DIM_PAD]
        s = jnp.einsum("qd,kd->qk", qh, kh,
                       preferred_element_type=jnp.float32)              # (R,R)
        if add_mask is not None:
            s = s + add_mask
        s = s - jnp.max(s, axis=-1, keepdims=True)
        p = jnp.exp(s)
        p = p * pl.reciprocal(jnp.sum(p, axis=-1, keepdims=True), approx=True)
        heads.append(jnp.dot(p.astype(jnp.bfloat16), vh,
                             preferred_element_type=jnp.float32))        # (R,32)
    o2 = jnp.concatenate(heads, axis=-1)                                 # (R,256)

    # Unpack the packed 1-row parameters.
    bo, g1, be1, b1 = vec[0:1, :], vec[1:2, :], vec[2:3, :], vec[3:4, :]
    b2 = vec[4:5, :FEATURE_DIM]
    g2 = vec[5:6, :FEATURE_DIM]
    be2 = vec[6:7, :FEATURE_DIM]

    attn = jnp.dot(o2.astype(jnp.bfloat16), wo,
                   preferred_element_type=jnp.float32) + bo              # (R,256)
    ln1 = _layer_norm(x2 + attn, g1, be1, EMBED_DIM)                     # pads stay 0

    # Feed-forward (dropout = identity at inference).
    h1 = jnp.maximum(jnp.dot(ln1.astype(jnp.bfloat16), w1,
                             preferred_element_type=jnp.float32) + b1, 0.0)
    ff = jnp.dot(h1.astype(jnp.bfloat16), w2,
                 preferred_element_type=jnp.float32) + b2                # (R,128)
    ln2 = _layer_norm(feat3.reshape(R, F) + ff, g2, be2, FEATURE_DIM)
    return ln2.reshape(Bt, S, F)


def _encoder_kernel(feat_ref, pos1_ref, pos2_ref,
                    wqkv1, bqkv1, wo1, w11, w21, vec1,
                    wqkv2, bqkv2, wo2, w12, w22, vec2,
                    out_ref):
    """Both InterLineRelationship layers, one (Bt, S, *) batch block per step."""
    Bt, S, _ = feat_ref.shape
    R = Bt * S

    # Block-diagonal additive mask, built once and reused by both layers.
    if Bt > 1:
        rb = jax.lax.broadcasted_iota(jnp.int32, (R, R), 0) // S
        cb = jax.lax.broadcasted_iota(jnp.int32, (R, R), 1) // S
        add_mask = jnp.where(rb == cb, jnp.float32(0.0), NEG_INF)
    else:
        add_mask = None

    y = _one_layer(feat_ref[...], pos1_ref[...], add_mask,
                   wqkv1[...], bqkv1[...], wo1[...], w11[...], w21[...],
                   vec1[...])
    y = _one_layer(y, pos2_ref[...], add_mask,
                   wqkv2[...], bqkv2[...], wo2[...], w12[...], w22[...],
                   vec2[...])
    out_ref[...] = y


# ------------------------------ pallas wrapper -------------------------------
def contextual_encoder_pallas(line_features, line_positions, prepped):
    assert len(prepped) == NUM_LAYERS
    B, S, F = line_features.shape

    # Embedding gathers (glue) stay in plain JAX; pad pos 64 -> 128 lanes so the
    # in-kernel concat is lane-aligned.
    hpad = FEATURE_DIM - HIDDEN_DIM
    pos1 = jnp.pad(jnp.take(prepped[0]["emb"], line_positions, axis=0),
                   ((0, 0), (0, 0), (0, hpad)))                        # (B,S,128)
    pos2 = jnp.pad(jnp.take(prepped[1]["emb"], line_positions, axis=0),
                   ((0, 0), (0, 0), (0, hpad)))                        # (B,S,128)

    # Batch blocking: target ROWS_TARGET rows per step, but keep >= 2 grid
    # blocks whenever B >= 2 so both v7x TensorCores get work.
    bt = max(1, min(B, ROWS_TARGET // max(S, 1)))
    if B >= 2:
        bt = max(1, min(bt, pl.cdiv(B, 2)))
    n_blocks = pl.cdiv(B, bt)
    b_pad = n_blocks * bt

    feat = line_features.astype(jnp.float32)
    if b_pad != B:
        pad = ((0, b_pad - B), (0, 0), (0, 0))
        feat = jnp.pad(feat, pad)
        pos1 = jnp.pad(pos1, pad)
        pos2 = jnp.pad(pos2, pad)

    def data_spec():
        return pl.BlockSpec((bt, S, FEATURE_DIM), lambda b: (b, 0, 0))

    def full(shape):
        return pl.BlockSpec(shape, lambda b, _s=shape: (0,) * len(_s))

    in_specs = [data_spec(), data_spec(), data_spec()]
    weight_args = []
    for p in prepped:
        for k in _WKEYS:
            w = p[k]
            in_specs.append(full(w.shape))
            weight_args.append(w)

    out = pl.pallas_call(
        _encoder_kernel,
        out_shape=jax.ShapeDtypeStruct((b_pad, S, FEATURE_DIM), jnp.float32),
        grid=(n_blocks,),
        in_specs=in_specs,
        out_specs=pl.BlockSpec((bt, S, FEATURE_DIM), lambda b: (b, 0, 0)),
        compiler_params=pltpu.CompilerParams(
            dimension_semantics=("parallel",)),
    )(feat, pos1, pos2, *weight_args)
    return out[:B]


# --------------------- one-time parameter transformation --------------------
def _pad_last(a, n):
    return jnp.pad(a, [(0, 0)] * (a.ndim - 1) + [(0, n - a.shape[-1])])


def _pad_rows(a, n):
    return jnp.pad(a, [(0, n - a.shape[0])] + [(0, 0)] * (a.ndim - 1))


def _pad_head_cols(w):
    """(..., H*24) -> (..., H*32): zero-pad each head's column block."""
    lead = w.shape[:-1]
    w = w.reshape(*lead, NUM_HEADS, HEAD_DIM)
    w = jnp.pad(w, [(0, 0)] * len(lead) + [(0, 0), (0, HEAD_DIM_PAD - HEAD_DIM)])
    return w.reshape(*lead, EMBED_PAD)


def _pad_head_rows(w):
    """(H*24, N) -> (H*32, N): zero-pad each head's row block."""
    n = w.shape[-1]
    w = w.reshape(NUM_HEADS, HEAD_DIM, n)
    w = jnp.pad(w, ((0, 0), (0, HEAD_DIM_PAD - HEAD_DIM), (0, 0)))
    return w.reshape(EMBED_PAD, n)


def prepare_layer_params(p):
    """Fuse QKV, fold 1/sqrt(d) into Q, pad E 192->256, pack biases, cast bf16."""
    scale = 1.0 / (HEAD_DIM ** 0.5)
    wq = _pad_rows(_pad_head_cols(p["wq"] * scale), EMBED_PAD)          # (256,256)
    wk = _pad_rows(_pad_head_cols(p["wk"]), EMBED_PAD)
    wv = _pad_rows(_pad_head_cols(p["wv"]), EMBED_PAD)
    wqkv = jnp.concatenate([wq, wk, wv], axis=-1)                       # (256,768)
    bqkv = jnp.concatenate([_pad_head_cols(p["bq"] * scale),
                            _pad_head_cols(p["bk"]),
                            _pad_head_cols(p["bv"])], axis=-1)          # (1,768)
    wo = _pad_last(_pad_head_rows(p["wo"]), EMBED_PAD)                  # (256,256)
    w1 = _pad_rows(p["w1"], EMBED_PAD)                                  # (256,256)
    vec = jnp.concatenate([
        _pad_last(p["bo"], EMBED_PAD),
        _pad_last(p["g1"], EMBED_PAD),    # zero gamma on padded lanes
        _pad_last(p["be1"], EMBED_PAD),   # zero beta on padded lanes
        p["b1"],
        _pad_last(p["b2"], EMBED_PAD),
        _pad_last(p["g2"], EMBED_PAD),
        _pad_last(p["be2"], EMBED_PAD),
        jnp.zeros((1, EMBED_PAD), jnp.float32),
    ], axis=0)                                                          # (8,256)
    return dict(
        emb=p["emb"],
        wqkv=wqkv.astype(jnp.bfloat16),
        bqkv=bqkv.astype(jnp.float32),
        wo=wo.astype(jnp.bfloat16),
        w1=w1.astype(jnp.bfloat16),
        w2=p["w2"].astype(jnp.bfloat16),
        vec=vec.astype(jnp.float32),
    )
    # NOTE: output_projection of InterLineRelationship is defined in __init__
    # but never used in forward(), so it is intentionally omitted.
    # TODO(synk): dropout(p=0.1) is treated as identity (inference semantics).


# -------------------- pure-JAX reference (for sanity check) -----------------
def _layer_ref(feat, positions, p):
    pos_emb = jnp.take(p["emb"], positions, axis=0)
    x = jnp.concatenate([feat, pos_emb], axis=-1)
    q = x @ p["wq"] + p["bq"]
    k = x @ p["wk"] + p["bk"]
    v = x @ p["wv"] + p["bv"]
    B, S, E = x.shape
    qh = q.reshape(B, S, NUM_HEADS, HEAD_DIM).transpose(0, 2, 1, 3)
    kh = k.reshape(B, S, NUM_HEADS, HEAD_DIM).transpose(0, 2, 1, 3)
    vh = v.reshape(B, S, NUM_HEADS, HEAD_DIM).transpose(0, 2, 1, 3)
    s = jnp.einsum("bhqd,bhkd->bhqk", qh, kh) / (HEAD_DIM ** 0.5)
    pw = jax.nn.softmax(s, axis=-1)
    o = jnp.einsum("bhqk,bhkd->bhqd", pw, vh).transpose(0, 2, 1, 3).reshape(B, S, E)
    attn = o @ p["wo"] + p["bo"]

    def ln(y, g, b):
        mu = jnp.mean(y, -1, keepdims=True)
        var = jnp.mean((y - mu) ** 2, -1, keepdims=True)
        return (y - mu) * jax.lax.rsqrt(var + LN_EPS) * g + b

    a = ln(x + attn, p["g1"], p["be1"])
    ff = jnp.maximum(a @ p["w1"] + p["b1"], 0.0) @ p["w2"] + p["b2"]
    return ln(feat + ff, p["g2"], p["be2"])


def contextual_encoder_ref(feat, positions, params_list):
    out = feat
    for p in params_list:
        out = _layer_ref(out, positions, p)
    return out


# ------------------------------ parameter init ------------------------------
def init_layer_params(key):
    ks = jax.random.split(key, 16)
    E, F, H, FF = EMBED_DIM, FEATURE_DIM, HIDDEN_DIM, FF_DIM

    def w(k, shape, scale=0.05):
        return jax.random.normal(k, shape, jnp.float32) * scale

    return dict(
        emb=w(ks[0], (VOCAB, H), 0.05),
        wq=w(ks[1], (E, E)), bq=w(ks[7], (1, E), 0.02),
        wk=w(ks[2], (E, E)), bk=w(ks[8], (1, E), 0.02),
        wv=w(ks[3], (E, E)), bv=w(ks[9], (1, E), 0.02),
        wo=w(ks[4], (E, E)), bo=w(ks[10], (1, E), 0.02),
        g1=1.0 + w(ks[11], (1, E), 0.05), be1=w(ks[12], (1, E), 0.02),
        w1=w(ks[5], (E, FF)), b1=w(ks[13], (1, FF), 0.02),
        w2=w(ks[6], (FF, F)), b2=w(ks[14], (1, F), 0.02),
        g2=1.0 + w(ks[15], (1, F), 0.05), be2=jnp.zeros((1, F), jnp.float32),
    )


if __name__ == "__main__":
    key = jax.random.PRNGKey(0)
    kx, kp, kl1, kl2 = jax.random.split(key, 4)

    B, S = 2, 8
    line_features = jax.random.normal(kx, (B, S, FEATURE_DIM), jnp.float32)
    line_positions = jax.random.randint(kp, (B, S), 0, VOCAB)

    params = [init_layer_params(kl1), init_layer_params(kl2)]
    assert NUM_LAYERS == len(params)
    prepped = [prepare_layer_params(p) for p in params]   # one-time transform

    out = jax.jit(contextual_encoder_pallas)(line_features, line_positions, prepped)
    jax.block_until_ready(out)
    assert out.shape == (B, S, FEATURE_DIM) and out.dtype == jnp.float32

    ref = contextual_encoder_ref(line_features, line_positions, params)
    assert jnp.allclose(out, ref, atol=5e-2, rtol=5e-2), "mismatch vs JAX reference"

    print("KERNEL_OK")
</pallas_src>

<mosaic_0001>
module attributes {stable_mosaic.version = 11 : i64} {
  func.func @_encoder_kernel(%arg0: i32, %arg1: memref<1x8x128xf32, #tpu.memory_space<vmem>>, %arg2: memref<1x8x128xf32, #tpu.memory_space<vmem>>, %arg3: memref<1x8x128xf32, #tpu.memory_space<vmem>>, %arg4: memref<256x768xbf16, #tpu.memory_space<vmem>>, %arg5: memref<1x768xf32, #tpu.memory_space<vmem>>, %arg6: memref<256x256xbf16, #tpu.memory_space<vmem>>, %arg7: memref<256x256xbf16, #tpu.memory_space<vmem>>, %arg8: memref<256x128xbf16, #tpu.memory_space<vmem>>, %arg9: memref<8x256xf32, #tpu.memory_space<vmem>>, %arg10: memref<256x768xbf16, #tpu.memory_space<vmem>>, %arg11: memref<1x768xf32, #tpu.memory_space<vmem>>, %arg12: memref<256x256xbf16, #tpu.memory_space<vmem>>, %arg13: memref<256x256xbf16, #tpu.memory_space<vmem>>, %arg14: memref<256x128xbf16, #tpu.memory_space<vmem>>, %arg15: memref<8x256xf32, #tpu.memory_space<vmem>>, %arg16: memref<1x8x128xf32, #tpu.memory_space<vmem>>) attributes {dimension_semantics = [#tpu.dimension_semantics<parallel>], iteration_bounds = array<i64: 2>, scalar_prefetch = 0 : i64, scratch_operands = 0 : i64, tpu.core_type = #tpu.core_type<tc>, window_params = [{transform_indices = @transform_0, window_bounds = array<i64: 1, 8, 128>}, {transform_indices = @transform_1, window_bounds = array<i64: 1, 8, 128>}, {transform_indices = @transform_2, window_bounds = array<i64: 1, 8, 128>}, {pipeline_mode = #tpu.pipeline_mode<synchronous>, transform_indices = @transform_3, window_bounds = array<i64: 256, 768>}, {pipeline_mode = #tpu.pipeline_mode<synchronous>, transform_indices = @transform_4, window_bounds = array<i64: 1, 768>}, {pipeline_mode = #tpu.pipeline_mode<synchronous>, transform_indices = @transform_5, window_bounds = array<i64: 256, 256>}, {pipeline_mode = #tpu.pipeline_mode<synchronous>, transform_indices = @transform_6, window_bounds = array<i64: 256, 256>}, {pipeline_mode = #tpu.pipeline_mode<synchronous>, transform_indices = @transform_7, window_bounds = array<i64: 256, 128>}, {pipeline_mode = #tpu.pipeline_mode<synchronous>, transform_indices = @transform_8, window_bounds = array<i64: 8, 256>}, {pipeline_mode = #tpu.pipeline_mode<synchronous>, transform_indices = @transform_9, window_bounds = array<i64: 256, 768>}, {pipeline_mode = #tpu.pipeline_mode<synchronous>, transform_indices = @transform_10, window_bounds = array<i64: 1, 768>}, {pipeline_mode = #tpu.pipeline_mode<synchronous>, transform_indices = @transform_11, window_bounds = array<i64: 256, 256>}, {pipeline_mode = #tpu.pipeline_mode<synchronous>, transform_indices = @transform_12, window_bounds = array<i64: 256, 256>}, {pipeline_mode = #tpu.pipeline_mode<synchronous>, transform_indices = @transform_13, window_bounds = array<i64: 256, 128>}, {pipeline_mode = #tpu.pipeline_mode<synchronous>, transform_indices = @transform_14, window_bounds = array<i64: 8, 256>}, {transform_indices = @transform_15, window_bounds = array<i64: 1, 8, 128>}]} {
    %c0 = arith.constant 0 : index
    %c0_0 = arith.constant 0 : index
    %c0_1 = arith.constant 0 : index
    %0 = vector.load %arg1[%c0, %c0_0, %c0_1] : memref<1x8x128xf32, #tpu.memory_space<vmem>>, vector<1x8x128xf32>
    %c0_2 = arith.constant 0 : index
    %c0_3 = arith.constant 0 : index
    %c0_4 = arith.constant 0 : index
    %1 = vector.load %arg2[%c0_2, %c0_3, %c0_4] : memref<1x8x128xf32, #tpu.memory_space<vmem>>, vector<1x8x128xf32>
    %c0_5 = arith.constant 0 : index
    %c0_6 = arith.constant 0 : index
    %2 = vector.load %arg4[%c0_5, %c0_6] : memref<256x768xbf16, #tpu.memory_space<vmem>>, vector<256x768xbf16>
    %c0_7 = arith.constant 0 : index
    %c0_8 = arith.constant 0 : index
    %3 = vector.load %arg5[%c0_7, %c0_8] : memref<1x768xf32, #tpu.memory_space<vmem>>, vector<1x768xf32>
    %c0_9 = arith.constant 0 : index
    %c0_10 = arith.constant 0 : index
    %4 = vector.load %arg6[%c0_9, %c0_10] : memref<256x256xbf16, #tpu.memory_space<vmem>>, vector<256x256xbf16>
    %c0_11 = arith.constant 0 : index
    %c0_12 = arith.constant 0 : index
    %5 = vector.load %arg7[%c0_11, %c0_12] : memref<256x256xbf16, #tpu.memory_space<vmem>>, vector<256x256xbf16>
    %c0_13 = arith.constant 0 : index
    %c0_14 = arith.constant 0 : index
    %6 = vector.load %arg8[%c0_13, %c0_14] : memref<256x128xbf16, #tpu.memory_space<vmem>>, vector<256x128xbf16>
    %c0_15 = arith.constant 0 : index
    %c0_16 = arith.constant 0 : index
    %7 = vector.load %arg9[%c0_15, %c0_16] : memref<8x256xf32, #tpu.memory_space<vmem>>, vector<8x256xf32>
    %8 = tpu.concatenate %0, %1 in 2 : vector<1x8x128xf32>, vector<1x8x128xf32> -> vector<1x8x256xf32>
    %9 = vector.shape_cast %8 : vector<1x8x256xf32> to vector<8x256xf32>
    %10 = arith.truncf %9 : vector<8x256xf32> to vector<8x256xbf16>
    %cst = arith.constant dense<0.000000e+00> : vector<8x768xf32>
    %11 = tpu.matmul %10, %2, %cst {dimension_numbers = #tpu.dot_dimension_numbers<[1], [0], [0], [1], [0, 0, 1, 1], [], []>} : vector<8x256xbf16>, vector<256x768xbf16>, vector<8x768xf32> -> vector<8x768xf32>
    %12 = vector.broadcast %3 : vector<1x768xf32> to vector<8x768xf32>
    %13 = arith.addf %11, %12 : vector<8x768xf32>
    %14 = arith.truncf %13 : vector<8x768xf32> to vector<8x768xbf16>
    %15 = vector.extract_strided_slice %14 {offsets = [0, 0], sizes = [8, 32], strides = [1, 1]} : vector<8x768xbf16> to vector<8x32xbf16>
    %16 = vector.extract_strided_slice %14 {offsets = [0, 256], sizes = [8, 32], strides = [1, 1]} : vector<8x768xbf16> to vector<8x32xbf16>
    %17 = vector.extract_strided_slice %14 {offsets = [0, 512], sizes = [8, 32], strides = [1, 1]} : vector<8x768xbf16> to vector<8x32xbf16>
    "tpu.trace_start"() <{level = 10 : i32, message = "qd,kd->qk"}> : () -> ()
    %cst_17 = arith.constant dense<0.000000e+00> : vector<8x8xf32>
    %18 = tpu.matmul %15, %16, %cst_17 {dimension_numbers = #tpu.dot_dimension_numbers<[1], [1], [0], [0], [0, 0, 1, 0], [], []>} : vector<8x32xbf16>, vector<8x32xbf16>, vector<8x8xf32> -> vector<8x8xf32>
    "tpu.trace_stop"() : () -> ()
    %cst_18 = arith.constant dense<0xFF800000> : vector<8xf32>
    %19 = vector.multi_reduction <maximumf>, %18, %cst_18 [1] : vector<8x8xf32> to vector<8xf32>
    %20 = vector.shape_cast %19 : vector<8xf32> to vector<8x1xf32>
    %21 = vector.broadcast %20 : vector<8x1xf32> to vector<8x8xf32>
    %22 = arith.subf %18, %21 : vector<8x8xf32>
    %23 = math.exp %22 : vector<8x8xf32>
    %cst_19 = arith.constant dense<0.000000e+00> : vector<8xf32>
    %24 = vector.multi_reduction <add>, %23, %cst_19 [1] : vector<8x8xf32> to vector<8xf32>
    %25 = vector.shape_cast %24 : vector<8xf32> to vector<8x1xf32>
    %26 = tpu.reciprocal %25 {approx = true} : vector<8x1xf32> -> vector<8x1xf32>
    %27 = vector.broadcast %26 : vector<8x1xf32> to vector<8x8xf32>
    %28 = arith.mulf %23, %27 : vector<8x8xf32>
    %29 = arith.truncf %28 : vector<8x8xf32> to vector<8x8xbf16>
    %cst_20 = arith.constant dense<0.000000e+00> : vector<8x32xf32>
    %30 = tpu.matmul %29, %17, %cst_20 {dimension_numbers = #tpu.dot_dimension_numbers<[1], [0], [0], [1], [0, 0, 1, 1], [], []>} : vector<8x8xbf16>, vector<8x32xbf16>, vector<8x32xf32> -> vector<8x32xf32>
    %31 = vector.extract_strided_slice %14 {offsets = [0, 32], sizes = [8, 32], strides = [1, 1]} : vector<8x768xbf16> to vector<8x32xbf16>
    %32 = vector.extract_strided_slice %14 {offsets = [0, 288], sizes = [8, 32], strides = [1, 1]} : vector<8x768xbf16> to vector<8x32xbf16>
    %33 = vector.extract_strided_slice %14 {offsets = [0, 544], sizes = [8, 32], strides = [1, 1]} : vector<8x768xbf16> to vector<8x32xbf16>
    "tpu.trace_start"() <{level = 10 : i32, message = "qd,kd->qk"}> : () -> ()
    %cst_21 = arith.constant dense<0.000000e+00> : vector<8x8xf32>
    %34 = tpu.matmul %31, %32, %cst_21 {dimension_numbers = #tpu.dot_dimension_numbers<[1], [1], [0], [0], [0, 0, 1, 0], [], []>} : vector<8x32xbf16>, vector<8x32xbf16>, vector<8x8xf32> -> vector<8x8xf32>
    "tpu.trace_stop"() : () -> ()
    %cst_22 = arith.constant dense<0xFF800000> : vector<8xf32>
    %35 = vector.multi_reduction <maximumf>, %34, %cst_22 [1] : vector<8x8xf32> to vector<8xf32>
    %36 = vector.shape_cast %35 : vector<8xf32> to vector<8x1xf32>
    %37 = vector.broadcast %36 : vector<8x1xf32> to vector<8x8xf32>
    %38 = arith.subf %34, %37 : vector<8x8xf32>
    %39 = math.exp %38 : vector<8x8xf32>
    %cst_23 = arith.constant dense<0.000000e+00> : vector<8xf32>
    %40 = vector.multi_reduction <add>, %39, %cst_23 [1] : vector<8x8xf32> to vector<8xf32>
    %41 = vector.shape_cast %40 : vector<8xf32> to vector<8x1xf32>
    %42 = tpu.reciprocal %41 {approx = true} : vector<8x1xf32> -> vector<8x1xf32>
    %43 = vector.broadcast %42 : vector<8x1xf32> to vector<8x8xf32>
    %44 = arith.mulf %39, %43 : vector<8x8xf32>
    %45 = arith.truncf %44 : vector<8x8xf32> to vector<8x8xbf16>
    %cst_24 = arith.constant dense<0.000000e+00> : vector<8x32xf32>
    %46 = tpu.matmul %45, %33, %cst_24 {dimension_numbers = #tpu.dot_dimension_numbers<[1], [0], [0], [1], [0, 0, 1, 1], [], []>} : vector<8x8xbf16>, vector<8x32xbf16>, vector<8x32xf32> -> vector<8x32xf32>
    %47 = vector.extract_strided_slice %14 {offsets = [0, 64], sizes = [8, 32], strides = [1, 1]} : vector<8x768xbf16> to vector<8x32xbf16>
    %48 = vector.extract_strided_slice %14 {offsets = [0, 320], sizes = [8, 32], strides = [1, 1]} : vector<8x768xbf16> to vector<8x32xbf16>
    %49 = vector.extract_strided_slice %14 {offsets = [0, 576], sizes = [8, 32], strides = [1, 1]} : vector<8x768xbf16> to vector<8x32xbf16>
    "tpu.trace_start"() <{level = 10 : i32, message = "qd,kd->qk"}> : () -> ()
    %cst_25 = arith.constant dense<0.000000e+00> : vector<8x8xf32>
    %50 = tpu.matmul %47, %48, %cst_25 {dimension_numbers = #tpu.dot_dimension_numbers<[1], [1], [0], [0], [0, 0, 1, 0], [], []>} : vector<8x32xbf16>, vector<8x32xbf16>, vector<8x8xf32> -> vector<8x8xf32>
    "tpu.trace_stop"() : () -> ()
    %cst_26 = arith.constant dense<0xFF800000> : vector<8xf32>
    %51 = vector.multi_reduction <maximumf>, %50, %cst_26 [1] : vector<8x8xf32> to vector<8xf32>
    %52 = vector.shape_cast %51 : vector<8xf32> to vector<8x1xf32>
    %53 = vector.broadcast %52 : vector<8x1xf32> to vector<8x8xf32>
    %54 = arith.subf %50, %53 : vector<8x8xf32>
    %55 = math.exp %54 : vector<8x8xf32>
    %cst_27 = arith.constant dense<0.000000e+00> : vector<8xf32>
    %56 = vector.multi_reduction <add>, %55, %cst_27 [1] : vector<8x8xf32> to vector<8xf32>
    %57 = vector.shape_cast %56 : vector<8xf32> to vector<8x1xf32>
    %58 = tpu.reciprocal %57 {approx = true} : vector<8x1xf32> -> vector<8x1xf32>
    %59 = vector.broadcast %58 : vector<8x1xf32> to vector<8x8xf32>
    %60 = arith.mulf %55, %59 : vector<8x8xf32>
    %61 = arith.truncf %60 : vector<8x8xf32> to vector<8x8xbf16>
    %cst_28 = arith.constant dense<0.000000e+00> : vector<8x32xf32>
    %62 = tpu.matmul %61, %49, %cst_28 {dimension_numbers = #tpu.dot_dimension_numbers<[1], [0], [0], [1], [0, 0, 1, 1], [], []>} : vector<8x8xbf16>, vector<8x32xbf16>, vector<8x32xf32> -> vector<8x32xf32>
    %63 = vector.extract_strided_slice %14 {offsets = [0, 96], sizes = [8, 32], strides = [1, 1]} : vector<8x768xbf16> to vector<8x32xbf16>
    %64 = vector.extract_strided_slice %14 {offsets = [0, 352], sizes = [8, 32], strides = [1, 1]} : vector<8x768xbf16> to vector<8x32xbf16>
    %65 = vector.extract_strided_slice %14 {offsets = [0, 608], sizes = [8, 32], strides = [1, 1]} : vector<8x768xbf16> to vector<8x32xbf16>
    "tpu.trace_start"() <{level = 10 : i32, message = "qd,kd->qk"}> : () -> ()
    %cst_29 = arith.constant dense<0.000000e+00> : vector<8x8xf32>
    %66 = tpu.matmul %63, %64, %cst_29 {dimension_numbers = #tpu.dot_dimension_numbers<[1], [1], [0], [0], [0, 0, 1, 0], [], []>} : vector<8x32xbf16>, vector<8x32xbf16>, vector<8x8xf32> -> vector<8x8xf32>
    "tpu.trace_stop"() : () -> ()
    %cst_30 = arith.constant dense<0xFF800000> : vector<8xf32>
    %67 = vector.multi_reduction <maximumf>, %66, %cst_30 [1] : vector<8x8xf32> to vector<8xf32>
    %68 = vector.shape_cast %67 : vector<8xf32> to vector<8x1xf32>
    %69 = vector.broadcast %68 : vector<8x1xf32> to vector<8x8xf32>
    %70 = arith.subf %66, %69 : vector<8x8xf32>
    %71 = math.exp %70 : vector<8x8xf32>
    %cst_31 = arith.constant dense<0.000000e+00> : vector<8xf32>
    %72 = vector.multi_reduction <add>, %71, %cst_31 [1] : vector<8x8xf32> to vector<8xf32>
    %73 = vector.shape_cast %72 : vector<8xf32> to vector<8x1xf32>
    %74 = tpu.reciprocal %73 {approx = true} : vector<8x1xf32> -> vector<8x1xf32>
    %75 = vector.broadcast %74 : vector<8x1xf32> to vector<8x8xf32>
    %76 = arith.mulf %71, %75 : vector<8x8xf32>
    %77 = arith.truncf %76 : vector<8x8xf32> to vector<8x8xbf16>
    %cst_32 = arith.constant dense<0.000000e+00> : vector<8x32xf32>
    %78 = tpu.matmul %77, %65, %cst_32 {dimension_numbers = #tpu.dot_dimension_numbers<[1], [0], [0], [1], [0, 0, 1, 1], [], []>} : vector<8x8xbf16>, vector<8x32xbf16>, vector<8x32xf32> -> vector<8x32xf32>
    %79 = vector.extract_strided_slice %14 {offsets = [0, 128], sizes = [8, 32], strides = [1, 1]} : vector<8x768xbf16> to vector<8x32xbf16>
    %80 = vector.extract_strided_slice %14 {offsets = [0, 384], sizes = [8, 32], strides = [1, 1]} : vector<8x768xbf16> to vector<8x32xbf16>
    %81 = vector.extract_strided_slice %14 {offsets = [0, 640], sizes = [8, 32], strides = [1, 1]} : vector<8x768xbf16> to vector<8x32xbf16>
    "tpu.trace_start"() <{level = 10 : i32, message = "qd,kd->qk"}> : () -> ()
    %cst_33 = arith.constant dense<0.000000e+00> : vector<8x8xf32>
    %82 = tpu.matmul %79, %80, %cst_33 {dimension_numbers = #tpu.dot_dimension_numbers<[1], [1], [0], [0], [0, 0, 1, 0], [], []>} : vector<8x32xbf16>, vector<8x32xbf16>, vector<8x8xf32> -> vector<8x8xf32>
    "tpu.trace_stop"() : () -> ()
    %cst_34 = arith.constant dense<0xFF800000> : vector<8xf32>
    %83 = vector.multi_reduction <maximumf>, %82, %cst_34 [1] : vector<8x8xf32> to vector<8xf32>
    %84 = vector.shape_cast %83 : vector<8xf32> to vector<8x1xf32>
    %85 = vector.broadcast %84 : vector<8x1xf32> to vector<8x8xf32>
    %86 = arith.subf %82, %85 : vector<8x8xf32>
    %87 = math.exp %86 : vector<8x8xf32>
    %cst_35 = arith.constant dense<0.000000e+00> : vector<8xf32>
    %88 = vector.multi_reduction <add>, %87, %cst_35 [1] : vector<8x8xf32> to vector<8xf32>
    %89 = vector.shape_cast %88 : vector<8xf32> to vector<8x1xf32>
    %90 = tpu.reciprocal %89 {approx = true} : vector<8x1xf32> -> vector<8x1xf32>
    %91 = vector.broadcast %90 : vector<8x1xf32> to vector<8x8xf32>
    %92 = arith.mulf %87, %91 : vector<8x8xf32>
    %93 = arith.truncf %92 : vector<8x8xf32> to vector<8x8xbf16>
    %cst_36 = arith.constant dense<0.000000e+00> : vector<8x32xf32>
    %94 = tpu.matmul %93, %81, %cst_36 {dimension_numbers = #tpu.dot_dimension_numbers<[1], [0], [0], [1], [0, 0, 1, 1], [], []>} : vector<8x8xbf16>, vector<8x32xbf16>, vector<8x32xf32> -> vector<8x32xf32>
    %95 = vector.extract_strided_slice %14 {offsets = [0, 160], sizes = [8, 32], strides = [1, 1]} : vector<8x768xbf16> to vector<8x32xbf16>
    %96 = vector.extract_strided_slice %14 {offsets = [0, 416], sizes = [8, 32], strides = [1, 1]} : vector<8x768xbf16> to vector<8x32xbf16>
    %97 = vector.extract_strided_slice %14 {offsets = [0, 672], sizes = [8, 32], strides = [1, 1]} : vector<8x768xbf16> to vector<8x32xbf16>
    "tpu.trace_start"() <{level = 10 : i32, message = "qd,kd->qk"}> : () -> ()
    %cst_37 = arith.constant dense<0.000000e+00> : vector<8x8xf32>
    %98 = tpu.matmul %95, %96, %cst_37 {dimension_numbers = #tpu.dot_dimension_numbers<[1], [1], [0], [0], [0, 0, 1, 0], [], []>} : vector<8x32xbf16>, vector<8x32xbf16>, vector<8x8xf32> -> vector<8x8xf32>
    "tpu.trace_stop"() : () -> ()
    %cst_38 = arith.constant dense<0xFF800000> : vector<8xf32>
    %99 = vector.multi_reduction <maximumf>, %98, %cst_38 [1] : vector<8x8xf32> to vector<8xf32>
    %100 = vector.shape_cast %99 : vector<8xf32> to vector<8x1xf32>
    %101 = vector.broadcast %100 : vector<8x1xf32> to vector<8x8xf32>
    %102 = arith.subf %98, %101 : vector<8x8xf32>
    %103 = math.exp %102 : vector<8x8xf32>
    %cst_39 = arith.constant dense<0.000000e+00> : vector<8xf32>
    %104 = vector.multi_reduction <add>, %103, %cst_39 [1] : vector<8x8xf32> to vector<8xf32>
    %105 = vector.shape_cast %104 : vector<8xf32> to vector<8x1xf32>
    %106 = tpu.reciprocal %105 {approx = true} : vector<8x1xf32> -> vector<8x1xf32>
    %107 = vector.broadcast %106 : vector<8x1xf32> to vector<8x8xf32>
    %108 = arith.mulf %103, %107 : vector<8x8xf32>
    %109 = arith.truncf %108 : vector<8x8xf32> to vector<8x8xbf16>
    %cst_40 = arith.constant dense<0.000000e+00> : vector<8x32xf32>
    %110 = tpu.matmul %109, %97, %cst_40 {dimension_numbers = #tpu.dot_dimension_numbers<[1], [0], [0], [1], [0, 0, 1, 1], [], []>} : vector<8x8xbf16>, vector<8x32xbf16>, vector<8x32xf32> -> vector<8x32xf32>
    %111 = vector.extract_strided_slice %14 {offsets = [0, 192], sizes = [8, 32], strides = [1, 1]} : vector<8x768xbf16> to vector<8x32xbf16>
    %112 = vector.extract_strided_slice %14 {offsets = [0, 448], sizes = [8, 32], strides = [1, 1]} : vector<8x768xbf16> to vector<8x32xbf16>
    %113 = vector.extract_strided_slice %14 {offsets = [0, 704], sizes = [8, 32], strides = [1, 1]} : vector<8x768xbf16> to vector<8x32xbf16>
    "tpu.trace_start"() <{level = 10 : i32, message = "qd,kd->qk"}> : () -> ()
    %cst_41 = arith.constant dense<0.000000e+00> : vector<8x8xf32>
    %114 = tpu.matmul %111, %112, %cst_41 {dimension_numbers = #tpu.dot_dimension_numbers<[1], [1], [0], [0], [0, 0, 1, 0], [], []>} : vector<8x32xbf16>, vector<8x32xbf16>, vector<8x8xf32> -> vector<8x8xf32>
    "tpu.trace_stop"() : () -> ()
    %cst_42 = arith.constant dense<0xFF800000> : vector<8xf32>
    %115 = vector.multi_reduction <maximumf>, %114, %cst_42 [1] : vector<8x8xf32> to vector<8xf32>
    %116 = vector.shape_cast %115 : vector<8xf32> to vector<8x1xf32>
    %117 = vector.broadcast %116 : vector<8x1xf32> to vector<8x8xf32>
    %118 = arith.subf %114, %117 : vector<8x8xf32>
    %119 = math.exp %118 : vector<8x8xf32>
    %cst_43 = arith.constant dense<0.000000e+00> : vector<8xf32>
    %120 = vector.multi_reduction <add>, %119, %cst_43 [1] : vector<8x8xf32> to vector<8xf32>
    %121 = vector.shape_cast %120 : vector<8xf32> to vector<8x1xf32>
    %122 = tpu.reciprocal %121 {approx = true} : vector<8x1xf32> -> vector<8x1xf32>
    %123 = vector.broadcast %122 : vector<8x1xf32> to vector<8x8xf32>
    %124 = arith.mulf %119, %123 : vector<8x8xf32>
    %125 = arith.truncf %124 : vector<8x8xf32> to vector<8x8xbf16>
    %cst_44 = arith.constant dense<0.000000e+00> : vector<8x32xf32>
    %126 = tpu.matmul %125, %113, %cst_44 {dimension_numbers = #tpu.dot_dimension_numbers<[1], [0], [0], [1], [0, 0, 1, 1], [], []>} : vector<8x8xbf16>, vector<8x32xbf16>, vector<8x32xf32> -> vector<8x32xf32>
    %127 = vector.extract_strided_slice %14 {offsets = [0, 224], sizes = [8, 32], strides = [1, 1]} : vector<8x768xbf16> to vector<8x32xbf16>
    %128 = vector.extract_strided_slice %14 {offsets = [0, 480], sizes = [8, 32], strides = [1, 1]} : vector<8x768xbf16> to vector<8x32xbf16>
    %129 = vector.extract_strided_slice %14 {offsets = [0, 736], sizes = [8, 32], strides = [1, 1]} : vector<8x768xbf16> to vector<8x32xbf16>
    "tpu.trace_start"() <{level = 10 : i32, message = "qd,kd->qk"}> : () -> ()
    %cst_45 = arith.constant dense<0.000000e+00> : vector<8x8xf32>
    %130 = tpu.matmul %127, %128, %cst_45 {dimension_numbers = #tpu.dot_dimension_numbers<[1], [1], [0], [0], [0, 0, 1, 0], [], []>} : vector<8x32xbf16>, vector<8x32xbf16>, vector<8x8xf32> -> vector<8x8xf32>
    "tpu.trace_stop"() : () -> ()
    %cst_46 = arith.constant dense<0xFF800000> : vector<8xf32>
    %131 = vector.multi_reduction <maximumf>, %130, %cst_46 [1] : vector<8x8xf32> to vector<8xf32>
    %132 = vector.shape_cast %131 : vector<8xf32> to vector<8x1xf32>
    %133 = vector.broadcast %132 : vector<8x1xf32> to vector<8x8xf32>
    %134 = arith.subf %130, %133 : vector<8x8xf32>
    %135 = math.exp %134 : vector<8x8xf32>
    %cst_47 = arith.constant dense<0.000000e+00> : vector<8xf32>
    %136 = vector.multi_reduction <add>, %135, %cst_47 [1] : vector<8x8xf32> to vector<8xf32>
    %137 = vector.shape_cast %136 : vector<8xf32> to vector<8x1xf32>
    %138 = tpu.reciprocal %137 {approx = true} : vector<8x1xf32> -> vector<8x1xf32>
    %139 = vector.broadcast %138 : vector<8x1xf32> to vector<8x8xf32>
    %140 = arith.mulf %135, %139 : vector<8x8xf32>
    %141 = arith.truncf %140 : vector<8x8xf32> to vector<8x8xbf16>
    %cst_48 = arith.constant dense<0.000000e+00> : vector<8x32xf32>
    %142 = tpu.matmul %141, %129, %cst_48 {dimension_numbers = #tpu.dot_dimension_numbers<[1], [0], [0], [1], [0, 0, 1, 1], [], []>} : vector<8x8xbf16>, vector<8x32xbf16>, vector<8x32xf32> -> vector<8x32xf32>
    %143 = tpu.concatenate %30, %46, %62, %78, %94, %110, %126, %142 in 1 : vector<8x32xf32>, vector<8x32xf32>, vector<8x32xf32>, vector<8x32xf32>, vector<8x32xf32>, vector<8x32xf32>, vector<8x32xf32>, vector<8x32xf32> -> vector<8x256xf32>
    %144 = vector.extract_strided_slice %7 {offsets = [0, 0], sizes = [1, 256], strides = [1, 1]} : vector<8x256xf32> to vector<1x256xf32>
    %145 = vector.extract_strided_slice %7 {offsets = [1, 0], sizes = [1, 256], strides = [1, 1]} : vector<8x256xf32> to vector<1x256xf32>
    %146 = vector.extract_strided_slice %7 {offsets = [2, 0], sizes = [1, 256], strides = [1, 1]} : vector<8x256xf32> to vector<1x256xf32>
    %147 = vector.extract_strided_slice %7 {offsets = [3, 0], sizes = [1, 256], strides = [1, 1]} : vector<8x256xf32> to vector<1x256xf32>
    %148 = vector.extract_strided_slice %7 {offsets = [4, 0], sizes = [1, 128], strides = [1, 1]} : vector<8x256xf32> to vector<1x128xf32>
    %149 = vector.extract_strided_slice %7 {offsets = [5, 0], sizes = [1, 128], strides = [1, 1]} : vector<8x256xf32> to vector<1x128xf32>
    %150 = vector.extract_strided_slice %7 {offsets = [6, 0], sizes = [1, 128], strides = [1, 1]} : vector<8x256xf32> to vector<1x128xf32>
    %151 = arith.truncf %143 : vector<8x256xf32> to vector<8x256xbf16>
    %cst_49 = arith.constant dense<0.000000e+00> : vector<8x256xf32>
    %152 = tpu.matmul %151, %4, %cst_49 {dimension_numbers = #tpu.dot_dimension_numbers<[1], [0], [0], [1], [0, 0, 1, 1], [], []>} : vector<8x256xbf16>, vector<256x256xbf16>, vector<8x256xf32> -> vector<8x256xf32>
    %153 = vector.broadcast %144 : vector<1x256xf32> to vector<8x256xf32>
    %154 = arith.addf %152, %153 : vector<8x256xf32>
    %155 = arith.addf %9, %154 : vector<8x256xf32>
    %cst_50 = arith.constant dense<0.000000e+00> : vector<8xf32>
    %156 = vector.multi_reduction <add>, %155, %cst_50 [1] : vector<8x256xf32> to vector<8xf32>
    %157 = vector.shape_cast %156 : vector<8xf32> to vector<8x1xf32>
    %cst_51 = arith.constant 0.00520833349 : f32
    %158 = vector.broadcast %cst_51 : f32 to vector<8x1xf32>
    %159 = arith.mulf %157, %158 : vector<8x1xf32>
    %160 = arith.mulf %155, %155 : vector<8x256xf32>
    %cst_52 = arith.constant dense<0.000000e+00> : vector<8xf32>
    %161 = vector.multi_reduction <add>, %160, %cst_52 [1] : vector<8x256xf32> to vector<8xf32>
    %162 = vector.shape_cast %161 : vector<8xf32> to vector<8x1xf32>
    %cst_53 = arith.constant 0.00520833349 : f32
    %163 = vector.broadcast %cst_53 : f32 to vector<8x1xf32>
    %164 = arith.mulf %162, %163 : vector<8x1xf32>
    %165 = arith.mulf %159, %159 : vector<8x1xf32>
    %166 = arith.subf %164, %165 : vector<8x1xf32>
    %167 = vector.broadcast %159 : vector<8x1xf32> to vector<8x256xf32>
    %168 = arith.subf %155, %167 : vector<8x256xf32>
    %cst_54 = arith.constant 9.99999974E-6 : f32
    %169 = vector.broadcast %cst_54 : f32 to vector<8x1xf32>
    %170 = arith.addf %166, %169 : vector<8x1xf32>
    %171 = math.rsqrt %170 : vector<8x1xf32>
    %172 = vector.broadcast %171 : vector<8x1xf32> to vector<8x256xf32>
    %173 = arith.mulf %168, %172 : vector<8x256xf32>
    %174 = vector.broadcast %145 : vector<1x256xf32> to vector<8x256xf32>
    %175 = arith.mulf %173, %174 : vector<8x256xf32>
    %176 = vector.broadcast %146 : vector<1x256xf32> to vector<8x256xf32>
    %177 = arith.addf %175, %176 : vector<8x256xf32>
    %178 = arith.truncf %177 : vector<8x256xf32> to vector<8x256xbf16>
    %cst_55 = arith.constant dense<0.000000e+00> : vector<8x256xf32>
    %179 = tpu.matmul %178, %5, %cst_55 {dimension_numbers = #tpu.dot_dimension_numbers<[1], [0], [0], [1], [0, 0, 1, 1], [], []>} : vector<8x256xbf16>, vector<256x256xbf16>, vector<8x256xf32> -> vector<8x256xf32>
    %180 = vector.broadcast %147 : vector<1x256xf32> to vector<8x256xf32>
    %181 = arith.addf %179, %180 : vector<8x256xf32>
    %cst_56 = arith.constant 0.000000e+00 : f32
    %182 = vector.broadcast %cst_56 : f32 to vector<8x256xf32>
    %183 = arith.maximumf %181, %182 : vector<8x256xf32>
    %184 = arith.truncf %183 : vector<8x256xf32> to vector<8x256xbf16>
    %cst_57 = arith.constant dense<0.000000e+00> : vector<8x128xf32>
    %185 = tpu.matmul %184, %6, %cst_57 {dimension_numbers = #tpu.dot_dimension_numbers<[1], [0], [0], [1], [0, 0, 1, 1], [], []>} : vector<8x256xbf16>, vector<256x128xbf16>, vector<8x128xf32> -> vector<8x128xf32>
    %186 = vector.broadcast %148 : vector<1x128xf32> to vector<8x128xf32>
    %187 = arith.addf %185, %186 : vector<8x128xf32>
    %188 = vector.shape_cast %0 : vector<1x8x128xf32> to vector<8x128xf32>
    %189 = arith.addf %188, %187 : vector<8x128xf32>
    %cst_58 = arith.constant dense<0.000000e+00> : vector<8xf32>
    %190 = vector.multi_reduction <add>, %189, %cst_58 [1] : vector<8x128xf32> to vector<8xf32>
    %191 = vector.shape_cast %190 : vector<8xf32> to vector<8x1xf32>
    %cst_59 = arith.constant 7.812500e-03 : f32
    %192 = vector.broadcast %cst_59 : f32 to vector<8x1xf32>
    %193 = arith.mulf %191, %192 : vector<8x1xf32>
    %194 = arith.mulf %189, %189 : vector<8x128xf32>
    %cst_60 = arith.constant dense<0.000000e+00> : vector<8xf32>
    %195 = vector.multi_reduction <add>, %194, %cst_60 [1] : vector<8x128xf32> to vector<8xf32>
    %196 = vector.shape_cast %195 : vector<8xf32> to vector<8x1xf32>
    %cst_61 = arith.constant 7.812500e-03 : f32
    %197 = vector.broadcast %cst_61 : f32 to vector<8x1xf32>
    %198 = arith.mulf %196, %197 : vector<8x1xf32>
    %199 = arith.mulf %193, %193 : vector<8x1xf32>
    %200 = arith.subf %198, %199 : vector<8x1xf32>
    %201 = vector.broadcast %193 : vector<8x1xf32> to vector<8x128xf32>
    %202 = arith.subf %189, %201 : vector<8x128xf32>
    %cst_62 = arith.constant 9.99999974E-6 : f32
    %203 = vector.broadcast %cst_62 : f32 to vector<8x1xf32>
    %204 = arith.addf %200, %203 : vector<8x1xf32>
    %205 = math.rsqrt %204 : vector<8x1xf32>
    %206 = vector.broadcast %205 : vector<8x1xf32> to vector<8x128xf32>
    %207 = arith.mulf %202, %206 : vector<8x128xf32>
    %208 = vector.broadcast %149 : vector<1x128xf32> to vector<8x128xf32>
    %209 = arith.mulf %207, %208 : vector<8x128xf32>
    %210 = vector.broadcast %150 : vector<1x128xf32> to vector<8x128xf32>
    %211 = arith.addf %209, %210 : vector<8x128xf32>
    %212 = vector.shape_cast %211 : vector<8x128xf32> to vector<1x8x128xf32>
    %c0_63 = arith.constant 0 : index
    %c0_64 = arith.constant 0 : index
    %c0_65 = arith.constant 0 : index
    %213 = vector.load %arg3[%c0_63, %c0_64, %c0_65] : memref<1x8x128xf32, #tpu.memory_space<vmem>>, vector<1x8x128xf32>
    %c0_66 = arith.constant 0 : index
    %c0_67 = arith.constant 0 : index
    %214 = vector.load %arg10[%c0_66, %c0_67] : memref<256x768xbf16, #tpu.memory_space<vmem>>, vector<256x768xbf16>
    %c0_68 = arith.constant 0 : index
    %c0_69 = arith.constant 0 : index
    %215 = vector.load %arg11[%c0_68, %c0_69] : memref<1x768xf32, #tpu.memory_space<vmem>>, vector<1x768xf32>
    %c0_70 = arith.constant 0 : index
    %c0_71 = arith.constant 0 : index
    %216 = vector.load %arg12[%c0_70, %c0_71] : memref<256x256xbf16, #tpu.memory_space<vmem>>, vector<256x256xbf16>
    %c0_72 = arith.constant 0 : index
    %c0_73 = arith.constant 0 : index
    %217 = vector.load %arg13[%c0_72, %c0_73] : memref<256x256xbf16, #tpu.memory_space<vmem>>, vector<256x256xbf16>
    %c0_74 = arith.constant 0 : index
    %c0_75 = arith.constant 0 : index
    %218 = vector.load %arg14[%c0_74, %c0_75] : memref<256x128xbf16, #tpu.memory_space<vmem>>, vector<256x128xbf16>
    %c0_76 = arith.constant 0 : index
    %c0_77 = arith.constant 0 : index
    %219 = vector.load %arg15[%c0_76, %c0_77] : memref<8x256xf32, #tpu.memory_space<vmem>>, vector<8x256xf32>
    %220 = tpu.concatenate %212, %213 in 2 : vector<1x8x128xf32>, vector<1x8x128xf32> -> vector<1x8x256xf32>
    %221 = vector.shape_cast %220 : vector<1x8x256xf32> to vector<8x256xf32>
    %222 = arith.truncf %221 : vector<8x256xf32> to vector<8x256xbf16>
    %cst_78 = arith.constant dense<0.000000e+00> : vector<8x768xf32>
    %223 = tpu.matmul %222, %214, %cst_78 {dimension_numbers = #tpu.dot_dimension_numbers<[1], [0], [0], [1], [0, 0, 1, 1], [], []>} : vector<8x256xbf16>, vector<256x768xbf16>, vector<8x768xf32> -> vector<8x768xf32>
    %224 = vector.broadcast %215 : vector<1x768xf32> to vector<8x768xf32>
    %225 = arith.addf %223, %224 : vector<8x768xf32>
    %226 = arith.truncf %225 : vector<8x768xf32> to vector<8x768xbf16>
    %227 = vector.extract_strided_slice %226 {offsets = [0, 0], sizes = [8, 32], strides = [1, 1]} : vector<8x768xbf16> to vector<8x32xbf16>
    %228 = vector.extract_strided_slice %226 {offsets = [0, 256], sizes = [8, 32], strides = [1, 1]} : vector<8x768xbf16> to vector<8x32xbf16>
    %229 = vector.extract_strided_slice %226 {offsets = [0, 512], sizes = [8, 32], strides = [1, 1]} : vector<8x768xbf16> to vector<8x32xbf16>
    "tpu.trace_start"() <{level = 10 : i32, message = "qd,kd->qk"}> : () -> ()
    %cst_79 = arith.constant dense<0.000000e+00> : vector<8x8xf32>
    %230 = tpu.matmul %227, %228, %cst_79 {dimension_numbers = #tpu.dot_dimension_numbers<[1], [1], [0], [0], [0, 0, 1, 0], [], []>} : vector<8x32xbf16>, vector<8x32xbf16>, vector<8x8xf32> -> vector<8x8xf32>
    "tpu.trace_stop"() : () -> ()
    %cst_80 = arith.constant dense<0xFF800000> : vector<8xf32>
    %231 = vector.multi_reduction <maximumf>, %230, %cst_80 [1] : vector<8x8xf32> to vector<8xf32>
    %232 = vector.shape_cast %231 : vector<8xf32> to vector<8x1xf32>
    %233 = vector.broadcast %232 : vector<8x1xf32> to vector<8x8xf32>
    %234 = arith.subf %230, %233 : vector<8x8xf32>
    %235 = math.exp %234 : vector<8x8xf32>
    %cst_81 = arith.constant dense<0.000000e+00> : vector<8xf32>
    %236 = vector.multi_reduction <add>, %235, %cst_81 [1] : vector<8x8xf32> to vector<8xf32>
    %237 = vector.shape_cast %236 : vector<8xf32> to vector<8x1xf32>
    %238 = tpu.reciprocal %237 {approx = true} : vector<8x1xf32> -> vector<8x1xf32>
    %239 = vector.broadcast %238 : vector<8x1xf32> to vector<8x8xf32>
    %240 = arith.mulf %235, %239 : vector<8x8xf32>
    %241 = arith.truncf %240 : vector<8x8xf32> to vector<8x8xbf16>
    %cst_82 = arith.constant dense<0.000000e+00> : vector<8x32xf32>
    %242 = tpu.matmul %241, %229, %cst_82 {dimension_numbers = #tpu.dot_dimension_numbers<[1], [0], [0], [1], [0, 0, 1, 1], [], []>} : vector<8x8xbf16>, vector<8x32xbf16>, vector<8x32xf32> -> vector<8x32xf32>
    %243 = vector.extract_strided_slice %226 {offsets = [0, 32], sizes = [8, 32], strides = [1, 1]} : vector<8x768xbf16> to vector<8x32xbf16>
    %244 = vector.extract_strided_slice %226 {offsets = [0, 288], sizes = [8, 32], strides = [1, 1]} : vector<8x768xbf16> to vector<8x32xbf16>
    %245 = vector.extract_strided_slice %226 {offsets = [0, 544], sizes = [8, 32], strides = [1, 1]} : vector<8x768xbf16> to vector<8x32xbf16>
    "tpu.trace_start"() <{level = 10 : i32, message = "qd,kd->qk"}> : () -> ()
    %cst_83 = arith.constant dense<0.000000e+00> : vector<8x8xf32>
    %246 = tpu.matmul %243, %244, %cst_83 {dimension_numbers = #tpu.dot_dimension_numbers<[1], [1], [0], [0], [0, 0, 1, 0], [], []>} : vector<8x32xbf16>, vector<8x32xbf16>, vector<8x8xf32> -> vector<8x8xf32>
    "tpu.trace_stop"() : () -> ()
    %cst_84 = arith.constant dense<0xFF800000> : vector<8xf32>
    %247 = vector.multi_reduction <maximumf>, %246, %cst_84 [1] : vector<8x8xf32> to vector<8xf32>
    %248 = vector.shape_cast %247 : vector<8xf32> to vector<8x1xf32>
    %249 = vector.broadcast %248 : vector<8x1xf32> to vector<8x8xf32>
    %250 = arith.subf %246, %249 : vector<8x8xf32>
    %251 = math.exp %250 : vector<8x8xf32>
    %cst_85 = arith.constant dense<0.000000e+00> : vector<8xf32>
    %252 = vector.multi_reduction <add>, %251, %cst_85 [1] : vector<8x8xf32> to vector<8xf32>
    %253 = vector.shape_cast %252 : vector<8xf32> to vector<8x1xf32>
    %254 = tpu.reciprocal %253 {approx = true} : vector<8x1xf32> -> vector<8x1xf32>
    %255 = vector.broadcast %254 : vector<8x1xf32> to vector<8x8xf32>
    %256 = arith.mulf %251, %255 : vector<8x8xf32>
    %257 = arith.truncf %256 : vector<8x8xf32> to vector<8x8xbf16>
    %cst_86 = arith.constant dense<0.000000e+00> : vector<8x32xf32>
    %258 = tpu.matmul %257, %245, %cst_86 {dimension_numbers = #tpu.dot_dimension_numbers<[1], [0], [0], [1], [0, 0, 1, 1], [], []>} : vector<8x8xbf16>, vector<8x32xbf16>, vector<8x32xf32> -> vector<8x32xf32>
    %259 = vector.extract_strided_slice %226 {offsets = [0, 64], sizes = [8, 32], strides = [1, 1]} : vector<8x768xbf16> to vector<8x32xbf16>
    %260 = vector.extract_strided_slice %226 {offsets = [0, 320], sizes = [8, 32], strides = [1, 1]} : vector<8x768xbf16> to vector<8x32xbf16>
    %261 = vector.extract_strided_slice %226 {offsets = [0, 576], sizes = [8, 32], strides = [1, 1]} : vector<8x768xbf16> to vector<8x32xbf16>
    "tpu.trace_start"() <{level = 10 : i32, message = "qd,kd->qk"}> : () -> ()
    %cst_87 = arith.constant dense<0.000000e+00> : vector<8x8xf32>
    %262 = tpu.matmul %259, %260, %cst_87 {dimension_numbers = #tpu.dot_dimension_numbers<[1], [1], [0], [0], [0, 0, 1, 0], [], []>} : vector<8x32xbf16>, vector<8x32xbf16>, vector<8x8xf32> -> vector<8x8xf32>
    "tpu.trace_stop"() : () -> ()
    %cst_88 = arith.constant dense<0xFF800000> : vector<8xf32>
    %263 = vector.multi_reduction <maximumf>, %262, %cst_88 [1] : vector<8x8xf32> to vector<8xf32>
    %264 = vector.shape_cast %263 : vector<8xf32> to vector<8x1xf32>
    %265 = vector.broadcast %264 : vector<8x1xf32> to vector<8x8xf32>
    %266 = arith.subf %262, %265 : vector<8x8xf32>
    %267 = math.exp %266 : vector<8x8xf32>
    %cst_89 = arith.constant dense<0.000000e+00> : vector<8xf32>
    %268 = vector.multi_reduction <add>, %267, %cst_89 [1] : vector<8x8xf32> to vector<8xf32>
    %269 = vector.shape_cast %268 : vector<8xf32> to vector<8x1xf32>
    %270 = tpu.reciprocal %269 {approx = true} : vector<8x1xf32> -> vector<8x1xf32>
    %271 = vector.broadcast %270 : vector<8x1xf32> to vector<8x8xf32>
    %272 = arith.mulf %267, %271 : vector<8x8xf32>
    %273 = arith.truncf %272 : vector<8x8xf32> to vector<8x8xbf16>
    %cst_90 = arith.constant dense<0.000000e+00> : vector<8x32xf32>
    %274 = tpu.matmul %273, %261, %cst_90 {dimension_numbers = #tpu.dot_dimension_numbers<[1], [0], [0], [1], [0, 0, 1, 1], [], []>} : vector<8x8xbf16>, vector<8x32xbf16>, vector<8x32xf32> -> vector<8x32xf32>
    %275 = vector.extract_strided_slice %226 {offsets = [0, 96], sizes = [8, 32], strides = [1, 1]} : vector<8x768xbf16> to vector<8x32xbf16>
    %276 = vector.extract_strided_slice %226 {offsets = [0, 352], sizes = [8, 32], strides = [1, 1]} : vector<8x768xbf16> to vector<8x32xbf16>
    %277 = vector.extract_strided_slice %226 {offsets = [0, 608], sizes = [8, 32], strides = [1, 1]} : vector<8x768xbf16> to vector<8x32xbf16>
    "tpu.trace_start"() <{level = 10 : i32, message = "qd,kd->qk"}> : () -> ()
    %cst_91 = arith.constant dense<0.000000e+00> : vector<8x8xf32>
    %278 = tpu.matmul %275, %276, %cst_91 {dimension_numbers = #tpu.dot_dimension_numbers<[1], [1], [0], [0], [0, 0, 1, 0], [], []>} : vector<8x32xbf16>, vector<8x32xbf16>, vector<8x8xf32> -> vector<8x8xf32>
    "tpu.trace_stop"() : () -> ()
    %cst_92 = arith.constant dense<0xFF800000> : vector<8xf32>
    %279 = vector.multi_reduction <maximumf>, %278, %cst_92 [1] : vector<8x8xf32> to vector<8xf32>
    %280 = vector.shape_cast %279 : vector<8xf32> to vector<8x1xf32>
    %281 = vector.broadcast %280 : vector<8x1xf32> to vector<8x8xf32>
    %282 = arith.subf %278, %281 : vector<8x8xf32>
    %283 = math.exp %282 : vector<8x8xf32>
    %cst_93 = arith.constant dense<0.000000e+00> : vector<8xf32>
    %284 = vector.multi_reduction <add>, %283, %cst_93 [1] : vector<8x8xf32> to vector<8xf32>
    %285 = vector.shape_cast %284 : vector<8xf32> to vector<8x1xf32>
    %286 = tpu.reciprocal %285 {approx = true} : vector<8x1xf32> -> vector<8x1xf32>
    %287 = vector.broadcast %286 : vector<8x1xf32> to vector<8x8xf32>
    %288 = arith.mulf %283, %287 : vector<8x8xf32>
    %289 = arith.truncf %288 : vector<8x8xf32> to vector<8x8xbf16>
    %cst_94 = arith.constant dense<0.000000e+00> : vector<8x32xf32>
    %290 = tpu.matmul %289, %277, %cst_94 {dimension_numbers = #tpu.dot_dimension_numbers<[1], [0], [0], [1], [0, 0, 1, 1], [], []>} : vector<8x8xbf16>, vector<8x32xbf16>, vector<8x32xf32> -> vector<8x32xf32>
    %291 = vector.extract_strided_slice %226 {offsets = [0, 128], sizes = [8, 32], strides = [1, 1]} : vector<8x768xbf16> to vector<8x32xbf16>
    %292 = vector.extract_strided_slice %226 {offsets = [0, 384], sizes = [8, 32], strides = [1, 1]} : vector<8x768xbf16> to vector<8x32xbf16>
    %293 = vector.extract_strided_slice %226 {offsets = [0, 640], sizes = [8, 32], strides = [1, 1]} : vector<8x768xbf16> to vector<8x32xbf16>
    "tpu.trace_start"() <{level = 10 : i32, message = "qd,kd->qk"}> : () -> ()
    %cst_95 = arith.constant dense<0.000000e+00> : vector<8x8xf32>
    %294 = tpu.matmul %291, %292, %cst_95 {dimension_numbers = #tpu.dot_dimension_numbers<[1], [1], [0], [0], [0, 0, 1, 0], [], []>} : vector<8x32xbf16>, vector<8x32xbf16>, vector<8x8xf32> -> vector<8x8xf32>
    "tpu.trace_stop"() : () -> ()
    %cst_96 = arith.constant dense<0xFF800000> : vector<8xf32>
    %295 = vector.multi_reduction <maximumf>, %294, %cst_96 [1] : vector<8x8xf32> to vector<8xf32>
    %296 = vector.shape_cast %295 : vector<8xf32> to vector<8x1xf32>
    %297 = vector.broadcast %296 : vector<8x1xf32> to vector<8x8xf32>
    %298 = arith.subf %294, %297 : vector<8x8xf32>
    %299 = math.exp %298 : vector<8x8xf32>
    %cst_97 = arith.constant dense<0.000000e+00> : vector<8xf32>
    %300 = vector.multi_reduction <add>, %299, %cst_97 [1] : vector<8x8xf32> to vector<8xf32>
    %301 = vector.shape_cast %300 : vector<8xf32> to vector<8x1xf32>
    %302 = tpu.reciprocal %301 {approx = true} : vector<8x1xf32> -> vector<8x1xf32>
    %303 = vector.broadcast %302 : vector<8x1xf32> to vector<8x8xf32>
    %304 = arith.mulf %299, %303 : vector<8x8xf32>
    %305 = arith.truncf %304 : vector<8x8xf32> to vector<8x8xbf16>
    %cst_98 = arith.constant dense<0.000000e+00> : vector<8x32xf32>
    %306 = tpu.matmul %305, %293, %cst_98 {dimension_numbers = #tpu.dot_dimension_numbers<[1], [0], [0], [1], [0, 0, 1, 1], [], []>} : vector<8x8xbf16>, vector<8x32xbf16>, vector<8x32xf32> -> vector<8x32xf32>
    %307 = vector.extract_strided_slice %226 {offsets = [0, 160], sizes = [8, 32], strides = [1, 1]} : vector<8x768xbf16> to vector<8x32xbf16>
    %308 = vector.extract_strided_slice %226 {offsets = [0, 416], sizes = [8, 32], strides = [1, 1]} : vector<8x768xbf16> to vector<8x32xbf16>
    %309 = vector.extract_strided_slice %226 {offsets = [0, 672], sizes = [8, 32], strides = [1, 1]} : vector<8x768xbf16> to vector<8x32xbf16>
    "tpu.trace_start"() <{level = 10 : i32, message = "qd,kd->qk"}> : () -> ()
    %cst_99 = arith.constant dense<0.000000e+00> : vector<8x8xf32>
    %310 = tpu.matmul %307, %308, %cst_99 {dimension_numbers = #tpu.dot_dimension_numbers<[1], [1], [0], [0], [0, 0, 1, 0], [], []>} : vector<8x32xbf16>, vector<8x32xbf16>, vector<8x8xf32> -> vector<8x8xf32>
    "tpu.trace_stop"() : () -> ()
    %cst_100 = arith.constant dense<0xFF800000> : vector<8xf32>
    %311 = vector.multi_reduction <maximumf>, %310, %cst_100 [1] : vector<8x8xf32> to vector<8xf32>
    %312 = vector.shape_cast %311 : vector<8xf32> to vector<8x1xf32>
    %313 = vector.broadcast %312 : vector<8x1xf32> to vector<8x8xf32>
    %314 = arith.subf %310, %313 : vector<8x8xf32>
    %315 = math.exp %314 : vector<8x8xf32>
    %cst_101 = arith.constant dense<0.000000e+00> : vector<8xf32>
    %316 = vector.multi_reduction <add>, %315, %cst_101 [1] : vector<8x8xf32> to vector<8xf32>
    %317 = vector.shape_cast %316 : vector<8xf32> to vector<8x1xf32>
    %318 = tpu.reciprocal %317 {approx = true} : vector<8x1xf32> -> vector<8x1xf32>
    %319 = vector.broadcast %318 : vector<8x1xf32> to vector<8x8xf32>
    %320 = arith.mulf %315, %319 : vector<8x8xf32>
    %321 = arith.truncf %320 : vector<8x8xf32> to vector<8x8xbf16>
    %cst_102 = arith.constant dense<0.000000e+00> : vector<8x32xf32>
    %322 = tpu.matmul %321, %309, %cst_102 {dimension_numbers = #tpu.dot_dimension_numbers<[1], [0], [0], [1], [0, 0, 1, 1], [], []>} : vector<8x8xbf16>, vector<8x32xbf16>, vector<8x32xf32> -> vector<8x32xf32>
    %323 = vector.extract_strided_slice %226 {offsets = [0, 192], sizes = [8, 32], strides = [1, 1]} : vector<8x768xbf16> to vector<8x32xbf16>
    %324 = vector.extract_strided_slice %226 {offsets = [0, 448], sizes = [8, 32], strides = [1, 1]} : vector<8x768xbf16> to vector<8x32xbf16>
    %325 = vector.extract_strided_slice %226 {offsets = [0, 704], sizes = [8, 32], strides = [1, 1]} : vector<8x768xbf16> to vector<8x32xbf16>
    "tpu.trace_start"() <{level = 10 : i32, message = "qd,kd->qk"}> : () -> ()
    %cst_103 = arith.constant dense<0.000000e+00> : vector<8x8xf32>
    %326 = tpu.matmul %323, %324, %cst_103 {dimension_numbers = #tpu.dot_dimension_numbers<[1], [1], [0], [0], [0, 0, 1, 0], [], []>} : vector<8x32xbf16>, vector<8x32xbf16>, vector<8x8xf32> -> vector<8x8xf32>
    "tpu.trace_stop"() : () -> ()
    %cst_104 = arith.constant dense<0xFF800000> : vector<8xf32>
    %327 = vector.multi_reduction <maximumf>, %326, %cst_104 [1] : vector<8x8xf32> to vector<8xf32>
    %328 = vector.shape_cast %327 : vector<8xf32> to vector<8x1xf32>
    %329 = vector.broadcast %328 : vector<8x1xf32> to vector<8x8xf32>
    %330 = arith.subf %326, %329 : vector<8x8xf32>
    %331 = math.exp %330 : vector<8x8xf32>
    %cst_105 = arith.constant dense<0.000000e+00> : vector<8xf32>
    %332 = vector.multi_reduction <add>, %331, %cst_105 [1] : vector<8x8xf32> to vector<8xf32>
    %333 = vector.shape_cast %332 : vector<8xf32> to vector<8x1xf32>
    %334 = tpu.reciprocal %333 {approx = true} : vector<8x1xf32> -> vector<8x1xf32>
    %335 = vector.broadcast %334 : vector<8x1xf32> to vector<8x8xf32>
    %336 = arith.mulf %331, %335 : vector<8x8xf32>
    %337 = arith.truncf %336 : vector<8x8xf32> to vector<8x8xbf16>
    %cst_106 = arith.constant dense<0.000000e+00> : vector<8x32xf32>
    %338 = tpu.matmul %337, %325, %cst_106 {dimension_numbers = #tpu.dot_dimension_numbers<[1], [0], [0], [1], [0, 0, 1, 1], [], []>} : vector<8x8xbf16>, vector<8x32xbf16>, vector<8x32xf32> -> vector<8x32xf32>
    %339 = vector.extract_strided_slice %226 {offsets = [0, 224], sizes = [8, 32], strides = [1, 1]} : vector<8x768xbf16> to vector<8x32xbf16>
    %340 = vector.extract_strided_slice %226 {offsets = [0, 480], sizes = [8, 32], strides = [1, 1]} : vector<8x768xbf16> to vector<8x32xbf16>
    %341 = vector.extract_strided_slice %226 {offsets = [0, 736], sizes = [8, 32], strides = [1, 1]} : vector<8x768xbf16> to vector<8x32xbf16>
    "tpu.trace_start"() <{level = 10 : i32, message = "qd,kd->qk"}> : () -> ()
    %cst_107 = arith.constant dense<0.000000e+00> : vector<8x8xf32>
    %342 = tpu.matmul %339, %340, %cst_107 {dimension_numbers = #tpu.dot_dimension_numbers<[1], [1], [0], [0], [0, 0, 1, 0], [], []>} : vector<8x32xbf16>, vector<8x32xbf16>, vector<8x8xf32> -> vector<8x8xf32>
    "tpu.trace_stop"() : () -> ()
    %cst_108 = arith.constant dense<0xFF800000> : vector<8xf32>
    %343 = vector.multi_reduction <maximumf>, %342, %cst_108 [1] : vector<8x8xf32> to vector<8xf32>
    %344 = vector.shape_cast %343 : vector<8xf32> to vector<8x1xf32>
    %345 = vector.broadcast %344 : vector<8x1xf32> to vector<8x8xf32>
    %346 = arith.subf %342, %345 : vector<8x8xf32>
    %347 = math.exp %346 : vector<8x8xf32>
    %cst_109 = arith.constant dense<0.000000e+00> : vector<8xf32>
    %348 = vector.multi_reduction <add>, %347, %cst_109 [1] : vector<8x8xf32> to vector<8xf32>
    %349 = vector.shape_cast %348 : vector<8xf32> to vector<8x1xf32>
    %350 = tpu.reciprocal %349 {approx = true} : vector<8x1xf32> -> vector<8x1xf32>
    %351 = vector.broadcast %350 : vector<8x1xf32> to vector<8x8xf32>
    %352 = arith.mulf %347, %351 : vector<8x8xf32>
    %353 = arith.truncf %352 : vector<8x8xf32> to vector<8x8xbf16>
    %cst_110 = arith.constant dense<0.000000e+00> : vector<8x32xf32>
    %354 = tpu.matmul %353, %341, %cst_110 {dimension_numbers = #tpu.dot_dimension_numbers<[1], [0], [0], [1], [0, 0, 1, 1], [], []>} : vector<8x8xbf16>, vector<8x32xbf16>, vector<8x32xf32> -> vector<8x32xf32>
    %355 = tpu.concatenate %242, %258, %274, %290, %306, %322, %338, %354 in 1 : vector<8x32xf32>, vector<8x32xf32>, vector<8x32xf32>, vector<8x32xf32>, vector<8x32xf32>, vector<8x32xf32>, vector<8x32xf32>, vector<8x32xf32> -> vector<8x256xf32>
    %356 = vector.extract_strided_slice %219 {offsets = [0, 0], sizes = [1, 256], strides = [1, 1]} : vector<8x256xf32> to vector<1x256xf32>
    %357 = vector.extract_strided_slice %219 {offsets = [1, 0], sizes = [1, 256], strides = [1, 1]} : vector<8x256xf32> to vector<1x256xf32>
    %358 = vector.extract_strided_slice %219 {offsets = [2, 0], sizes = [1, 256], strides = [1, 1]} : vector<8x256xf32> to vector<1x256xf32>
    %359 = vector.extract_strided_slice %219 {offsets = [3, 0], sizes = [1, 256], strides = [1, 1]} : vector<8x256xf32> to vector<1x256xf32>
    %360 = vector.extract_strided_slice %219 {offsets = [4, 0], sizes = [1, 128], strides = [1, 1]} : vector<8x256xf32> to vector<1x128xf32>
    %361 = vector.extract_strided_slice %219 {offsets = [5, 0], sizes = [1, 128], strides = [1, 1]} : vector<8x256xf32> to vector<1x128xf32>
    %362 = vector.extract_strided_slice %219 {offsets = [6, 0], sizes = [1, 128], strides = [1, 1]} : vector<8x256xf32> to vector<1x128xf32>
    %363 = arith.truncf %355 : vector<8x256xf32> to vector<8x256xbf16>
    %cst_111 = arith.constant dense<0.000000e+00> : vector<8x256xf32>
    %364 = tpu.matmul %363, %216, %cst_111 {dimension_numbers = #tpu.dot_dimension_numbers<[1], [0], [0], [1], [0, 0, 1, 1], [], []>} : vector<8x256xbf16>, vector<256x256xbf16>, vector<8x256xf32> -> vector<8x256xf32>
    %365 = vector.broadcast %356 : vector<1x256xf32> to vector<8x256xf32>
    %366 = arith.addf %364, %365 : vector<8x256xf32>
    %367 = arith.addf %221, %366 : vector<8x256xf32>
    %cst_112 = arith.constant dense<0.000000e+00> : vector<8xf32>
    %368 = vector.multi_reduction <add>, %367, %cst_112 [1] : vector<8x256xf32> to vector<8xf32>
    %369 = vector.shape_cast %368 : vector<8xf32> to vector<8x1xf32>
    %cst_113 = arith.constant 0.00520833349 : f32
    %370 = vector.broadcast %cst_113 : f32 to vector<8x1xf32>
    %371 = arith.mulf %369, %370 : vector<8x1xf32>
    %372 = arith.mulf %367, %367 : vector<8x256xf32>
    %cst_114 = arith.constant dense<0.000000e+00> : vector<8xf32>
    %373 = vector.multi_reduction <add>, %372, %cst_114 [1] : vector<8x256xf32> to vector<8xf32>
    %374 = vector.shape_cast %373 : vector<8xf32> to vector<8x1xf32>
    %cst_115 = arith.constant 0.00520833349 : f32
    %375 = vector.broadcast %cst_115 : f32 to vector<8x1xf32>
    %376 = arith.mulf %374, %375 : vector<8x1xf32>
    %377 = arith.mulf %371, %371 : vector<8x1xf32>
    %378 = arith.subf %376, %377 : vector<8x1xf32>
    %379 = vector.broadcast %371 : vector<8x1xf32> to vector<8x256xf32>
    %380 = arith.subf %367, %379 : vector<8x256xf32>
    %cst_116 = arith.constant 9.99999974E-6 : f32
    %381 = vector.broadcast %cst_116 : f32 to vector<8x1xf32>
    %382 = arith.addf %378, %381 : vector<8x1xf32>
    %383 = math.rsqrt %382 : vector<8x1xf32>
    %384 = vector.broadcast %383 : vector<8x1xf32> to vector<8x256xf32>
    %385 = arith.mulf %380, %384 : vector<8x256xf32>
    %386 = vector.broadcast %357 : vector<1x256xf32> to vector<8x256xf32>
    %387 = arith.mulf %385, %386 : vector<8x256xf32>
    %388 = vector.broadcast %358 : vector<1x256xf32> to vector<8x256xf32>
    %389 = arith.addf %387, %388 : vector<8x256xf32>
    %390 = arith.truncf %389 : vector<8x256xf32> to vector<8x256xbf16>
    %cst_117 = arith.constant dense<0.000000e+00> : vector<8x256xf32>
    %391 = tpu.matmul %390, %217, %cst_117 {dimension_numbers = #tpu.dot_dimension_numbers<[1], [0], [0], [1], [0, 0, 1, 1], [], []>} : vector<8x256xbf16>, vector<256x256xbf16>, vector<8x256xf32> -> vector<8x256xf32>
    %392 = vector.broadcast %359 : vector<1x256xf32> to vector<8x256xf32>
    %393 = arith.addf %391, %392 : vector<8x256xf32>
    %cst_118 = arith.constant 0.000000e+00 : f32
    %394 = vector.broadcast %cst_118 : f32 to vector<8x256xf32>
    %395 = arith.maximumf %393, %394 : vector<8x256xf32>
    %396 = arith.truncf %395 : vector<8x256xf32> to vector<8x256xbf16>
    %cst_119 = arith.constant dense<0.000000e+00> : vector<8x128xf32>
    %397 = tpu.matmul %396, %218, %cst_119 {dimension_numbers = #tpu.dot_dimension_numbers<[1], [0], [0], [1], [0, 0, 1, 1], [], []>} : vector<8x256xbf16>, vector<256x128xbf16>, vector<8x128xf32> -> vector<8x128xf32>
    %398 = vector.broadcast %360 : vector<1x128xf32> to vector<8x128xf32>
    %399 = arith.addf %397, %398 : vector<8x128xf32>
    %400 = vector.shape_cast %212 : vector<1x8x128xf32> to vector<8x128xf32>
    %401 = arith.addf %400, %399 : vector<8x128xf32>
    %cst_120 = arith.constant dense<0.000000e+00> : vector<8xf32>
    %402 = vector.multi_reduction <add>, %401, %cst_120 [1] : vector<8x128xf32> to vector<8xf32>
    %403 = vector.shape_cast %402 : vector<8xf32> to vector<8x1xf32>
    %cst_121 = arith.constant 7.812500e-03 : f32
    %404 = vector.broadcast %cst_121 : f32 to vector<8x1xf32>
    %405 = arith.mulf %403, %404 : vector<8x1xf32>
    %406 = arith.mulf %401, %401 : vector<8x128xf32>
    %cst_122 = arith.constant dense<0.000000e+00> : vector<8xf32>
    %407 = vector.multi_reduction <add>, %406, %cst_122 [1] : vector<8x128xf32> to vector<8xf32>
    %408 = vector.shape_cast %407 : vector<8xf32> to vector<8x1xf32>
    %cst_123 = arith.constant 7.812500e-03 : f32
    %409 = vector.broadcast %cst_123 : f32 to vector<8x1xf32>
    %410 = arith.mulf %408, %409 : vector<8x1xf32>
    %411 = arith.mulf %405, %405 : vector<8x1xf32>
    %412 = arith.subf %410, %411 : vector<8x1xf32>
    %413 = vector.broadcast %405 : vector<8x1xf32> to vector<8x128xf32>
    %414 = arith.subf %401, %413 : vector<8x128xf32>
    %cst_124 = arith.constant 9.99999974E-6 : f32
    %415 = vector.broadcast %cst_124 : f32 to vector<8x1xf32>
    %416 = arith.addf %412, %415 : vector<8x1xf32>
    %417 = math.rsqrt %416 : vector<8x1xf32>
    %418 = vector.broadcast %417 : vector<8x1xf32> to vector<8x128xf32>
    %419 = arith.mulf %414, %418 : vector<8x128xf32>
    %420 = vector.broadcast %361 : vector<1x128xf32> to vector<8x128xf32>
    %421 = arith.mulf %419, %420 : vector<8x128xf32>
    %422 = vector.broadcast %362 : vector<1x128xf32> to vector<8x128xf32>
    %423 = arith.addf %421, %422 : vector<8x128xf32>
    %424 = vector.shape_cast %423 : vector<8x128xf32> to vector<1x8x128xf32>
    %c0_125 = arith.constant 0 : index
    %c0_126 = arith.constant 0 : index
    %c0_127 = arith.constant 0 : index
    %425 = vector.load %arg16[%c0_125, %c0_126, %c0_127] : memref<1x8x128xf32, #tpu.memory_space<vmem>>, vector<1x8x128xf32>
    tpu.vector_store %arg16[%c0_125, %c0_126, %c0_127], %424 {strides = array<i32>} : memref<1x8x128xf32, #tpu.memory_space<vmem>>, vector<1x8x128xf32>,
    return
  }
  func.func @transform_0(%arg0: i32) -> (i32, i32, i32) {
    %c0_i32 = arith.constant 0 : i32
    %c0_i32_0 = arith.constant 0 : i32
    %c0_i32_1 = arith.constant 0 : i32
    return %arg0, %c0_i32, %c0_i32_0 : i32, i32, i32
  }
  func.func @transform_1(%arg0: i32) -> (i32, i32, i32) {
    %c0_i32 = arith.constant 0 : i32
    %c0_i32_0 = arith.constant 0 : i32
    %c0_i32_1 = arith.constant 0 : i32
    return %arg0, %c0_i32, %c0_i32_0 : i32, i32, i32
  }
  func.func @transform_2(%arg0: i32) -> (i32, i32, i32) {
    %c0_i32 = arith.constant 0 : i32
    %c0_i32_0 = arith.constant 0 : i32
    %c0_i32_1 = arith.constant 0 : i32
    return %arg0, %c0_i32, %c0_i32_0 : i32, i32, i32
  }
  func.func @transform_3(%arg0: i32) -> (i32, i32) {
    %c0_i32 = arith.constant 0 : i32
    %c0_i32_0 = arith.constant 0 : i32
    %c0_i32_1 = arith.constant 0 : i32
    return %c0_i32, %c0_i32_0 : i32, i32
  }
  func.func @transform_4(%arg0: i32) -> (i32, i32) {
    %c0_i32 = arith.constant 0 : i32
    %c0_i32_0 = arith.constant 0 : i32
    %c0_i32_1 = arith.constant 0 : i32
    return %c0_i32, %c0_i32_0 : i32, i32
  }
  func.func @transform_5(%arg0: i32) -> (i32, i32) {
    %c0_i32 = arith.constant 0 : i32
    %c0_i32_0 = arith.constant 0 : i32
    %c0_i32_1 = arith.constant 0 : i32
    return %c0_i32, %c0_i32_0 : i32, i32
  }
  func.func @transform_6(%arg0: i32) -> (i32, i32) {
    %c0_i32 = arith.constant 0 : i32
    %c0_i32_0 = arith.constant 0 : i32
    %c0_i32_1 = arith.constant 0 : i32
    return %c0_i32, %c0_i32_0 : i32, i32
  }
  func.func @transform_7(%arg0: i32) -> (i32, i32) {
    %c0_i32 = arith.constant 0 : i32
    %c0_i32_0 = arith.constant 0 : i32
    %c0_i32_1 = arith.constant 0 : i32
    return %c0_i32, %c0_i32_0 : i32, i32
  }
  func.func @transform_8(%arg0: i32) -> (i32, i32) {
    %c0_i32 = arith.constant 0 : i32
    %c0_i32_0 = arith.constant 0 : i32
    %c0_i32_1 = arith.constant 0 : i32
    return %c0_i32, %c0_i32_0 : i32, i32
  }
  func.func @transform_9(%arg0: i32) -> (i32, i32) {
    %c0_i32 = arith.constant 0 : i32
    %c0_i32_0 = arith.constant 0 : i32
    %c0_i32_1 = arith.constant 0 : i32
    return %c0_i32, %c0_i32_0 : i32, i32
  }
  func.func @transform_10(%arg0: i32) -> (i32, i32) {
    %c0_i32 = arith.constant 0 : i32
    %c0_i32_0 = arith.constant 0 : i32
    %c0_i32_1 = arith.constant 0 : i32
    return %c0_i32, %c0_i32_0 : i32, i32
  }
  func.func @transform_11(%arg0: i32) -> (i32, i32) {
    %c0_i32 = arith.constant 0 : i32
    %c0_i32_0 = arith.constant 0 : i32
    %c0_i32_1 = arith.constant 0 : i32
    return %c0_i32, %c0_i32_0 : i32, i32
  }
  func.func @transform_12(%arg0: i32) -> (i32, i32) {
    %c0_i32 = arith.constant 0 : i32
    %c0_i32_0 = arith.constant 0 : i32
    %c0_i32_1 = arith.constant 0 : i32
    return %c0_i32, %c0_i32_0 : i32, i32
  }
  func.func @transform_13(%arg0: i32) -> (i32, i32) {
    %c0_i32 = arith.constant 0 : i32
    %c0_i32_0 = arith.constant 0 : i32
    %c0_i32_1 = arith.constant 0 : i32
    return %c0_i32, %c0_i32_0 : i32, i32
  }
  func.func @transform_14(%arg0: i32) -> (i32, i32) {
    %c0_i32 = arith.constant 0 : i32
    %c0_i32_0 = arith.constant 0 : i32
    %c0_i32_1 = arith.constant 0 : i32
    return %c0_i32, %c0_i32_0 : i32, i32
  }
  func.func @transform_15(%arg0: i32) -> (i32, i32, i32) {
    %c0_i32 = arith.constant 0 : i32
    %c0_i32_0 = arith.constant 0 : i32
    %c0_i32_1 = arith.constant 0 : i32
    return %arg0, %c0_i32, %c0_i32_0 : i32, i32, i32
  }
}

</mosaic_0001>

<bundles_post_ra>
// kernel: contextual_encoder_pallas.1
= control target key start
LH: loop header
LB: loop body
LE: loop exit
PB: predicated region body
PF: predicated region fallthrough
CT: control target
= control target key end

     0   :  { %s9125_s0 = inlined_call_operand.vmem [shape: f32[2,8,128], index: 0, kind: input, shape index: {}]   ;;  %s9126_s1 = inlined_call_operand.vmem [shape: f32[2,8,128], index: 1, kind: input, shape index: {}]   ;;  %s9127_s2 = inlined_call_operand.vmem [shape: f32[2,8,128], index: 2, kind: input, shape index: {}]   ;;  %s9128_s3 = inlined_call_operand.vmem [shape: bf16[256,768], index: 3, kind: input, shape index: {}]   ;;  %s9129_s4 = inlined_call_operand.vmem [shape: f32[1,768], index: 4, kind: input, shape index: {}]   ;;  %s9130_s5 = inlined_call_operand.vmem [shape: bf16[256,256], index: 5, kind: input, shape index: {}]   ;;  %s9131_s6 = inlined_call_operand.vmem [shape: bf16[256,256], index: 6, kind: input, shape index: {}]   ;;  %s9132_s7 = inlined_call_operand.vmem [shape: bf16[256,128], index: 7, kind: input, shape index: {}]   ;;  %s9133_s8 = inlined_call_operand.vmem [shape: f32[8,256], index: 8, kind: input, shape index: {}]   ;;  %s9134_s9 = inlined_call_operand.vmem [shape: bf16[256,768], index: 9, kind: input, shape index: {}]   ;;  %s9135_s10 = inlined_call_operand.vmem [shape: f32[1,768], index: 10, kind: input, shape index: {}]   ;;  %s9136_s11 = inlined_call_operand.vmem [shape: bf16[256,256], index: 11, kind: input, shape index: {}]   ;;  %s9137_s12 = inlined_call_operand.vmem [shape: bf16[256,256], index: 12, kind: input, shape index: {}]   ;;  %s9138_s13 = inlined_call_operand.vmem [shape: bf16[256,128], index: 13, kind: input, shape index: {}]   ;;  %s9139_s14 = inlined_call_operand.vmem [shape: f32[8,256], index: 14, kind: input, shape index: {}]   ;;  %s9140_s15 = inlined_call_operand.hbm [shape: f32[2,8,128], index: 15, kind: output, shape index: {}]  }
   0x1   :  { %9155 = sst [smem:[#allocation12_spill]] %s9125_s0 }
   0x2   :  { %9156 = sst [smem:[#allocation13_spill]] %s9126_s1 }
   0x3   :  { %20 = vsyncpa [#allocation3], 0 }
   0x4   :  { %22 = vsyncpa [#allocation3 + $0x1], 0  ;;  %s6638_s18 = smov 0   ;;  %s6640_s19 = smov 0  }
   0x5   :  { %s6642_s20 = smov 0   ;;  %s6644_s21 = smov 0  }
   0x6 LB: > { %9157 = sst [smem:[#allocation5_spill]] %s6541_s18  ;;  %s6659_s22 = sadd.s32 4294967295, %s6553_s21   ;;  %s6553_s21 = sphi %s6644_s21, %s9175_s21   ;;  %s6549_s20 = sphi %s6642_s20, %s9177_s20   ;;  %s6545_s19 = sphi %s6640_s19, %s9179_s19   ;;  %s6541_s18 = sphi %s6638_s18, %s9178_s18  }
   0x7   : > { %9158 = sst [smem:[#allocation6_spill]] %s6549_s20  ;;  %s4539_s23 = sadd.s32 4294967294, %s6553_s21  }
   0x8   : > { %9159 = sst [smem:[#allocation7_spill]] %s6553_s21  ;;  %s6663_s24 = sadd.s32 1, %s6553_s21  }
   0x9   : > { %9160 = sst [smem:[#allocation8_spill]] %s6663_s24  ;;  %s365_s25 = sadd.s32 1, %s6549_s20 }
   0xa   : > { %s362_s26 = ssub.s32 %s6553_s21, %s6663_s24  ;;  %p375_p0 = scmp.ne.s32.totalorder %s6549_s20, %s6545_s19 }
   0xb   : > { %p363_p1 = scmp.eq.s32.totalorder %s362_s26, 0  ;;  %p376_p2 = scmp.eq.s32.totalorder %s6659_s22, 1 }
   0xc   : > { %p381_p3 = scmp.ne.s32.totalorder %s6545_s19, %s6541_s18  ;;  %p382_p4 = scmp.eq.s32.totalorder %s4539_s23, 1 }
   0xd   : > { %s6674_s27 = scalar_select %p363_p1, %s6549_s20, %s365_s25  }
   0xe   : > { %p6676_p5 = por %p376_p2, %p375_p0  ;;  %p6680_p6 = por %p382_p4, %p381_p3 }
   0xf   : > { %9161 = sst [smem:[#allocation9_spill]] %s6674_s27  ;;  %p4542_p7 = scmp.ge.s32.totalorder %s6553_s21, 1 }
  0x10   : > { %s9162_s28 = scalar_select %p6676_p5, 1, 0 }
  0x11   : > { %s9164_s29 = scalar_select %p6680_p6, 1, 0 }
  0x12   : > { %9163 = sst [smem:[#allocation10_spill]] %s9162_s28  ;;  %p457_p8 = scmp.lt.s32.totalorder %s6553_s21, 3 }
  0x13   : > { %9165 = sst [smem:[#allocation11_spill]] %s9164_s29 }
  0x14   : > { %p458_p9 = pnand %p4542_p7, %p457_p8 }
  0x15   : > { %p512_p10 = scmp.lt.s32.totalorder (!%p458_p9), %s6659_s22, 1  ;;  %s9166_s0 = sld [smem:[#allocation12_spill]] (!%p458_p9) }
  0x16   : > { %461 = sbr.rel (%p458_p9) target bundleno = 3509 (0xdb5), region = 80  ;;  %s9167_s1 = sld [smem:[#allocation13_spill]] (!%p458_p9) }
  0x17   : > { %s9149_s21 = smov (!%p458_p9), 64   ;;  %s9151_s23 = smov (!%p458_p9), 32  }
  0x18   : > { %s9153_s27 = smov (!%p458_p9), 96   ;;  %s9169_s25 = smov (!%p458_p9), 96  }
  0x19   : > { %s9170_s20 = smov (!%p458_p9), 32   ;;  %s509_s18 = sand.u32 (!%p458_p9), 1, %s6545_s19  }
  0x1a   : > { %s6511_s29 = scalar_lea.hbm (!%p458_p9), %s9140_s15, 16 }
  0x1b   : > { %v4717_v0 = vld [vmem:[%s9128_s3 + $0x150] sm:$0xf]  ;;  %v6036_v1 = vld [vmem:[%s9128_s3 + $0x164] sm:$0xf0]  ;;  %v6033_v5 = vld [vmem:[%s9128_s3 + $0x154] sm:$0xf] }
  0x1c   : > { %v4909_v2 = vld [vmem:[%s9128_s3 + $0x2d0] sm:$0xf]  ;;  %v4718_v3 = vor.u32 %v6036_v1, %v4717_v0  ;;  %v6084_v4 = vld [vmem:[%s9128_s3 + $0x2e4] sm:$0xf0]  ;;  %v4719_v6 = vld [vmem:[%s9128_s3 + $0x168] sm:$0xf0] }
  0x1d   : > { %v4910_v7 = vor.u32 %v6084_v4, %v4909_v2  ;;  %v4722_v8 = vor.u32 %v6033_v5, %v4719_v6  ;;  %v6081_v9 = vld [vmem:[%s9128_s3 + $0x2d4] sm:$0xf]  ;;  %v4911_v10 = vld [vmem:[%s9128_s3 + $0x2e8] sm:$0xf0]  ;;  %v4693_v11 = vld [vmem:[%s9128_s3 + $0x120] sm:$0xf] }
  0x1e   : > { %1217 = vmatpush.bf16.msra.mxu0 %v4718_v3  ;;  %v4914_v12 = vor.u32 %v6081_v9, %v4911_v10  ;;  %v6030_v13 = vld [vmem:[%s9128_s3 + $0x134] sm:$0xf0]  ;;  %v4885_v14 = vld [vmem:[%s9128_s3 + $0x2a0] sm:$0xf]  ;;  %v6027_v18 = vld [vmem:[%s9128_s3 + $0x124] sm:$0xf] }
  0x1f   : > { %v6078_v15 = vld [vmem:[%s9128_s3 + $0x2b4] sm:$0xf0]  ;;  %1230 = vmatpush.bf16.msra.mxu1 %v4910_v7  ;;  %1243 = vmatpush.bf16.msra.mxu2 %v4722_v8  ;;  %v4694_v16 = vor.u32 %v6030_v13, %v4693_v11  ;;  %v4695_v19 = vld [vmem:[%s9128_s3 + $0x138] sm:$0xf0]  ;;  %v6075_v20 = vld [vmem:[%s9128_s3 + $0x2a4] sm:$0xf] }
  0x20   : > { %v4886_v17 = vor.u32 %v6078_v15, %v4885_v14  ;;  %1256 = vmatpush.bf16.msra.mxu3 %v4914_v12  ;;  %v4698_v21 = vor.u32 %v6027_v18, %v4695_v19  ;;  %v4887_v22 = vld [vmem:[%s9128_s3 + $0x2b8] sm:$0xf0]  ;;  %v4669_v23 = vld [vmem:[%s9128_s3 + $0xf0] sm:$0xf]  ;;  %v6024_v24 = vld [vmem:[%s9128_s3 + $0x104] sm:$0xf0] }
  0x21   : > { %v4890_v25 = vor.u32 %v6075_v20, %v4887_v22  ;;  %v4861_v26 = vld [vmem:[%s9128_s3 + $0x270] sm:$0xf]  ;;  %v6072_v27 = vld [vmem:[%s9128_s3 + $0x284] sm:$0xf0]  ;;  %v6021_v28 = vld [vmem:[%s9128_s3 + $0xf4] sm:$0xf]  ;;  %v4670_v29 = vor.u32 %v6024_v24, %v4669_v23 }
  0x22   : > { %1218 = vmatpush.bf16.msra.mxu0 %v4694_v16  ;;  %v4671_v30 = vld [vmem:[%s9128_s3 + $0x108] sm:$0xf0]  ;;  %v6069_v31 = vld [vmem:[%s9128_s3 + $0x274] sm:$0xf]  ;;  %v4862_v33 = vor.u32 %v6072_v27, %v4861_v26  ;;  %v4645_v35 = vld [vmem:[%s9128_s3 + $0xc0] sm:$0xf] }
  0x23   : > { %v4863_v32 = vld [vmem:[%s9128_s3 + $0x288] sm:$0xf0]  ;;  %1231 = vmatpush.bf16.msra.mxu1 %v4886_v17  ;;  %1244 = vmatpush.bf16.msra.mxu2 %v4698_v21  ;;  %v4674_v34 = vor.u32 %v6021_v28, %v4671_v30  ;;  %v6018_v36 = vld [vmem:[%s9128_s3 + $0xd4] sm:$0xf0]  ;;  %v4837_v37 = vld [vmem:[%s9128_s3 + $0x240] sm:$0xf] }
  0x24   : > { %1257 = vmatpush.bf16.msra.mxu3 %v4890_v25  ;;  %v4866_v38 = vor.u32 %v6069_v31, %v4863_v32  ;;  %v6066_v39 = vld [vmem:[%s9128_s3 + $0x254] sm:$0xf0]  ;;  %v6015_v40 = vld [vmem:[%s9128_s3 + $0xc4] sm:$0xf]  ;;  %v4647_v41 = vld [vmem:[%s9128_s3 + $0xd8] sm:$0xf0]  ;;  %v4646_v44 = vor.u32 %v6018_v36, %v4645_v35 }
  0x25   : > { %v6063_v42 = vld [vmem:[%s9128_s3 + $0x244] sm:$0xf]  ;;  %v4839_v43 = vld [vmem:[%s9128_s3 + $0x258] sm:$0xf0]  ;;  %v4838_v45 = vor.u32 %v6066_v39, %v4837_v37  ;;  %v4650_v46 = vor.u32 %v6015_v40, %v4647_v41  ;;  %v4621_v47 = vld [vmem:[%s9128_s3 + $0x90] sm:$0xf] }
  0x26   : > { %1219 = vmatpush.bf16.msra.mxu0 %v4670_v29  ;;  %v6012_v48 = vld [vmem:[%s9128_s3 + $0xa4] sm:$0xf0]  ;;  %v4813_v49 = vld [vmem:[%s9128_s3 + $0x210] sm:$0xf]  ;;  %v4842_v50 = vor.u32 %v6063_v42, %v4839_v43  ;;  %v6009_v52 = vld [vmem:[%s9128_s3 + $0x94] sm:$0xf] }
  0x27   : > { %1232 = vmatpush.bf16.msra.mxu1 %v4862_v33  ;;  %1245 = vmatpush.bf16.msra.mxu2 %v4674_v34  ;;  %v6060_v51 = vld [vmem:[%s9128_s3 + $0x224] sm:$0xf0]  ;;  %v4623_v53 = vld [vmem:[%s9128_s3 + $0xa8] sm:$0xf0]  ;;  %v6057_v54 = vld [vmem:[%s9128_s3 + $0x214] sm:$0xf]  ;;  %v4622_v56 = vor.u32 %v6012_v48, %v4621_v47 }
  0x28   : > { %1258 = vmatpush.bf16.msra.mxu3 %v4866_v38  ;;  %v4815_v55 = vld [vmem:[%s9128_s3 + $0x228] sm:$0xf0]  ;;  %v4814_v57 = vor.u32 %v6060_v51, %v4813_v49  ;;  %v4626_v58 = vor.u32 %v6009_v52, %v4623_v53  ;;  %v4597_v59 = vld [vmem:[%s9128_s3 + $0x60] sm:$0xf]  ;;  %v6006_v60 = vld [vmem:[%s9128_s3 + $0x74] sm:$0xf0] }
  0x29   : > { %v4789_v61 = vld [vmem:[%s9128_s3 + $0x1e0] sm:$0xf]  ;;  %v4818_v62 = vor.u32 %v6057_v54, %v4815_v55  ;;  %v6054_v63 = vld [vmem:[%s9128_s3 + $0x1f4] sm:$0xf0]  ;;  %v6003_v0 = vld [vmem:[%s9128_s3 + $0x64] sm:$0xf]  ;;  %v4598_v4 = vor.u32 %v6006_v60, %v4597_v59 }
  0x2a   : > { %1220 = vmatpush.bf16.msra.mxu0 %v4646_v44  ;;  %v4599_v1 = vld [vmem:[%s9128_s3 + $0x78] sm:$0xf0]  ;;  %v6051_v2 = vld [vmem:[%s9128_s3 + $0x1e4] sm:$0xf]  ;;  %v4790_v5 = vor.u32 %v6054_v63, %v4789_v61  ;;  %v4573_v7 = vld [vmem:[%s9128_s3 + $0x30] sm:$0xf] }
  0x2b   : > { %1233 = vmatpush.bf16.msra.mxu1 %v4838_v45  ;;  %1246 = vmatpush.bf16.msra.mxu2 %v4650_v46  ;;  %v4791_v3 = vld [vmem:[%s9128_s3 + $0x1f8] sm:$0xf0]  ;;  %v4602_v6 = vor.u32 %v6003_v0, %v4599_v1  ;;  %v6000_v8 = vld [vmem:[%s9128_s3 + $0x44] sm:$0xf0]  ;;  %v4765_v9 = vld [vmem:[%s9128_s3 + $0x1b0] sm:$0xf] }
  0x2c   : > { %1259 = vmatpush.bf16.msra.mxu3 %v4842_v50  ;;  %v4794_v10 = vor.u32 %v6051_v2, %v4791_v3  ;;  %v6048_v11 = vld [vmem:[%s9128_s3 + $0x1c4] sm:$0xf0]  ;;  %v5997_v12 = vld [vmem:[%s9128_s3 + $0x34] sm:$0xf]  ;;  %v4575_v13 = vld [vmem:[%s9128_s3 + $0x48] sm:$0xf0]  ;;  %v4574_v16 = vor.u32 %v6000_v8, %v4573_v7 }
  0x2d   : > { %v6045_v14 = vld [vmem:[%s9128_s3 + $0x1b4] sm:$0xf]  ;;  %v4767_v15 = vld [vmem:[%s9128_s3 + $0x1c8] sm:$0xf0]  ;;  %v4549_v17 = vld [vmem:[%s9128_s3] sm:$0xf]  ;;  %v4766_v20 = vor.u32 %v6048_v11, %v4765_v9  ;;  %v4578_v21 = vor.u32 %v5997_v12, %v4575_v13 }
  0x2e   : > { %1221 = vmatpush.bf16.msra.mxu0 %v4622_v56  ;;  %v5994_v18 = vld [vmem:[%s9128_s3 + $0x14] sm:$0xf0]  ;;  %v4741_v19 = vld [vmem:[%s9128_s3 + $0x180] sm:$0xf]  ;;  %v5991_v23 = vld [vmem:[%s9128_s3 + $0x4] sm:$0xf]  ;;  %v4770_v25 = vor.u32 %v6045_v14, %v4767_v15 }
  0x2f   : > { %1234 = vmatpush.bf16.msra.mxu1 %v4814_v57  ;;  %1247 = vmatpush.bf16.msra.mxu2 %v4626_v58  ;;  %v6042_v22 = vld [vmem:[%s9128_s3 + $0x194] sm:$0xf0]  ;;  %v4551_v24 = vld [vmem:[%s9128_s3 + $0x18] sm:$0xf0]  ;;  %v6039_v26 = vld [vmem:[%s9128_s3 + $0x184] sm:$0xf]  ;;  %v4550_v31 = vor.u32 %v5994_v18, %v4549_v17 }
  0x30   : > { %1260 = vmatpush.bf16.msra.mxu3 %v4818_v62  ;;  %v4743_v27 = vld [vmem:[%s9128_s3 + $0x198] sm:$0xf0]  ;;  %v4725_v28 = vld [vmem:[%s9128_s3 + $0x158] sm:$0xf]  ;;  %v6037_v29 = vld [vmem:[%s9128_s3 + $0x16c] sm:$0xf0]  ;;  %v4742_v35 = vor.u32 %v6042_v22, %v4741_v19  ;;  %v4554_v36 = vor.u32 %v5991_v23, %v4551_v24 }
  0x31   : > { %v4917_v30 = vld [vmem:[%s9128_s3 + $0x2d8] sm:$0xf]  ;;  %v6085_v32 = vld [vmem:[%s9128_s3 + $0x2ec] sm:$0xf0]  ;;  %v6034_v33 = vld [vmem:[%s9128_s3 + $0x15c] sm:$0xf]  ;;  %v4746_v39 = vor.u32 %v6039_v26, %v4743_v27  ;;  %v4726_v40 = vor.u32 %v6037_v29, %v4725_v28 }
  0x32   : > { %1222 = vmatpush.bf16.msra.mxu0 %v4598_v4  ;;  %v4727_v34 = vld [vmem:[%s9128_s3 + $0x170] sm:$0xf0]  ;;  %v6082_v37 = vld [vmem:[%s9128_s3 + $0x2dc] sm:$0xf]  ;;  %s513_s16 = scalar_select %p512_p10, %s6659_s22, 1  ;;  %v4918_v43 = vor.u32 %v6085_v32, %v4917_v30  ;;  %vm1376_vm0 = vcmask 261120  }
  0x33   : > { %1235 = vmatpush.bf16.msra.mxu1 %v4790_v5  ;;  %1248 = vmatpush.bf16.msra.mxu2 %v4602_v6  ;;  %v4919_v38 = vld [vmem:[%s9128_s3 + $0x2f0] sm:$0xf0]  ;;  %v4701_v41 = vld [vmem:[%s9128_s3 + $0x128] sm:$0xf]  ;;  %v6031_v42 = vld [vmem:[%s9128_s3 + $0x13c] sm:$0xf0]  ;;  %v4730_v44 = vor.u32 %v6034_v33, %v4727_v34 }
  0x34   : > { %1261 = vmatpush.bf16.msra.mxu3 %v4794_v10  ;;  %v4893_v45 = vld [vmem:[%s9128_s3 + $0x2a8] sm:$0xf]  ;;  %v6079_v46 = vld [vmem:[%s9128_s3 + $0x2bc] sm:$0xf0]  ;;  %s6916_s26 = sshll.u32 %s513_s16, 3  ;;  %v4922_v47 = vor.u32 %v6082_v37, %v4919_v38  ;;  %v4702_v54 = vor.u32 %v6031_v42, %v4701_v41  ;;  %vm1396_vm1 = vcmask 64512  }
  0x35   : > { %v6028_v48 = vld [vmem:[%s9128_s3 + $0x12c] sm:$0xf]  ;;  %v4703_v49 = vld [vmem:[%s9128_s3 + $0x140] sm:$0xf0]  ;;  %s6931_s16 = scalar_lea.vmem %s9166_s0, %s6916_s26  ;;  %s6937_s28 = scalar_lea.vmem %s9167_s1, %s6916_s26  ;;  %v4894_v57 = vor.u32 %v6079_v46, %v4893_v45  ;;  %v4677_v59 = vld [vmem:[%s9128_s3 + $0xf8] sm:$0xf] }
  0x36   : > { %1223 = vmatpush.bf16.msra.mxu0 %v4574_v16  ;;  %v6076_v50 = vld [vmem:[%s9128_s3 + $0x2ac] sm:$0xf]  ;;  %v4895_v51 = vld [vmem:[%s9128_s3 + $0x2c0] sm:$0xf0]  ;;  %v4706_v58 = vor.u32 %v6028_v48, %v4703_v49  ;;  %v6025_v60 = vld [vmem:[%s9128_s3 + $0x10c] sm:$0xf0]  ;;  %s8220_s24 = scalar_lea.vmem %s9127_s2, %s6916_s26 }
  0x37   : > { %1236 = vmatpush.bf16.msra.mxu1 %v4766_v20  ;;  %1249 = vmatpush.bf16.msra.mxu2 %v4578_v21  ;;  %v525_v52 = vld [vmem:[%s6931_s16] sm:$0xff]  ;;  %v4869_v61 = vld [vmem:[%s9128_s3 + $0x278] sm:$0xf]  ;;  %v4898_v62 = vor.u32 %v6076_v50, %v4895_v51  ;;  %v6073_v63 = vld [vmem:[%s9128_s3 + $0x28c] sm:$0xf0]  ;;  %v4678_v4 = vor.u32 %v6025_v60, %v4677_v59  ;;  %s9168_s1 = smov 64  }
  0x38   : > { %1262 = vmatpush.bf16.msra.mxu3 %v4770_v25  ;;  %v526_v53 = vld [vmem:[%s6937_s28] sm:$0xff]  ;;  %v6944_v55 = vpack.c.bf16 %v525_v52, %v525_v52  ;;  %v6022_v0 = vld [vmem:[%s9128_s3 + $0xfc] sm:$0xf]  ;;  %v4679_v1 = vld [vmem:[%s9128_s3 + $0x110] sm:$0xf0]  ;;  %v4870_v5 = vor.u32 %v6073_v63, %v4869_v61  ;;  %vm1412_vm2 = vcmask 1043456  }
  0x39   : > { %v6946_v56 = vpack.c.bf16 %v526_v53, %v526_v53  ;;  %v6070_v2 = vld [vmem:[%s9128_s3 + $0x27c] sm:$0xf]  ;;  %v4871_v3 = vld [vmem:[%s9128_s3 + $0x290] sm:$0xf0]  ;;  %v4682_v6 = vor.u32 %v6022_v0, %v4679_v1  ;;  %v4653_v7 = vld [vmem:[%s9128_s3 + $0xc8] sm:$0xf] }
  0x3a   : > { %1224 = vmatpush.bf16.msra.mxu0 %v4550_v31  ;;  %v6019_v8 = vld [vmem:[%s9128_s3 + $0xdc] sm:$0xf0]  ;;  %v4845_v9 = vld [vmem:[%s9128_s3 + $0x248] sm:$0xf]  ;;  %v4874_v10 = vor.u32 %v6070_v2, %v4871_v3  ;;  %v6016_v12 = vld [vmem:[%s9128_s3 + $0xcc] sm:$0xf] }
  0x3b   : > { %1237 = vmatpush.bf16.msra.mxu1 %v4742_v35  ;;  %1250 = vmatpush.bf16.msra.mxu2 %v4554_v36  ;;  %v6067_v11 = vld [vmem:[%s9128_s3 + $0x25c] sm:$0xf0]  ;;  %v4655_v13 = vld [vmem:[%s9128_s3 + $0xe0] sm:$0xf0]  ;;  %v6064_v14 = vld [vmem:[%s9128_s3 + $0x24c] sm:$0xf]  ;;  %v4654_v16 = vor.u32 %v6019_v8, %v4653_v7 }
  0x3c   : > { %1263 = vmatpush.bf16.msra.mxu3 %v4746_v39  ;;  %v4847_v15 = vld [vmem:[%s9128_s3 + $0x260] sm:$0xf0]  ;;  %v4846_v17 = vor.u32 %v6067_v11, %v4845_v9  ;;  %v4658_v18 = vor.u32 %v6016_v12, %v4655_v13  ;;  %v4629_v19 = vld [vmem:[%s9128_s3 + $0x98] sm:$0xf]  ;;  %v6013_v20 = vld [vmem:[%s9128_s3 + $0xac] sm:$0xf0] }
  0x3d   : > { %1225 = vmatmul.bf16.vlgmr.msra.gmra.mxu0 %v6944_v55  ;;  %v4821_v21 = vld [vmem:[%s9128_s3 + $0x218] sm:$0xf]  ;;  %v4850_v22 = vor.u32 %v6064_v14, %v4847_v15  ;;  %v6061_v23 = vld [vmem:[%s9128_s3 + $0x22c] sm:$0xf0]  ;;  %v6010_v24 = vld [vmem:[%s9128_s3 + $0x9c] sm:$0xf]  ;;  %v4630_v28 = vor.u32 %v6013_v20, %v4629_v19 }
  0x3e   : > { %1269 = vmatpush.bf16.msrb.mxu0 %v4726_v40  ;;  %1251 = vmatmul.bf16.vlgmr.msra.gmra.mxu2 %v6944_v55  ;;  %v4631_v25 = vld [vmem:[%s9128_s3 + $0xb0] sm:$0xf0]  ;;  %v6058_v26 = vld [vmem:[%s9128_s3 + $0x21c] sm:$0xf]  ;;  %v4822_v29 = vor.u32 %v6061_v23, %v4821_v21  ;;  %v4605_v31 = vld [vmem:[%s9128_s3 + $0x68] sm:$0xf] }
  0x3f   : > { %1282 = vmatpush.bf16.msrb.mxu1 %v4918_v43  ;;  %1295 = vmatpush.bf16.msrb.mxu2 %v4730_v44  ;;  %v4823_v27 = vld [vmem:[%s9128_s3 + $0x230] sm:$0xf0]  ;;  %v4634_v30 = vor.u32 %v6010_v24, %v4631_v25  ;;  %v6007_v32 = vld [vmem:[%s9128_s3 + $0x7c] sm:$0xf0]  ;;  %v4797_v33 = vld [vmem:[%s9128_s3 + $0x1e8] sm:$0xf] }
  0x40   : > { %1308 = vmatpush.bf16.msrb.mxu3 %v4922_v47  ;;  %1238 = vmatmul.bf16.vlgmr.msra.gmra.mxu1 %v6946_v56  ;;  %v4826_v34 = vor.u32 %v6058_v26, %v4823_v27  ;;  %v6055_v35 = vld [vmem:[%s9128_s3 + $0x1fc] sm:$0xf0]  ;;  %v6004_v36 = vld [vmem:[%s9128_s3 + $0x6c] sm:$0xf]  ;;  %v4607_v37 = vld [vmem:[%s9128_s3 + $0x80] sm:$0xf0]  ;;  %v4606_v40 = vor.u32 %v6007_v32, %v4605_v31 }
  0x41   : > { %1264 = vmatmul.bf16.vlgmr.msra.gmra.mxu3 %v6946_v56  ;;  %v6052_v38 = vld [vmem:[%s9128_s3 + $0x1ec] sm:$0xf]  ;;  %v4799_v39 = vld [vmem:[%s9128_s3 + $0x200] sm:$0xf0]  ;;  %v4798_v41 = vor.u32 %v6055_v35, %v4797_v33  ;;  %v4610_v42 = vor.u32 %v6004_v36, %v4607_v37  ;;  %v4581_v43 = vld [vmem:[%s9128_s3 + $0x38] sm:$0xf] }
  0x42   : > { %1270 = vmatpush.bf16.msrb.mxu0 %v4702_v54  ;;  %v6001_v44 = vld [vmem:[%s9128_s3 + $0x4c] sm:$0xf0]  ;;  %v4773_v45 = vld [vmem:[%s9128_s3 + $0x1b8] sm:$0xf]  ;;  %v4802_v46 = vor.u32 %v6052_v38, %v4799_v39  ;;  %v5998_v48 = vld [vmem:[%s9128_s3 + $0x3c] sm:$0xf] }
  0x43   : > { %1283 = vmatpush.bf16.msrb.mxu1 %v4894_v57  ;;  %1296 = vmatpush.bf16.msrb.mxu2 %v4706_v58  ;;  %v6049_v47 = vld [vmem:[%s9128_s3 + $0x1cc] sm:$0xf0]  ;;  %v4583_v49 = vld [vmem:[%s9128_s3 + $0x50] sm:$0xf0]  ;;  %v6046_v50 = vld [vmem:[%s9128_s3 + $0x1bc] sm:$0xf]  ;;  %v4582_v52 = vor.u32 %v6001_v44, %v4581_v43 }
  0x44   : > { %1309 = vmatpush.bf16.msrb.mxu3 %v4898_v62  ;;  %v4775_v51 = vld [vmem:[%s9128_s3 + $0x1d0] sm:$0xf0]  ;;  %v4557_v53 = vld [vmem:[%s9128_s3 + $0x8] sm:$0xf]  ;;  %v4774_v54 = vor.u32 %v6049_v47, %v4773_v45  ;;  %v4586_v57 = vor.u32 %v5998_v48, %v4583_v49  ;;  %v5995_v58 = vld [vmem:[%s9128_s3 + $0x1c] sm:$0xf0] }
  0x45   : > { %v4749_v59 = vld [vmem:[%s9128_s3 + $0x188] sm:$0xf]  ;;  %v6043_v60 = vld [vmem:[%s9128_s3 + $0x19c] sm:$0xf0]  ;;  %v4778_v61 = vor.u32 %v6046_v50, %v4775_v51  ;;  %v5992_v62 = vld [vmem:[%s9128_s3 + $0xc] sm:$0xf] }
  0x46   : > { %1271 = vmatpush.bf16.msrb.mxu0 %v4678_v4  ;;  %v4559_v63 = vld [vmem:[%s9128_s3 + $0x20] sm:$0xf0]  ;;  %v6040_v0 = vld [vmem:[%s9128_s3 + $0x18c] sm:$0xf]  ;;  %v4735_v3 = vld [vmem:[%s9128_s3 + $0x178] sm:$0xf0]  ;;  %v4558_v4 = vor.u32 %v5995_v58, %v4557_v53 }
  0x47   : > { %1284 = vmatpush.bf16.msrb.mxu1 %v4870_v5  ;;  %1297 = vmatpush.bf16.msrb.mxu2 %v4682_v6  ;;  %v4751_v1 = vld [vmem:[%s9128_s3 + $0x1a0] sm:$0xf0]  ;;  %v4750_v5 = vor.u32 %v6043_v60, %v4749_v59  ;;  %v4562_v6 = vor.u32 %v5992_v62, %v4559_v63  ;;  %v6029_v9 = vld [vmem:[%s9128_s3 + $0x134] sm:$0xf]  ;;  %v4687_v13 = vld [vmem:[%s9128_s3 + $0x118] sm:$0xf0] }
  0x48   : > { %1310 = vmatpush.bf16.msrb.mxu3 %v4874_v10  ;;  %v6035_v2 = vld [vmem:[%s9128_s3 + $0x164] sm:$0xf]  ;;  %v4754_v7 = vor.u32 %v6040_v0, %v4751_v1  ;;  %v4711_v10 = vld [vmem:[%s9128_s3 + $0x148] sm:$0xf0]  ;;  %v6017_v15 = vld [vmem:[%s9128_s3 + $0xd4] sm:$0xf] }
  0x49   : > { %v4738_v8 = vor.u32 %v6035_v2, %v4735_v3  ;;  %v4714_v11 = vor.u32 %v6029_v9, %v4711_v10  ;;  %v6023_v12 = vld [vmem:[%s9128_s3 + $0x104] sm:$0xf]  ;;  %v4639_v19 = vld [vmem:[%s9128_s3 + $0xb8] sm:$0xf0]  ;;  %v6005_v21 = vld [vmem:[%s9128_s3 + $0x74] sm:$0xf] }
  0x4a   : > { %1272 = vmatpush.bf16.msrb.mxu0 %v4654_v16  ;;  %v4690_v14 = vor.u32 %v6023_v12, %v4687_v13  ;;  %v4663_v16 = vld [vmem:[%s9128_s3 + $0xe8] sm:$0xf0]  ;;  %v5999_v24 = vld [vmem:[%s9128_s3 + $0x44] sm:$0xf]  ;;  %v4591_v25 = vld [vmem:[%s9128_s3 + $0x58] sm:$0xf0] }
  0x4b   : > { %1285 = vmatpush.bf16.msrb.mxu1 %v4846_v17  ;;  %1298 = vmatpush.bf16.msrb.mxu2 %v4658_v18  ;;  %v4666_v17 = vor.u32 %v6017_v15, %v4663_v16  ;;  %v6011_v18 = vld [vmem:[%s9128_s3 + $0xa4] sm:$0xf]  ;;  %v4594_v26 = vor.u32 %v5999_v24, %v4591_v25  ;;  %v5993_v27 = vld [vmem:[%s9128_s3 + $0x14] sm:$0xf]  ;;  %v6038_v58 = vld [vmem:[%s9128_s3 + $0x174] sm:$0xf0] }
  0x4c   : > { %1311 = vmatpush.bf16.msrb.mxu3 %v4850_v22  ;;  %v4642_v20 = vor.u32 %v6011_v18, %v4639_v19  ;;  %v4615_v22 = vld [vmem:[%s9128_s3 + $0x88] sm:$0xf0]  ;;  %v7152_v38 = vld [vmem:[%s9129_s4] sm:$0x3f]  ;;  %v4927_v0 = vld [vmem:[%s9128_s3 + $0x2f8] sm:$0xf0] }
  0x4d   : > { %v4618_v23 = vor.u32 %v6005_v21, %v4615_v22  ;;  %v727_v39 = vperm.slane %v7152_v38, 2  ;;  %v726_v43 = vperm.slane %v7152_v38, 1  ;;  %v728_v45 = vperm.slane %v7152_v38, 3  ;;  %v6083_v59 = vld [vmem:[%s9128_s3 + $0x2e4] sm:$0xf] }
  0x4e   : > { %1273 = vmatpush.bf16.msrb.mxu0 %v4630_v28  ;;  %v4567_v28 = vld [vmem:[%s9128_s3 + $0x28] sm:$0xf0]  ;;  %v4709_v1 = vld [vmem:[%s9128_s3 + $0x130] sm:$0xf]  ;;  %v6032_v2 = vld [vmem:[%s9128_s3 + $0x144] sm:$0xf0]  ;;  %v4930_v3 = vor.u32 %v6083_v59, %v4927_v0 }
  0x4f   : > { %1286 = vmatpush.bf16.msrb.mxu1 %v4822_v29  ;;  %1299 = vmatpush.bf16.msrb.mxu2 %v4634_v30  ;;  %v4570_v29 = vor.u32 %v5993_v27, %v4567_v28  ;;  %v6086_v9 = vld [vmem:[%s9128_s3 + $0x2f4] sm:$0xf0]  ;;  %v4685_v13 = vld [vmem:[%s9128_s3 + $0x100] sm:$0xf]  ;;  %v4901_v19 = vld [vmem:[%s9128_s3 + $0x2b0] sm:$0xf] }
  0x50   : > { %1312 = vmatpush.bf16.msrb.mxu3 %v4826_v34  ;;  %v6026_v18 = vld [vmem:[%s9128_s3 + $0x114] sm:$0xf0]  ;;  %v6071_v21 = vld [vmem:[%s9128_s3 + $0x284] sm:$0xf]  ;;  %v4879_v22 = vld [vmem:[%s9128_s3 + $0x298] sm:$0xf0] }
  0x51   : > { %v4877_v24 = vld [vmem:[%s9128_s3 + $0x280] sm:$0xf]  ;;  %v6074_v25 = vld [vmem:[%s9128_s3 + $0x294] sm:$0xf0]  ;;  %v4805_v59 = vld [vmem:[%s9128_s3 + $0x1f0] sm:$0xf] }
  0x52   : > { %1274 = vmatpush.bf16.msrb.mxu0 %v4606_v40  ;;  %v4589_v0 = vld [vmem:[%s9128_s3 + $0x40] sm:$0xf]  ;;  %vm1855_vm3 = vcmask 523264   ;;  %vm1857_vm4 = vcmask 785408  }
  0x53   : > { %1287 = vmatpush.bf16.msrb.mxu1 %v4798_v41  ;;  %1300 = vmatpush.bf16.msrb.mxu2 %v4610_v42  ;;  %v725_v42 = vperm.slane %v7152_v38, 0 }
  0x54   : > { %1313 = vmatpush.bf16.msrb.mxu3 %v4802_v46 }
  0x56   : > { %1275 = vmatpush.bf16.msrb.mxu0 %v4582_v52 }
  0x57   : > { %1288 = vmatpush.bf16.msrb.mxu1 %v4774_v54  ;;  %1301 = vmatpush.bf16.msrb.mxu2 %v4586_v57  ;;  %v4733_v57 = vld [vmem:[%s9128_s3 + $0x160] sm:$0xf] }
  0x58   : > { %1314 = vmatpush.bf16.msrb.mxu3 %v4778_v61  ;;  %v4734_v63 = vor.u32 %v6038_v58, %v4733_v57  ;;  %v4807_v57 = vld [vmem:[%s9128_s3 + $0x208] sm:$0xf0] }
  0x5a   : > { %1276 = vmatpush.bf16.msrb.mxu0 %v4558_v4  ;;  %v6077_v4 = vld [vmem:[%s9128_s3 + $0x2b4] sm:$0xf] }
  0x5b   : > { %1289 = vmatpush.bf16.msrb.mxu1 %v4750_v5  ;;  %1302 = vmatpush.bf16.msrb.mxu2 %v4562_v6  ;;  %v4903_v5 = vld [vmem:[%s9128_s3 + $0x2c8] sm:$0xf0]  ;;  %v4925_v6 = vld [vmem:[%s9128_s3 + $0x2e0] sm:$0xf] }
  0x5c   : > { %1315 = vmatpush.bf16.msrb.mxu3 %v4754_v7  ;;  %v4926_v12 = vor.u32 %v6086_v9, %v4925_v6  ;;  %v6041_v9 = vld [vmem:[%s9128_s3 + $0x194] sm:$0xf] }
  0x5d   : > { %1277 = vmatmul.bf16.vlgmr.msrb.gmra.mxu0 %v6944_v55 }
  0x5e   : > { %1290 = vmatmul.bf16.vlgmr.msrb.gmra.mxu1 %v6946_v56  ;;  %1303 = vmatmul.bf16.vlgmr.msrb.gmra.mxu2 %v6944_v55 }
  0x5f   : > { %1347 = vmatpush.bf16.msra.mxu2 %v4738_v8  ;;  %1316 = vmatmul.bf16.vlgmr.msrb.gmra.mxu3 %v6946_v56 }
  0x60   : > { %1321 = vmatpush.bf16.msra.mxu0 %v4734_v63  ;;  %1360 = vmatpush.bf16.msra.mxu3 %v4930_v3  ;;  %v4783_v3 = vld [vmem:[%s9128_s3 + $0x1d8] sm:$0xf0] }
  0x61   : > { %1334 = vmatpush.bf16.msra.mxu1 %v4926_v12 }
  0x63   : > { %1348 = vmatpush.bf16.msra.mxu2 %v4714_v11  ;;  %v4710_v11 = vor.u32 %v6032_v2, %v4709_v1  ;;  %v6002_v1 = vld [vmem:[%s9128_s3 + $0x54] sm:$0xf0]  ;;  %v6047_v2 = vld [vmem:[%s9128_s3 + $0x1c4] sm:$0xf] }
  0x64   : > { %v4786_v6 = vor.u32 %v6047_v2, %v4783_v3 }
  0x65   : > { %1322 = vmatpush.bf16.msra.mxu0 %v4710_v11 }
  0x67   : > { %1349 = vmatpush.bf16.msra.mxu2 %v4690_v14 }
  0x6b   : > { %1350 = vmatpush.bf16.msra.mxu2 %v4666_v17  ;;  %v4906_v17 = vor.u32 %v6077_v4, %v4903_v5  ;;  %v4590_v5 = vor.u32 %v6002_v1, %v4589_v0 }
  0x6d   : > { %1361 = vmatpush.bf16.msra.mxu3 %v4906_v17 }
  0x6f   : > { %1351 = vmatpush.bf16.msra.mxu2 %v4642_v20  ;;  %v6080_v20 = vld [vmem:[%s9128_s3 + $0x2c4] sm:$0xf0] }
  0x73   : > { %1352 = vmatpush.bf16.msra.mxu2 %v4618_v23  ;;  %v4902_v23 = vor.u32 %v6080_v20, %v4901_v19 }
  0x75   : > { %1335 = vmatpush.bf16.msra.mxu1 %v4902_v23 }
  0x77   : > { %1353 = vmatpush.bf16.msra.mxu2 %v4594_v26  ;;  %v4686_v26 = vor.u32 %v6026_v18, %v4685_v13  ;;  %v4781_v13 = vld [vmem:[%s9128_s3 + $0x1c0] sm:$0xf] }
  0x79   : > { %1323 = vmatpush.bf16.msra.mxu0 %v4686_v26 }
  0x7b   : > { %1354 = vmatpush.bf16.msra.mxu2 %v4570_v29  ;;  %v4882_v29 = vor.u32 %v6071_v21, %v4879_v22 }
  0x7d   : > { %1362 = vmatpush.bf16.msra.mxu3 %v4882_v29 }
  0x7e   : > { %1355 = vmatmul.bf16.vlgmr.msra.gmra.mxu2 %v6944_v55 }
  0xba   : > { %v1226_v30 = vpop.f32.mrf.mxu0 }
  0xbb   : > { %v1227_v47 = vadd.f32 %v1226_v30, %v725_v42  ;;  %v4661_v30 = vld [vmem:[%s9128_s3 + $0xd0] sm:$0xf]  ;;  %v4637_v42 = vld [vmem:[%s9128_s3 + $0xa0] sm:$0xf] }
  0xbd   : > { %v1239_v31 = vpop.f32.mrf.mxu1 }
  0xbe   : > { %v1240_v60 = vadd.f32 %v1239_v31, %v1227_v47  ;;  %v6020_v31 = vld [vmem:[%s9128_s3 + $0xe4] sm:$0xf0]  ;;  %v4829_v47 = vld [vmem:[%s9128_s3 + $0x220] sm:$0xf] }
  0xc1   : > { %v1252_v32 = vpop.f32.mrf.mxu2 }
  0xc2   : > { %v1228_v34 = vpop.f32.mrf.mxu0  ;;  %v1253_v48 = vadd.f32 %v1252_v32, %v726_v43  ;;  %v6065_v32 = vld [vmem:[%s9128_s3 + $0x254] sm:$0xf]  ;;  %v6014_v43 = vld [vmem:[%s9128_s3 + $0xb4] sm:$0xf0] }
  0xc3   : > { %v4878_v34 = vor.u32 %v6074_v25, %v4877_v24 }
  0xc4   : > { %v1265_v33 = vpop.f32.mrf.mxu3 }
  0xc5   : > { %v1241_v35 = vpop.f32.mrf.mxu1  ;;  %v1266_v61 = vadd.f32 %v1265_v33, %v1253_v48  ;;  %v4855_v33 = vld [vmem:[%s9128_s3 + $0x268] sm:$0xf0]  ;;  %1336 = vmatpush.bf16.msra.mxu1 %v4878_v34  ;;  %v6062_v48 = vld [vmem:[%s9128_s3 + $0x234] sm:$0xf0] }
  0xc6   : > { %v4853_v35 = vld [vmem:[%s9128_s3 + $0x250] sm:$0xf]  ;;  %v4830_v58 = vor.u32 %v6062_v48, %v4829_v47  ;;  %v729_v47 = vperm.slane %v7152_v38, 4 }
  0xc7   : > { %v7192_v14 = vpack.c.bf16 %v1266_v61, %v1240_v60  ;;  %v6056_v60 = vld [vmem:[%s9128_s3 + $0x204] sm:$0xf0] }
  0xc8   : > { %v4806_v4 = vor.u32 %v6056_v60, %v4805_v59 }
  0xc9   : > { %v1254_v36 = vpop.f32.mrf.mxu2  ;;  %v1430_v28 = vunpack.c.l.b16 %v7192_v14 }
  0xca   : > { %v6068_v36 = vld [vmem:[%s9128_s3 + $0x264] sm:$0xf0] }
  0xcc   : > { %v1267_v37 = vpop.f32.mrf.mxu3 }
  0xcd   : > { %v4662_v37 = vor.u32 %v6020_v31, %v4661_v30 }
  0xcf   : > { %1324 = vmatpush.bf16.msra.mxu0 %v4662_v37 }
  0xda   : > { %v1278_v40 = vpop.f32.mrf.mxu0 }
  0xdb   : > { %v1291_v41 = vpop.f32.mrf.mxu1  ;;  %v1279_v44 = vadd.f32 %v1278_v40, %v727_v39  ;;  %v1431_v40 = vpack.c.b16 %v1430_v28, %v1430_v28 }
  0xdd   : > { %v1292_v49 = vadd.f32 %v1291_v41, %v1279_v44  ;;  %v4858_v41 = vor.u32 %v6065_v32, %v4855_v33  ;;  %v6059_v44 = vld [vmem:[%s9128_s3 + $0x224] sm:$0xf] }
  0xdf   : > { %1363 = vmatpush.bf16.msra.mxu3 %v4858_v41 }
  0xe1   : > { %v1304_v46 = vpop.f32.mrf.mxu2 }
  0xe2   : > { %v1305_v50 = vadd.f32 %v1304_v46, %v728_v45  ;;  %v1317_v51 = vpop.f32.mrf.mxu3  ;;  %v1280_v52 = vpop.f32.mrf.mxu0  ;;  %v4831_v45 = vld [vmem:[%s9128_s3 + $0x238] sm:$0xf0]  ;;  %v4854_v46 = vor.u32 %v6068_v36, %v4853_v35 }
  0xe3   : > { %v1293_v53 = vpop.f32.mrf.mxu1  ;;  %v4613_v52 = vld [vmem:[%s9128_s3 + $0x70] sm:$0xf] }
  0xe4   : > { %v1318_v54 = vadd.f32 %v1317_v51, %v1305_v50  ;;  %v1606_v50 = vunpack.c.h.b16 %v7192_v14  ;;  %v4834_v51 = vor.u32 %v6059_v44, %v4831_v45  ;;  %v6008_v53 = vld [vmem:[%s9128_s3 + $0x84] sm:$0xf0]  ;;  %1337 = vmatpush.bf16.msra.mxu1 %v4854_v46  ;;  %v730_v46 = vperm.slane %v7152_v38, 5 }
  0xe5   : > { %v4614_v61 = vor.u32 %v6008_v53, %v4613_v52 }
  0xe6   : > { %v1374_v62 = vpack.c.bf16 %v1318_v54, %v1292_v49  ;;  %v4638_v49 = vor.u32 %v6014_v43, %v4637_v42  ;;  %v6053_v54 = vld [vmem:[%s9128_s3 + $0x1f4] sm:$0xf]  ;;  %1364 = vmatpush.bf16.msra.mxu3 %v4834_v51 }
  0xe7   : > { %v4810_v63 = vor.u32 %v6053_v54, %v4807_v57 }
  0xe8   : > { %v1381_v7 = vsel %vm1376_vm0, %v1374_v62, 0  ;;  %v1435_v8 = vunpack.c.l.b16 %v1374_v62  ;;  %v1608_v27 = vunpack.c.h.b16 %v1374_v62  ;;  %1325 = vmatpush.bf16.msra.mxu0 %v4638_v49  ;;  %v7282_v62 = vpack.c.b16 %v1606_v50, %v1606_v50  ;;  %1338 = vmatpush.bf16.msra.mxu1 %v4830_v58 }
  0xe9   : > { %v1306_v10 = vpop.f32.mrf.mxu2  ;;  %1390 = vmatpush.bf16.xpose.msrb.mxu2 %v1381_v7  ;;  %v4565_v7 = vld [vmem:[%s9128_s3 + $0x10] sm:$0xf] }
  0xea   : > { %v1319_v15 = vpop.f32.mrf.mxu3  ;;  %v1436_v16 = vpack.c.b16 %v1435_v8, %v1435_v8  ;;  %v7239_v39 = vpack.c.b16 %v1608_v27, %v1608_v27  ;;  %1365 = vmatpush.bf16.msra.mxu3 %v4810_v63  ;;  %v5996_v8 = vld [vmem:[%s9128_s3 + $0x24] sm:$0xf0]  ;;  %v4759_v10 = vld [vmem:[%s9128_s3 + $0x1a8] sm:$0xf0] }
  0xeb   : > { %v4566_v11 = vor.u32 %v5996_v8, %v4565_v7  ;;  %v4762_v12 = vor.u32 %v6041_v9, %v4759_v10 }
  0xec   : > { %1496 = vrot.lane.b32.xlu2 %v1436_v16, %s9149_s21  ;;  %1552 = vrot.lane.b32.xlu1 %v1436_v16, %s9151_s23  ;;  %v1614_v21 = vsel %vm1376_vm0, %v7239_v39, 0  ;;  %s5988_s21 = sshll.u32 %s6659_s22, 3  ;;  %s4441_s22 = scalar_lea.sflag [#allocation3], %s509_s18 }
  0xed   : > { %1437 = vrot.lane.b32.xlu0 %v1436_v16, %s9153_s27  ;;  %1326 = vmatpush.bf16.msra.mxu0 %v4614_v61  ;;  %v4757_v16 = vld [vmem:[%s9128_s3 + $0x190] sm:$0xf] }
  0xee   : > { %1339 = vmatpush.bf16.msra.mxu1 %v4806_v4  ;;  %1366 = vmatpush.bf16.msra.mxu3 %v4786_v6 }
  0xf0   : > { %4931 = vmatmul.msk.bf16.vlgmr.msrb.gmra.mxu2 %vm1376_vm0, %v7192_v14  ;;  %v6050_v14 = vld [vmem:[%s9128_s3 + $0x1d4] sm:$0xf0] }
  0xf1   : > { %1327 = vmatpush.bf16.msra.mxu0 %v4590_v5  ;;  %v4782_v15 = vor.u32 %v6050_v14, %v4781_v13 }
  0xf2   : > { %1367 = vmatpush.bf16.msra.mxu3 %v4762_v12 }
  0xf3   : > { %1340 = vmatpush.bf16.msra.mxu1 %v4782_v15 }
  0xf4   : > { %1664 = vrot.lane.b32.xlu2 %v7239_v39, %s9153_s27  ;;  %1550 = vrot.lane.b32.xlu1 %v1431_v40, %s9151_s23 }
  0xf5   : > { %1432 = vrot.lane.b32.xlu0 %v1431_v40, %s9153_s27  ;;  %1328 = vmatpush.bf16.msra.mxu0 %v4566_v11 }
  0xf6   : > { %1368 = vmatmul.bf16.vlgmr.msra.gmra.mxu3 %v6946_v56 }
  0xf8   : > { %1329 = vmatmul.bf16.vlgmr.msra.gmra.mxu0 %v6944_v55  ;;  %v6044_v55 = vld [vmem:[%s9128_s3 + $0x1a4] sm:$0xf0] }
  0xf9   : > { %v4758_v17 = vor.u32 %v6044_v55, %v4757_v16 }
  0xfb   : > { %1341 = vmatpush.bf16.msra.mxu1 %v4758_v17 }
  0xfc   : > { %1776 = vrot.lane.b32.xlu2 %v7239_v39, %s9151_s23  ;;  %1662 = vrot.lane.b32.xlu1 %v7282_v62, %s9153_s27 }
  0xfd   : > { %1494 = vrot.lane.b32.xlu0 %v1431_v40, %s9168_s1 }
  0xfe   : > { %1342 = vmatmul.bf16.vlgmr.msra.gmra.mxu1 %v6946_v56 }
 0x101   : > { %v1356_v18 = vpop.f32.mrf.mxu2 }
 0x102   : > { %v1357_v48 = vadd.f32 %v1356_v18, %v730_v46 }
 0x104   : > { %1718 = vrot.lane.b32.xlu2 %v7282_v62, %s9168_s1  ;;  %1720 = vrot.lane.b32.xlu1 %v7239_v39, %s9168_s1 }
 0x105   : > { %1774 = vrot.lane.b32.xlu0 %v7282_v62, %s9151_s23 }
 0x109   : > { %v1358_v22 = vpop.f32.mrf.mxu2 }
 0x146   : > { %v1497_v19 = vpop.permute.xlu2 %1496 }
 0x147   : > { %v1502_v20 = vsel %vm1376_vm0, %v1497_v19, 0 }
 0x148   : > { %1511 = vmatpush.bf16.xpose.msrb.mxu0 %v1502_v20 }
 0x14e   : > { %v1665_v27 = vpop.permute.xlu2 %1664 }
 0x14f   : > { %v1670_v29 = vsel %vm1376_vm0, %v1665_v27, 0 }
 0x150   : > { %1623 = vmatpush.bf16.xpose.msra.mxu0 %v1614_v21 }
 0x156   : > { %v1777_v34 = vpop.permute.xlu2 %1776 }
 0x157   : > { %v1782_v37 = vsel %vm1376_vm0, %v1777_v34, 0 }
 0x15e   : > { %v1553_v23 = vpop.permute.xlu1 %1552  ;;  %v1719_v43 = vpop.permute.xlu2 %1718 }
 0x15f   : > { %v1558_v24 = vsel %vm1376_vm0, %v1553_v23, 0  ;;  %v1438_v25 = vpop.permute.xlu0 %1437 }
 0x160   : > { %v1443_v26 = vsel %vm1376_vm0, %v1438_v25, 0 }
 0x161   : > { %1452 = vmatpush.bf16.xpose.msra.mxu2 %v1443_v26 }
 0x166   : > { %v1551_v56 = vpop.permute.xlu1 %1550 }
 0x167   : > { %v1433_v28 = vpop.permute.xlu0 %1432 }
 0x168   : > { %4933 = vmatmul.msk.bf16.vlgmr.msra.gmra.mxu2 %vm1376_vm0, %v1433_v28 }
 0x169   : > { %1567 = vmatpush.bf16.xpose.msrb.mxu2 %v1558_v24 }
 0x16e   : > { %v1663_v30 = vpop.permute.xlu1 %1662 }
 0x16f   : > { %v1495_v31 = vpop.permute.xlu0 %1494 }
 0x170   : > { %4935 = vmatmul.msk.bf16.vlgmr.msrb.gmra.mxu0 %vm1376_vm0, %v1495_v31 }
 0x171   : > { %1679 = vmatpush.bf16.xpose.msra.mxu2 %v1670_v29 }
 0x173   : > { %v1392_v32 = vpop.f32.mrf.mxu2 }
 0x174   : > { %v1397_v33 = vsel %vm1396_vm1, %v1392_v32, -inf }
 0x175   : > { %1398 = vmax.xlane.f32.xlu0 %v1397_v33  ;;  %v1330_v40 = vpop.f32.mrf.mxu0 }
 0x176   : > { %v1721_v35 = vpop.permute.xlu1 %1720  ;;  %v1331_v49 = vadd.f32 %v1330_v40, %v729_v47 }
 0x177   : > { %v1726_v36 = vsel %vm1376_vm0, %v1721_v35, 0  ;;  %v1775_v45 = vpop.permute.xlu0 %1774 }
 0x178   : > { %4937 = vmatmul.msk.bf16.vlgmr.msrb.gmra.mxu2 %vm1376_vm0, %v1551_v56  ;;  %1735 = vmatpush.bf16.xpose.msrb.mxu0 %v1726_v36 }
 0x179   : > { %1791 = vmatpush.bf16.xpose.msrb.mxu2 %v1782_v37  ;;  %v1369_v42 = vpop.f32.mrf.mxu3 }
 0x17a   : > { %v1370_v50 = vadd.f32 %v1369_v42, %v1357_v48 }
 0x17b   : > { %v1394_v39 = vpop.f32.mrf.mxu2  ;;  %v1343_v51 = vpop.f32.mrf.mxu1 }
 0x17c   : > { %v1344_v52 = vadd.f32 %v1343_v51, %v1331_v49 }
 0x17d   : > { %v1332_v41 = vpop.f32.mrf.mxu0 }
 0x17e   : > { %v7353_v53 = vpack.c.bf16 %v1370_v50, %v1344_v52 }
 0x180   : > { %4939 = vmatmul.msk.bf16.vlgmr.msra.gmra.mxu0 %vm1376_vm0, %v7282_v62  ;;  %v1414_v54 = vsel %vm1412_vm2, %v7353_v53, 0  ;;  %v1471_v18 = vunpack.c.l.b16 %v7353_v53  ;;  %v1641_v42 = vunpack.c.h.b16 %v7353_v53 }
 0x181   : > { %v1371_v44 = vpop.f32.mrf.mxu3  ;;  %1423 = vmatpush.bf16.msrb.mxu3 %v1414_v54 }
 0x182   : > { %v1472_v19 = vpack.c.b16 %v1471_v18, %v1471_v18 }
 0x183   : > { %v1345_v57 = vpop.f32.mrf.mxu1 }
 0x188   : > { %4941 = vmatmul.msk.bf16.vlgmr.msra.gmra.mxu2 %vm1376_vm0, %v1663_v30 }
 0x190   : > { %4943 = vmatmul.msk.bf16.vlgmr.msrb.gmra.mxu0 %vm1376_vm0, %v1719_v43 }
 0x198   : > { %4945 = vmatmul.msk.bf16.vlgmr.msrb.gmra.mxu2 %vm1376_vm0, %v1775_v45  ;;  %v1642_v45 = vpack.c.b16 %v1641_v42, %v1641_v42 }
 0x1e8   : > { %v1399_v58 = vpop.xlane.xlu0 %1398 }
 0x1e9   : > { %v1400_v59 = vsub.f32 %v1392_v32, %v1399_v58 }
 0x1eb   : > { %v1401_v60 = vmul.f32 1.442695, %v1400_v59  ;;  %v1454_v61 = vpop.f32.mrf.mxu2 }
 0x1ec   : > { %v1458_v62 = vsel %vm1396_vm1, %v1454_v61, -inf }
 0x1ed   : > { %6415 = vpow2.f32 %v1401_v60  ;;  %v1513_v38 = vpop.f32.mrf.mxu0  ;;  %1459 = vmax.xlane.f32.xlu1 %v1458_v62 }
 0x1ee   : > { %v1517_v63 = vsel %vm1396_vm1, %v1513_v38, -inf }
 0x1ef   : > { %1518 = vmax.xlane.f32.xlu2 %v1517_v63 }
 0x1f3   : > { %v6416_v0 = vpop.eup %6415  ;;  %v1456_v1 = vpop.f32.mrf.mxu2 }
 0x1f4   : > { %v1403_v2 = vsel %vm1396_vm1, %v6416_v0, 0.0 }
 0x1f5   : > { %v1515_v3 = vpop.f32.mrf.mxu0  ;;  %1404 = vadd.xlane.f32.xlu1 %v1403_v2 }
 0x1fb   : > { %v7360_v4 = vpop.f32.mrf.mxu2 }
 0x1fc   : > { %v1573_v9 = vsel %vm1396_vm1, %v7360_v4, -inf }
 0x1fd   : > { %v7362_v5 = vpop.f32.mrf.mxu0 }
 0x1fe   : > { %v1629_v6 = vsel %vm1396_vm1, %v7362_v5, -inf }
 0x1ff   : > { %1630 = vmax.xlane.f32.xlu2 %v1629_v6 }
 0x203   : > { %v1571_v7 = vpop.f32.mrf.mxu2 }
 0x205   : > { %v1627_v8 = vpop.f32.mrf.mxu0 }
 0x207   : > { %1574 = vmax.xlane.f32.xlu2 %v1573_v9 }
 0x20b   : > { %v1681_v10 = vpop.f32.mrf.mxu2 }
 0x20c   : > { %v1685_v11 = vsel %vm1396_vm1, %v1681_v10, -inf }
 0x20d   : > { %v1737_v12 = vpop.f32.mrf.mxu0  ;;  %1686 = vmax.xlane.f32.xlu0 %v1685_v11 }
 0x20e   : > { %v1741_v13 = vsel %vm1396_vm1, %v1737_v12, -inf }
 0x20f   : > { %1742 = vmax.xlane.f32.xlu2 %v1741_v13 }
 0x213   : > { %v1683_v14 = vpop.f32.mrf.mxu2 }
 0x215   : > { %v1739_v15 = vpop.f32.mrf.mxu0 }
 0x21b   : > { %v1793_v16 = vpop.f32.mrf.mxu2 }
 0x21c   : > { %v1797_v55 = vsel %vm1396_vm1, %v1793_v16, -inf }
 0x21d   : > { %1798 = vmax.xlane.f32.xlu0 %v1797_v55 }
 0x223   : > { %v1795_v17 = vpop.f32.mrf.mxu2 }
 0x231   : > { %1473 = vrot.lane.b32.xlu0 %v1472_v19, %s9153_s27 }
 0x260   : > { %v1460_v20 = vpop.xlane.xlu1 %1459 }
 0x261   : > { %v1461_v21 = vsub.f32 %v1454_v61, %v1460_v20 }
 0x262   : > { %v1519_v22 = vpop.xlane.xlu2 %1518 }
 0x263   : > { %v1462_v23 = vmul.f32 1.442695, %v1461_v21  ;;  %v1520_v24 = vsub.f32 %v1513_v38, %v1519_v22 }
 0x265   : > { %6417 = vpow2.f32 %v1462_v23  ;;  %v1521_v25 = vmul.f32 1.442695, %v1520_v24 }
 0x267   : > { %6419 = vpow2.f32 %v1521_v25 }
 0x268   : > { %v1405_v26 = vpop.xlane.xlu1 %1404 }
 0x269   : > { %6421 = vrcp.f32 %v1405_v26 }
 0x26b   : > { %v6418_v27 = vpop.eup %6417 }
 0x26c   : > { %v1464_v56 = vsel %vm1396_vm1, %v6418_v27, 0.0 }
 0x26d   : > { %v6420_v28 = vpop.eup %6419  ;;  %1465 = vadd.xlane.f32.xlu1 %v1464_v56 }
 0x26e   : > { %v1523_v29 = vsel %vm1396_vm1, %v6420_v28, 0.0 }
 0x26f   : > { %v6422_v30 = vpop.eup %6421  ;;  %1524 = vadd.xlane.f32.xlu2 %v1523_v29 }
 0x270   : > { %v1407_v31 = vmul.f32 %v6422_v30, %v6416_v0 }
 0x272   : > { %v1408_v32 = vpack.c.bf16 %v1407_v31, %v1407_v31  ;;  %v1631_v33 = vpop.xlane.xlu2 %1630 }
 0x273   : > { %v1632_v53 = vsub.f32 %v7362_v5, %v1631_v33 }
 0x274   : > { %4932 = vmatmul.msk.bf16.vlgmr.msrb.gmra.mxu3 %vm1396_vm1, %v1408_v32 }
 0x275   : > { %v1633_v57 = vmul.f32 1.442695, %v1632_v53 }
 0x27a   : > { %v1575_v34 = vpop.xlane.xlu2 %1574 }
 0x27b   : > { %v1576_v49 = vsub.f32 %v7360_v4, %v1575_v34 }
 0x27d   : > { %v1577_v50 = vmul.f32 1.442695, %v1576_v49 }
 0x280   : > { %v1687_v35 = vpop.xlane.xlu0 %1686 }
 0x281   : > { %v1688_v36 = vsub.f32 %v1681_v10, %v1687_v35  ;;  %v1647_v10 = vsel %vm1412_vm2, %v1642_v45, 0 }
 0x282   : > { %v1743_v37 = vpop.xlane.xlu2 %1742 }
 0x283   : > { %v1689_v39 = vmul.f32 1.442695, %v1688_v36  ;;  %v1744_v40 = vsub.f32 %v1737_v12, %v1743_v37 }
 0x285   : > { %6423 = vpow2.f32 %v1689_v39  ;;  %v1745_v41 = vmul.f32 1.442695, %v1744_v40 }
 0x286   : > { %1585 = vrot.lane.b32.xlu1 %v1472_v19, %s9151_s23 }
 0x287   : > { %1529 = vrot.lane.b32.xlu2 %v1472_v19, %s9168_s1  ;;  %6425 = vpow2.f32 %v1745_v41 }
 0x288   : > { %6427 = vpow2.f32 %v1577_v50 }
 0x289   : > { %6429 = vpow2.f32 %v1633_v57 }
 0x28b   : > { %v7379_v43 = vpop.eup %6423 }
 0x28c   : > { %v1691_v44 = vsel %vm1396_vm1, %v7379_v43, 0.0 }
 0x28d   : > { %1692 = vadd.xlane.f32.xlu0 %v1691_v44  ;;  %v7384_v46 = vpop.eup %6425 }
 0x28e   : > { %v1747_v47 = vsel %vm1396_vm1, %v7384_v46, 0.0  ;;  %v6428_v59 = vpop.eup %6427 }
 0x28f   : > { %1697 = vrot.lane.b32.xlu2 %v1642_v45, %s9153_s27  ;;  %v1579_v60 = vsel %vm1396_vm1, %v6428_v59, 0.0  ;;  %v6430_v61 = vpop.eup %6429 }
 0x290   : > { %v1799_v48 = vpop.xlane.xlu0 %1798  ;;  %v1635_v38 = vsel %vm1396_vm1, %v6430_v61, 0.0 }
 0x291   : > { %v1800_v54 = vsub.f32 %v1793_v16, %v1799_v48 }
 0x293   : > { %v1801_v58 = vmul.f32 1.442695, %v1800_v54 }
 0x295   : > { %1748 = vadd.xlane.f32.xlu0 %v1747_v47  ;;  %6431 = vpow2.f32 %v1801_v58 }
 0x29b   : > { %v7393_v62 = vpop.eup %6431 }
 0x29c   : > { %v1803_v63 = vsel %vm1396_vm1, %v7393_v62, 0.0 }
 0x2a3   : > { %v1474_v51 = vpop.permute.xlu0 %1473 }
 0x2a4   : > { %v1479_v52 = vsel %vm1412_vm2, %v1474_v51, 0 }
 0x2a5   : > { %1488 = vmatpush.bf16.msra.mxu3 %v1479_v52 }
 0x2a9   : > { %1809 = vrot.lane.b32.xlu0 %v1642_v45, %s9151_s23 }
 0x2b0   : > { %1580 = vadd.xlane.f32.xlu1 %v1579_v60  ;;  %v6102_v60 = vld [vmem:[%s9130_s5 + $0x74] sm:$0xf0] }
 0x2b8   : > { %1636 = vadd.xlane.f32.xlu1 %v1635_v38  ;;  %1804 = vadd.xlane.f32.xlu2 %v1803_v63  ;;  %v6118_v38 = vld [vmem:[%s9130_s5 + $0xf4] sm:$0xf0]  ;;  %v6101_v63 = vld [vmem:[%s9130_s5 + $0x74] sm:$0xf] }
 0x2d1   : > { %1753 = vrot.lane.b32.xlu1 %v1642_v45, %s9168_s1 }
 0x2e0   : > { %v1466_v0 = vpop.xlane.xlu1 %1465 }
 0x2e1   : > { %6433 = vrcp.f32 %v1466_v0  ;;  %v5007_v0 = vld [vmem:[%s9130_s5 + $0x78] sm:$0xf0] }
 0x2e2   : > { %v1525_v1 = vpop.xlane.xlu2 %1524 }
 0x2e3   : > { %6435 = vrcp.f32 %v1525_v1 }
 0x2e7   : > { %v6434_v2 = vpop.eup %6433 }
 0x2e8   : > { %v1468_v3 = vmul.f32 %v6434_v2, %v6418_v27  ;;  %v5010_v2 = vor.u32 %v6101_v63, %v5007_v0  ;;  %v4967_v63 = vld [vmem:[%s9130_s5 + $0x28] sm:$0xf0]  ;;  %v6107_v0 = vld [vmem:[%s9130_s5 + $0xa4] sm:$0xf] }
 0x2e9   : > { %v6436_v4 = vpop.eup %6435 }
 0x2ea   : > { %v1469_v5 = vpack.c.bf16 %v1468_v3, %v1468_v3  ;;  %v1527_v6 = vmul.f32 %v6436_v4, %v6420_v28  ;;  %v1530_v7 = vpop.permute.xlu2 %1529  ;;  %v6117_v3 = vld [vmem:[%s9130_s5 + $0xf4] sm:$0xf]  ;;  %v5071_v4 = vld [vmem:[%s9130_s5 + $0xf8] sm:$0xf0]  ;;  %2052 = vmatpush.bf16.msra.mxu2 %v5010_v2  ;;  %v5031_v2 = vld [vmem:[%s9130_s5 + $0xa8] sm:$0xf0] }
 0x2eb   : > { %v1535_v8 = vsel %vm1412_vm2, %v1530_v7, 0  ;;  %v6100_v7 = vld [vmem:[%s9130_s5 + $0x64] sm:$0xf0] }
 0x2ec   : > { %v1528_v9 = vpack.c.bf16 %v1527_v6, %v1527_v6  ;;  %4934 = vmatmul.msk.bf16.vlgmr.msra.gmra.mxu3 %vm1396_vm1, %v1469_v5  ;;  %1544 = vmatpush.bf16.msrb.mxu1 %v1535_v8  ;;  %v4997_v5 = vld [vmem:[%s9130_s5 + $0x60] sm:$0xf]  ;;  %v5074_v6 = vor.u32 %v6117_v3, %v5071_v4  ;;  %v4957_v3 = vld [vmem:[%s9130_s5 + $0x10] sm:$0xf]  ;;  %v6090_v4 = vld [vmem:[%s9130_s5 + $0x14] sm:$0xf0] }
 0x2ed   : > { %v5061_v8 = vld [vmem:[%s9130_s5 + $0xe0] sm:$0xf] }
 0x2ef   : > { %4936 = vmatmul.msk.bf16.vlgmr.msrb.gmra.mxu1 %vm1396_vm1, %v1528_v9  ;;  %v6116_v9 = vld [vmem:[%s9130_s5 + $0xe4] sm:$0xf0] }
 0x2f0   : > { %1656 = vmatpush.bf16.msra.mxu1 %v1647_v10  ;;  %v4998_v10 = vor.u32 %v6100_v7, %v4997_v5  ;;  %v5034_v5 = vor.u32 %v6107_v0, %v5031_v2  ;;  %v6106_v7 = vld [vmem:[%s9130_s5 + $0x94] sm:$0xf0] }
 0x2f2   : > { %v1698_v11 = vpop.permute.xlu2 %1697 }
 0x2f3   : > { %v1703_v15 = vsel %vm1412_vm2, %v1698_v11, 0  ;;  %v5062_v11 = vor.u32 %v6116_v9, %v5061_v8  ;;  %v6089_v8 = vld [vmem:[%s9130_s5 + $0x14] sm:$0xf]  ;;  %v4958_v9 = vor.u32 %v6090_v4, %v4957_v3 }
 0x2f7   : > { %v7403_v12 = vpop.f32.mrf.mxu3 }
 0x2f8   : > { %v1586_v13 = vpop.permute.xlu1 %1585 }
 0x2f9   : > { %v1591_v14 = vsel %vm1412_vm2, %v1586_v13, 0  ;;  %v6099_v13 = vld [vmem:[%s9130_s5 + $0x64] sm:$0xf] }
 0x2fa   : > { %1600 = vmatpush.bf16.msrb.mxu3 %v1591_v14  ;;  %v4999_v14 = vld [vmem:[%s9130_s5 + $0x68] sm:$0xf0] }
 0x2fe   : > { %1712 = vmatpush.bf16.msra.mxu3 %v1703_v15  ;;  %v6115_v15 = vld [vmem:[%s9130_s5 + $0xe4] sm:$0xf] }
 0x2ff   : > { %v1427_v16 = vpop.f32.mrf.mxu3 }
 0x300   : > { %v1693_v55 = vpop.xlane.xlu0 %1692  ;;  %v5002_v16 = vor.u32 %v6099_v13, %v4999_v14  ;;  %v5023_v13 = vld [vmem:[%s9130_s5 + $0x98] sm:$0xf0] }
 0x302   : > { %2053 = vmatpush.bf16.msra.mxu2 %v5002_v16 }
 0x308   : > { %v1749_v18 = vpop.xlane.xlu0 %1748 }
 0x31b   : > { %v1810_v22 = vpop.permute.xlu0 %1809 }
 0x31c   : > { %v1815_v24 = vsel %vm1412_vm2, %v1810_v22, 0  ;;  %v6097_v22 = vld [vmem:[%s9130_s5 + $0x54] sm:$0xf] }
 0x323   : > { %v1581_v17 = vpop.xlane.xlu1 %1580 }
 0x324   : > { %6437 = vrcp.f32 %v1581_v17  ;;  %v4989_v17 = vld [vmem:[%s9130_s5 + $0x50] sm:$0xf] }
 0x32a   : > { %v6438_v19 = vpop.eup %6437 }
 0x32b   : > { %v1583_v20 = vmul.f32 %v6438_v19, %v6428_v59  ;;  %v1637_v21 = vpop.xlane.xlu1 %1636  ;;  %v1805_v30 = vpop.xlane.xlu2 %1804  ;;  %v5005_v59 = vld [vmem:[%s9130_s5 + $0x70] sm:$0xf] }
 0x32c   : > { %6439 = vrcp.f32 %v1637_v21  ;;  %v6114_v21 = vld [vmem:[%s9130_s5 + $0xd4] sm:$0xf0] }
 0x32d   : > { %v1584_v23 = vpack.c.bf16 %v1583_v20, %v1583_v20  ;;  %6441 = vrcp.f32 %v1693_v55  ;;  %v5063_v55 = vld [vmem:[%s9130_s5 + $0xe8] sm:$0xf0]  ;;  %v5053_v20 = vld [vmem:[%s9130_s5 + $0xd0] sm:$0xf] }
 0x32e   : > { %6443 = vrcp.f32 %v1749_v18  ;;  %v6098_v18 = vld [vmem:[%s9130_s5 + $0x54] sm:$0xf0]  ;;  %v5066_v19 = vor.u32 %v6115_v15, %v5063_v55  ;;  %v4949_v55 = vld [vmem:[%s9130_s5] sm:$0xf] }
 0x32f   : > { %4938 = vmatmul.msk.bf16.vlgmr.msrb.gmra.mxu3 %vm1396_vm1, %v1584_v23  ;;  %6445 = vrcp.f32 %v1805_v30  ;;  %v4990_v23 = vor.u32 %v6098_v18, %v4989_v17  ;;  %v5045_v30 = vld [vmem:[%s9130_s5 + $0xc0] sm:$0xf]  ;;  %v6088_v17 = vld [vmem:[%s9130_s5 + $0x4] sm:$0xf0] }
 0x330   : > { %1824 = vmatpush.bf16.msrb.mxu3 %v1815_v24  ;;  %v4991_v24 = vld [vmem:[%s9130_s5 + $0x58] sm:$0xf0]  ;;  %v5013_v18 = vld [vmem:[%s9130_s5 + $0x80] sm:$0xf] }
 0x332   : > { %v6440_v25 = vpop.eup %6439 }
 0x333   : > { %v1639_v26 = vmul.f32 %v6440_v25, %v6430_v61  ;;  %v6442_v56 = vpop.eup %6441  ;;  %v5069_v61 = vld [vmem:[%s9130_s5 + $0xf0] sm:$0xf]  ;;  %v6113_v25 = vld [vmem:[%s9130_s5 + $0xd4] sm:$0xf] }
 0x334   : > { %v1695_v28 = vmul.f32 %v6442_v56, %v7379_v43  ;;  %v6444_v31 = vpop.eup %6443  ;;  %v5070_v1 = vor.u32 %v6118_v38, %v5069_v61  ;;  %v4994_v56 = vor.u32 %v6097_v22, %v4991_v24  ;;  %v6091_v38 = vld [vmem:[%s9130_s5 + $0x24] sm:$0xf]  ;;  %v4951_v22 = vld [vmem:[%s9130_s5 + $0x8] sm:$0xf0] }
 0x335   : > { %v1640_v27 = vpack.c.bf16 %v1639_v26, %v1639_v26  ;;  %v1751_v32 = vmul.f32 %v6444_v31, %v7384_v46  ;;  %v6446_v35 = vpop.eup %6445  ;;  %v5055_v26 = vld [vmem:[%s9130_s5 + $0xd8] sm:$0xf0] }
 0x336   : > { %v1696_v29 = vpack.c.bf16 %v1695_v28, %v1695_v28  ;;  %v1807_v37 = vmul.f32 %v6446_v35, %v7393_v62  ;;  %v5006_v62 = vor.u32 %v6102_v60, %v5005_v59  ;;  %v4981_v28 = vld [vmem:[%s9130_s5 + $0x40] sm:$0xf]  ;;  %v5058_v31 = vor.u32 %v6113_v25, %v5055_v26  ;;  %v6111_v35 = vld [vmem:[%s9130_s5 + $0xc4] sm:$0xf]  ;;  %2054 = vmatpush.bf16.msra.mxu2 %v4994_v56  ;;  %v6108_v60 = vld [vmem:[%s9130_s5 + $0xa4] sm:$0xf0] }
 0x337   : > { %4940 = vmatmul.msk.bf16.vlgmr.msra.gmra.mxu1 %vm1396_vm1, %v1640_v27  ;;  %v1752_v36 = vpack.c.bf16 %v1751_v32, %v1751_v32  ;;  %v5054_v27 = vor.u32 %v6114_v21, %v5053_v20  ;;  %v6112_v32 = vld [vmem:[%s9130_s5 + $0xc4] sm:$0xf0]  ;;  %v5029_v59 = vld [vmem:[%s9130_s5 + $0xa0] sm:$0xf]  ;;  %v6087_v21 = vld [vmem:[%s9130_s5 + $0x4] sm:$0xf] }
 0x338   : > { %v1808_v39 = vpack.c.bf16 %v1807_v37, %v1807_v37  ;;  %2026 = vmatpush.bf16.msra.mxu0 %v5006_v62  ;;  %v5030_v62 = vor.u32 %v6108_v60, %v5029_v59  ;;  %v6104_v20 = vld [vmem:[%s9130_s5 + $0x84] sm:$0xf0]  ;;  %v4954_v24 = vor.u32 %v6087_v21, %v4951_v22  ;;  %v6103_v25 = vld [vmem:[%s9130_s5 + $0x84] sm:$0xf]  ;;  %v5015_v26 = vld [vmem:[%s9130_s5 + $0x88] sm:$0xf0] }
 0x339   : > { %v7635_v59 = vld [vmem:[%s6931_s16] sm:$0xff]  ;;  %v6148_v21 = vld [vmem:[%s9131_s6 + $0xe4] sm:$0xf0] }
 0x33a   : > { %v6131_v22 = vld [vmem:[%s9131_s6 + $0x64] sm:$0xf] }
 0x33c   : > { %2027 = vmatpush.bf16.msra.mxu0 %v4998_v10  ;;  %v4959_v10 = vld [vmem:[%s9130_s5 + $0x18] sm:$0xf0] }
 0x33d   : > { %v4962_v15 = vor.u32 %v6089_v8, %v4959_v10  ;;  %v6133_v10 = vld [vmem:[%s9131_s6 + $0x74] sm:$0xf] }
 0x33f   : > { %4942 = vmatmul.msk.bf16.vlgmr.msra.gmra.mxu3 %vm1396_vm1, %v1696_v29  ;;  %v6096_v29 = vld [vmem:[%s9130_s5 + $0x44] sm:$0xf0] }
 0x340   : > { %2065 = vmatpush.bf16.msra.mxu3 %v5074_v6  ;;  %2028 = vmatpush.bf16.msra.mxu0 %v4990_v23  ;;  %v4982_v37 = vor.u32 %v6096_v29, %v4981_v28  ;;  %v5021_v6 = vld [vmem:[%s9130_s5 + $0x90] sm:$0xf]  ;;  %v5014_v23 = vor.u32 %v6104_v20, %v5013_v18  ;;  %v6132_v18 = vld [vmem:[%s9131_s6 + $0x64] sm:$0xf0] }
 0x341   : > { %v5022_v14 = vor.u32 %v6106_v7, %v5021_v6  ;;  %v6134_v6 = vld [vmem:[%s9131_s6 + $0x74] sm:$0xf0]  ;;  %v5197_v7 = vld [vmem:[%s9131_s6 + $0xf0] sm:$0xf] }
 0x343   : > { %v1754_v33 = vpop.permute.xlu1 %1753 }
 0x344   : > { %v1759_v34 = vsel %vm1412_vm2, %v1754_v33, 0  ;;  %2066 = vmatpush.bf16.msra.mxu3 %v5066_v19  ;;  %v6095_v33 = vld [vmem:[%s9130_s5 + $0x44] sm:$0xf]  ;;  %2029 = vmatpush.bf16.msra.mxu0 %v4982_v37  ;;  %v4950_v19 = vor.u32 %v6088_v17, %v4949_v55  ;;  %v5125_v17 = vld [vmem:[%s9131_s6 + $0x60] sm:$0xf] }
 0x345   : > { %1768 = vmatpush.bf16.msrb.mxu1 %v1759_v34  ;;  %v4983_v34 = vld [vmem:[%s9130_s5 + $0x48] sm:$0xf0]  ;;  %v5126_v20 = vor.u32 %v6132_v18, %v5125_v17  ;;  %v5085_v18 = vld [vmem:[%s9131_s6 + $0x10] sm:$0xf] }
 0x348   : > { %4944 = vmatmul.msk.bf16.vlgmr.msrb.gmra.mxu1 %vm1396_vm1, %v1752_v36  ;;  %v5047_v36 = vld [vmem:[%s9130_s5 + $0xc8] sm:$0xf0]  ;;  %2067 = vmatpush.bf16.msra.mxu3 %v5058_v31 }
 0x349   : > { %2039 = vmatpush.bf16.msra.mxu1 %v5070_v1  ;;  %v4970_v1 = vor.u32 %v6091_v38, %v4967_v63 }
 0x34d   : > { %2040 = vmatpush.bf16.msra.mxu1 %v5062_v11  ;;  %v6105_v11 = vld [vmem:[%s9130_s5 + $0x94] sm:$0xf] }
 0x34e   : > { %v5026_v16 = vor.u32 %v6105_v11, %v5023_v13  ;;  %v5135_v11 = vld [vmem:[%s9131_s6 + $0x78] sm:$0xf0] }
 0x34f   : > { %4946 = vmatmul.msk.bf16.vlgmr.msrb.gmra.mxu3 %vm1396_vm1, %v1808_v39  ;;  %v5046_v39 = vor.u32 %v6112_v32, %v5045_v30 }
 0x351   : > { %2041 = vmatpush.bf16.msra.mxu1 %v5054_v27  ;;  %v5018_v27 = vor.u32 %v6103_v25, %v5015_v26  ;;  %v6147_v26 = vld [vmem:[%s9131_s6 + $0xe4] sm:$0xf] }
 0x355   : > { %2042 = vmatpush.bf16.msra.mxu1 %v5046_v39 }
 0x36c   : > { %v1546_v40 = vpop.f32.mrf.mxu1 }
 0x36f   : > { %v1490_v41 = vpop.f32.mrf.mxu3 }
 0x374   : > { %v1548_v42 = vpop.f32.mrf.mxu1 }
 0x375   : > { %v4973_v42 = vld [vmem:[%s9130_s5 + $0x30] sm:$0xf] }
 0x377   : > { %v1492_v43 = vpop.f32.mrf.mxu3 }
 0x378   : > { %v6094_v43 = vld [vmem:[%s9130_s5 + $0x34] sm:$0xf0] }
 0x3b2   : > { %v1602_v44 = vpop.f32.mrf.mxu3 }
 0x3b4   : > { %v7417_v45 = vpop.f32.mrf.mxu1 }
 0x3ba   : > { %v1604_v46 = vpop.f32.mrf.mxu3 }
 0x3bb   : > { %v4974_v46 = vor.u32 %v6094_v43, %v4973_v42 }
 0x3bc   : > { %v1660_v47 = vpop.f32.mrf.mxu1 }
 0x3bd   : > { %v6110_v47 = vld [vmem:[%s9130_s5 + $0xb4] sm:$0xf0]  ;;  %2030 = vmatpush.bf16.msra.mxu0 %v4974_v46 }
 0x3c2   : > { %v1714_v48 = vpop.f32.mrf.mxu3 }
 0x3c3   : > { %v6385_v49 = vpack.i.bf16 %v1714_v48, %v1490_v41  ;;  %v5050_v41 = vor.u32 %v6111_v35, %v5047_v36  ;;  %v6093_v48 = vld [vmem:[%s9130_s5 + $0x34] sm:$0xf] }
 0x3c5   : > { %6386 = vrot.lane.b32.xlu2 %v6385_v49, %s9151_s23  ;;  %v1770_v50 = vpop.f32.mrf.mxu1  ;;  %2068 = vmatpush.bf16.msra.mxu3 %v5050_v41  ;;  %v4975_v49 = vld [vmem:[%s9130_s5 + $0x38] sm:$0xf0]  ;;  %s4543_s23 = sshll.u32 %s509_s18, 3 }
 0x3c6   : > { %v6390_v51 = vpack.i.bf16 %v1770_v50, %v1546_v40  ;;  %v4986_v40 = vor.u32 %v6095_v33, %v4983_v34 }
 0x3c8   : > { %6391 = vrot.lane.b32.xlu0 %v6390_v51, %s9168_s1  ;;  %2055 = vmatpush.bf16.msra.mxu2 %v4986_v40  ;;  %v4978_v51 = vor.u32 %v6093_v48, %v4975_v49  ;;  %v7631_v48 = vld [vmem:[%s9133_s8 + $0x8] sm:$0xff] }
 0x3ca   : > { %v1716_v52 = vpop.f32.mrf.mxu3 }
 0x3cb   : > { %v6109_v52 = vld [vmem:[%s9130_s5 + $0xb4] sm:$0xf] }
 0x3cc   : > { %2056 = vmatpush.bf16.msra.mxu2 %v4978_v51 }
 0x3cd   : > { %v1772_v53 = vpop.f32.mrf.mxu1 }
 0x3ce   : > { %v5039_v53 = vld [vmem:[%s9130_s5 + $0xb8] sm:$0xf0] }
 0x3d0   : > { %2057 = vmatpush.bf16.msra.mxu2 %v4970_v1 }
 0x3d2   : > { %v1826_v54 = vpop.f32.mrf.mxu3 }
 0x3d3   : > { %v6395_v57 = vpack.i.bf16 %v1826_v54, %v1602_v44  ;;  %v5037_v44 = vld [vmem:[%s9130_s5 + $0xb0] sm:$0xf]  ;;  %v4965_v54 = vld [vmem:[%s9130_s5 + $0x20] sm:$0xf] }
 0x3d4   : > { %v5038_v50 = vor.u32 %v6110_v47, %v5037_v44  ;;  %2058 = vmatpush.bf16.msra.mxu2 %v4962_v15  ;;  %v6149_v15 = vld [vmem:[%s9131_s6 + $0xf4] sm:$0xf] }
 0x3d5   : > { %6396 = vrot.lane.b32.xlu0 %v6395_v57, %s9153_s27  ;;  %v5042_v57 = vor.u32 %v6109_v52, %v5039_v53 }
 0x3d6   : > { %2043 = vmatpush.bf16.msra.mxu1 %v5038_v50  ;;  %v1865_v50 = vperm.slane %v7631_v48, 0 }
 0x3d7   : > { %2069 = vmatpush.bf16.msra.mxu3 %v5042_v57 }
 0x3d8   : > { %2059 = vmatpush.bf16.msra.mxu2 %v4954_v24 }
 0x3da   : > { %v1828_v58 = vpop.f32.mrf.mxu3  ;;  %2044 = vmatpush.bf16.msra.mxu1 %v5030_v62  ;;  %v6488_v62 = vld [vmem:[%s6937_s28] sm:$0xff] }
 0x3db   : > { %v6092_v58 = vld [vmem:[%s9130_s5 + $0x24] sm:$0xf0]  ;;  %2070 = vmatpush.bf16.msra.mxu3 %v5034_v5  ;;  %v5133_v5 = vld [vmem:[%s9131_s6 + $0x70] sm:$0xf] }
 0x3dc   : > { %v4966_v61 = vor.u32 %v6092_v58, %v4965_v54  ;;  %v5134_v8 = vor.u32 %v6134_v6, %v5133_v5  ;;  %v5093_v6 = vld [vmem:[%s9131_s6 + $0x20] sm:$0xf] }
 0x3de   : > { %2031 = vmatpush.bf16.msra.mxu0 %v4966_v61  ;;  %2045 = vmatpush.bf16.msra.mxu1 %v5022_v14  ;;  %v5138_v14 = vor.u32 %v6133_v10, %v5135_v11  ;;  %v6140_v10 = vld [vmem:[%s9131_s6 + $0xa4] sm:$0xf0]  ;;  %v6123_v11 = vld [vmem:[%s9131_s6 + $0x24] sm:$0xf] }
 0x3df   : > { %2071 = vmatpush.bf16.msra.mxu3 %v5026_v16  ;;  %v5199_v16 = vld [vmem:[%s9131_s6 + $0xf8] sm:$0xf0] }
 0x3e0   : > { %v5202_v55 = vor.u32 %v6149_v15, %v5199_v16  ;;  %2305 = vmatpush.bf16.msrb.mxu2 %v5138_v14  ;;  %v6139_v16 = vld [vmem:[%s9131_s6 + $0xa4] sm:$0xf] }
 0x3e2   : > { %2032 = vmatpush.bf16.msra.mxu0 %v4958_v9  ;;  %2046 = vmatpush.bf16.msra.mxu1 %v5014_v23  ;;  %v6150_v9 = vld [vmem:[%s9131_s6 + $0xf4] sm:$0xf0]  ;;  %v5127_v23 = vld [vmem:[%s9131_s6 + $0x68] sm:$0xf0] }
 0x3e3   : > { %2072 = vmatpush.bf16.msra.mxu3 %v5018_v27  ;;  %v5198_v13 = vor.u32 %v6150_v9, %v5197_v7  ;;  %v5130_v25 = vor.u32 %v6131_v22, %v5127_v23  ;;  %v5191_v27 = vld [vmem:[%s9131_s6 + $0xe8] sm:$0xf0]  ;;  %v6124_v7 = vld [vmem:[%s9131_s6 + $0x24] sm:$0xf0]  ;;  %v6138_v22 = vld [vmem:[%s9131_s6 + $0x94] sm:$0xf0] }
 0x3e4   : > { %v5094_v9 = vor.u32 %v6124_v7, %v5093_v6  ;;  %v6121_v23 = vld [vmem:[%s9131_s6 + $0x14] sm:$0xf]  ;;  %v2108_v6 = vperm.slane %v7631_v48, 1 }
 0x3e5   : > { %2306 = vmatpush.bf16.msrb.mxu2 %v5130_v25 }
 0x3e6   : > { %2033 = vmatpush.bf16.msra.mxu0 %v4950_v19  ;;  %2292 = vmatpush.bf16.msrb.mxu1 %v5198_v13  ;;  %v5189_v19 = vld [vmem:[%s9131_s6 + $0xe0] sm:$0xf]  ;;  %v5095_v13 = vld [vmem:[%s9131_s6 + $0x28] sm:$0xf0] }
 0x3e7   : > { %2318 = vmatpush.bf16.msrb.mxu3 %v5202_v55  ;;  %v5190_v24 = vor.u32 %v6148_v21, %v5189_v19  ;;  %v5098_v15 = vor.u32 %v6123_v11, %v5095_v13  ;;  %v5159_v55 = vld [vmem:[%s9131_s6 + $0xa8] sm:$0xf0]  ;;  %v6122_v19 = vld [vmem:[%s9131_s6 + $0x14] sm:$0xf0] }
 0x3e8   : > { %v5162_v17 = vor.u32 %v6139_v16, %v5159_v55  ;;  %v5086_v21 = vor.u32 %v6122_v19, %v5085_v18 }
 0x3ea   : > { %2279 = vmatpush.bf16.msrb.mxu0 %v5134_v8  ;;  %2293 = vmatpush.bf16.msrb.mxu1 %v5190_v24  ;;  %v5157_v8 = vld [vmem:[%s9131_s6 + $0xa0] sm:$0xf]  ;;  %v5087_v24 = vld [vmem:[%s9131_s6 + $0x18] sm:$0xf0] }
 0x3eb   : > { %v5158_v14 = vor.u32 %v6140_v10, %v5157_v8 }
 0x3ee   : > { %2280 = vmatpush.bf16.msrb.mxu0 %v5126_v20  ;;  %v5149_v20 = vld [vmem:[%s9131_s6 + $0x90] sm:$0xf] }
 0x3ef   : > { %v5150_v25 = vor.u32 %v6138_v22, %v5149_v20  ;;  %v6151_v22 = vld [vmem:[%s9132_s7] sm:$0xff] }
 0x41f   : > { %v6387_v28 = vpop.permute.xlu2 %6386 }
 0x420   : > { %v6389_v29 = vunpack.i.h.bf16 %v6387_v28  ;;  %v6388_v30 = vunpack.i.l.bf16 %v6387_v28  ;;  %v5117_v28 = vld [vmem:[%s9131_s6 + $0x50] sm:$0xf] }
 0x422   : > { %v1859_v34 = vsel %vm1376_vm0, %v7417_v45, %v6389_v29  ;;  %v1854_v35 = vsel %vm1376_vm0, %v7403_v12, %v6388_v30  ;;  %v7625_v12 = vld [vmem:[%s9133_s8] sm:$0xff]  ;;  %v6130_v29 = vld [vmem:[%s9131_s6 + $0x54] sm:$0xf0]  ;;  %v5181_v30 = vld [vmem:[%s9131_s6 + $0xd0] sm:$0xf] }
 0x423   : > { %v1864_v45 = vperm.slane %v7625_v12, 0 }
 0x43a   : > { %v6392_v56 = vpop.permute.xlu0 %6391 }
 0x43b   : > { %v6394_v31 = vunpack.i.h.bf16 %v6392_v56  ;;  %v6393_v32 = vunpack.i.l.bf16 %v6392_v56  ;;  %v5194_v56 = vor.u32 %v6147_v26, %v5191_v27  ;;  %v5090_v26 = vor.u32 %v6121_v23, %v5087_v24  ;;  %v6137_v27 = vld [vmem:[%s9131_s6 + $0x94] sm:$0xf]  ;;  %v6160_v23 = vld [vmem:[%s9132_s7 + $0x48] sm:$0xff]  ;;  %v6159_v24 = vld [vmem:[%s9132_s7 + $0x40] sm:$0xff] }
 0x43d   : > { %v1860_v39 = vsel %vm1855_vm3, %v1859_v34, %v6394_v31  ;;  %v1856_v40 = vsel %vm1855_vm3, %v1854_v35, %v6393_v32  ;;  %2319 = vmatpush.bf16.msrb.mxu3 %v5194_v56  ;;  %v5118_v31 = vor.u32 %v6130_v29, %v5117_v28  ;;  %v6146_v32 = vld [vmem:[%s9131_s6 + $0xd4] sm:$0xf0]  ;;  %v5119_v34 = vld [vmem:[%s9131_s6 + $0x58] sm:$0xf0]  ;;  %v5077_v28 = vld [vmem:[%s9131_s6] sm:$0xf] }
 0x43e   : > { %v5182_v35 = vor.u32 %v6146_v32, %v5181_v30  ;;  %v5151_v56 = vld [vmem:[%s9131_s6 + $0x98] sm:$0xf0]  ;;  %v6120_v30 = vld [vmem:[%s9131_s6 + $0x4] sm:$0xf0] }
 0x43f   : > { %2281 = vmatpush.bf16.msrb.mxu0 %v5118_v31  ;;  %v5154_v29 = vor.u32 %v6137_v27, %v5151_v56  ;;  %v5141_v31 = vld [vmem:[%s9131_s6 + $0x80] sm:$0xf]  ;;  %v6136_v32 = vld [vmem:[%s9131_s6 + $0x84] sm:$0xf0] }
 0x440   : > { %2294 = vmatpush.bf16.msrb.mxu1 %v5182_v35  ;;  %v6119_v35 = vld [vmem:[%s9131_s6 + $0x4] sm:$0xf] }
 0x447   : > { %v6397_v33 = vpop.permute.xlu0 %6396 }
 0x448   : > { %v6399_v36 = vunpack.i.h.bf16 %v6397_v33  ;;  %v6398_v37 = vunpack.i.l.bf16 %v6397_v33  ;;  %v6129_v33 = vld [vmem:[%s9131_s6 + $0x54] sm:$0xf] }
 0x44a   : > { %v1858_v41 = vsel %vm1857_vm4, %v1856_v40, %v6398_v37  ;;  %v1861_v42 = vsel %vm1857_vm4, %v1860_v39, %v6399_v36  ;;  %v5122_v36 = vor.u32 %v6129_v33, %v5119_v34  ;;  %v6145_v37 = vld [vmem:[%s9131_s6 + $0xd4] sm:$0xf]  ;;  %v5183_v39 = vld [vmem:[%s9131_s6 + $0xd8] sm:$0xf0]  ;;  %v5078_v33 = vor.u32 %v6120_v30, %v5077_v28 }
 0x44b   : > { %v1862_v43 = vpack.c.bf16 %v1858_v41, %v1858_v41  ;;  %v1863_v44 = vpack.c.bf16 %v1861_v42, %v1861_v42  ;;  %v5186_v40 = vor.u32 %v6145_v37, %v5183_v39  ;;  %v5109_v41 = vld [vmem:[%s9131_s6 + $0x40] sm:$0xf]  ;;  %v6128_v42 = vld [vmem:[%s9131_s6 + $0x44] sm:$0xf0]  ;;  %v5142_v34 = vor.u32 %v6136_v32, %v5141_v31  ;;  %v6135_v37 = vld [vmem:[%s9131_s6 + $0x84] sm:$0xf] }
 0x44c   : > { %2307 = vmatpush.bf16.msrb.mxu2 %v5122_v36  ;;  %v5079_v36 = vld [vmem:[%s9131_s6 + $0x8] sm:$0xf0] }
 0x44d   : > { %2034 = vmatmul.bf16.vlgmr.msra.gmra.mxu0 %v1862_v43  ;;  %2047 = vmatmul.bf16.vlgmr.msra.gmra.mxu1 %v1863_v44  ;;  %v5082_v39 = vor.u32 %v6119_v35, %v5079_v36 }
 0x44e   : > { %2060 = vmatmul.bf16.vlgmr.msra.gmra.mxu2 %v1862_v43  ;;  %2073 = vmatmul.bf16.vlgmr.msra.gmra.mxu3 %v1863_v44  ;;  %v5173_v43 = vld [vmem:[%s9131_s6 + $0xc0] sm:$0xf]  ;;  %v5110_v44 = vor.u32 %v6128_v42, %v5109_v41 }
 0x44f   : > { %2320 = vmatpush.bf16.msrb.mxu3 %v5186_v40  ;;  %v5143_v40 = vld [vmem:[%s9131_s6 + $0x88] sm:$0xf0] }
 0x450   : > { %2282 = vmatpush.bf16.msrb.mxu0 %v5110_v44  ;;  %v5146_v41 = vor.u32 %v6135_v37, %v5143_v40 }
 0x4ca   : > { %v2035_v46 = vpop.f32.mrf.mxu0  ;;  %v2048_v47 = vpop.f32.mrf.mxu1 }
 0x4cb   : > { %v2036_v49 = vadd.f32 %v2035_v46, %v1864_v45  ;;  %v6144_v45 = vld [vmem:[%s9131_s6 + $0xc4] sm:$0xf0]  ;;  %v6127_v46 = vld [vmem:[%s9131_s6 + $0x44] sm:$0xf] }
 0x4cd   : > { %v2049_v51 = vadd.f32 %v2048_v47, %v2036_v49  ;;  %v5111_v47 = vld [vmem:[%s9131_s6 + $0x48] sm:$0xf0]  ;;  %v5174_v49 = vor.u32 %v6144_v45, %v5173_v43 }
 0x4cf   : > { %v7638_v60 = vadd.f32 %v7635_v59, %v2049_v51  ;;  %v6143_v51 = vld [vmem:[%s9131_s6 + $0xc4] sm:$0xf]  ;;  %2295 = vmatpush.bf16.msrb.mxu1 %v5174_v49  ;;  %v6166_v49 = vld [vmem:[%s9132_s7 + $0x78] sm:$0xff] }
 0x4d1   : > { %v2061_v52 = vpop.f32.mrf.mxu2  ;;  %v2074_v53 = vpop.f32.mrf.mxu3  ;;  %v2084_v0 = vmul.f32 %v7638_v60, %v7638_v60 }
 0x4d2   : > { %v2062_v54 = vadd.f32 %v2061_v52, %v1865_v50  ;;  %v2037_v57 = vpop.f32.mrf.mxu0  ;;  %v2050_v58 = vpop.f32.mrf.mxu1  ;;  %v5114_v50 = vor.u32 %v6127_v46, %v5111_v47  ;;  %v5175_v52 = vld [vmem:[%s9131_s6 + $0xc8] sm:$0xf0]  ;;  %v6158_v47 = vld [vmem:[%s9132_s7 + $0x38] sm:$0xff] }
 0x4d3   : > { %v6126_v57 = vld [vmem:[%s9131_s6 + $0x34] sm:$0xf0]  ;;  %v5165_v58 = vld [vmem:[%s9131_s6 + $0xb0] sm:$0xf] }
 0x4d4   : > { %v2075_v61 = vadd.f32 %v2074_v53, %v2062_v54  ;;  %v5178_v53 = vor.u32 %v6143_v51, %v5175_v52  ;;  %2308 = vmatpush.bf16.msrb.mxu2 %v5114_v50  ;;  %v5101_v54 = vld [vmem:[%s9131_s6 + $0x30] sm:$0xf] }
 0x4d5   : > { %v6157_v51 = vld [vmem:[%s9132_s7 + $0x30] sm:$0xff] }
 0x4d6   : > { %v7641_v38 = vadd.f32 %v6488_v62, %v2075_v61  ;;  %2321 = vmatpush.bf16.msrb.mxu3 %v5178_v53  ;;  %v5102_v61 = vor.u32 %v6126_v57, %v5101_v54  ;;  %v6142_v62 = vld [vmem:[%s9131_s6 + $0xb4] sm:$0xf0]  ;;  %v6165_v52 = vld [vmem:[%s9132_s7 + $0x70] sm:$0xff]  ;;  %v6156_v54 = vld [vmem:[%s9132_s7 + $0x28] sm:$0xff] }
 0x4d7   : > { %v6164_v57 = vld [vmem:[%s9132_s7 + $0x68] sm:$0xff] }
 0x4d8   : > { %v2080_v63 = vadd.f32 %v7641_v38, %v7638_v60  ;;  %v2085_v1 = vmul.f32 %v7641_v38, %v7641_v38  ;;  %2283 = vmatpush.bf16.msrb.mxu0 %v5102_v61  ;;  %v6163_v61 = vld [vmem:[%s9132_s7 + $0x60] sm:$0xff] }
 0x4d9   : > { %v2063_v2 = vpop.f32.mrf.mxu2  ;;  %v2076_v3 = vpop.f32.mrf.mxu3 }
 0x4da   : > { %2081 = vadd.xlane.f32.xlu1 %v2080_v63  ;;  %v2086_v4 = vadd.f32 %v2085_v1, %v2084_v0  ;;  %v6125_v63 = vld [vmem:[%s9131_s6 + $0x34] sm:$0xf]  ;;  %v5103_v0 = vld [vmem:[%s9131_s6 + $0x38] sm:$0xf0]  ;;  %v5166_v1 = vor.u32 %v6142_v62, %v5165_v58  ;;  %v6155_v58 = vld [vmem:[%s9132_s7 + $0x20] sm:$0xff] }
 0x4db   : > { %v5106_v2 = vor.u32 %v6125_v63, %v5103_v0  ;;  %v6141_v3 = vld [vmem:[%s9131_s6 + $0xb4] sm:$0xf] }
 0x4dc   : > { %2087 = vadd.xlane.f32.xlu0 %v2086_v4  ;;  %v5167_v4 = vld [vmem:[%s9131_s6 + $0xb8] sm:$0xf0]  ;;  %2296 = vmatpush.bf16.msrb.mxu1 %v5166_v1 }
 0x4dd   : > { %v5170_v5 = vor.u32 %v6141_v3, %v5167_v4  ;;  %2309 = vmatpush.bf16.msrb.mxu2 %v5106_v2  ;;  %2284 = vmatpush.bf16.msrb.mxu0 %v5094_v9  ;;  %v6154_v1 = vld [vmem:[%s9132_s7 + $0x18] sm:$0xff]  ;;  %v6153_v4 = vld [vmem:[%s9132_s7 + $0x10] sm:$0xff]  ;;  %v2107_v9 = vperm.slane %v7625_v12, 1 }
 0x4df   : > { %2322 = vmatpush.bf16.msrb.mxu3 %v5170_v5 }
 0x4e0   : > { %2297 = vmatpush.bf16.msrb.mxu1 %v5158_v14  ;;  %v2111_v14 = vperm.slane %v7625_v12, 2 }
 0x4e1   : > { %2310 = vmatpush.bf16.msrb.mxu2 %v5098_v15  ;;  %2285 = vmatpush.bf16.msrb.mxu0 %v5086_v21  ;;  %v2112_v15 = vperm.slane %v7631_v48, 2  ;;  %v6161_v21 = vld [vmem:[%s9132_s7 + $0x50] sm:$0xff] }
 0x4e3   : > { %2323 = vmatpush.bf16.msrb.mxu3 %v5162_v17 }
 0x4e4   : > { %2298 = vmatpush.bf16.msrb.mxu1 %v5150_v25  ;;  %v2117_v25 = vperm.slane %v7625_v12, 3 }
 0x4e5   : > { %2311 = vmatpush.bf16.msrb.mxu2 %v5090_v26  ;;  %2286 = vmatpush.bf16.msrb.mxu0 %v5078_v33 }
 0x4e7   : > { %2324 = vmatpush.bf16.msrb.mxu3 %v5154_v29  ;;  %v2118_v29 = vperm.slane %v7631_v48, 3  ;;  %v6212_v48 = vld [vmem:[%s9134_s9 + $0x164] sm:$0xf0] }
 0x4e8   : > { %2299 = vmatpush.bf16.msrb.mxu1 %v5142_v34 }
 0x4e9   : > { %2312 = vmatpush.bf16.msrb.mxu2 %v5082_v39  ;;  %2432 = vmatpush.bf16.msra.mxu0 %v6158_v47  ;;  %v5629_v47 = vld [vmem:[%s9134_s9 + $0x2d0] sm:$0xf] }
 0x4eb   : > { %2325 = vmatpush.bf16.msrb.mxu3 %v5146_v41 }
 0x4ec   : > { %2445 = vmatpush.bf16.msra.mxu1 %v6166_v49  ;;  %v6260_v49 = vld [vmem:[%s9134_s9 + $0x2e4] sm:$0xf0] }
 0x4ed   : > { %2433 = vmatpush.bf16.msra.mxu0 %v6157_v51  ;;  %v5630_v51 = vor.u32 %v6260_v49, %v5629_v47  ;;  %v6227_v47 = vld [vmem:[%s9134_s9 + $0x1e4] sm:$0xf]  ;;  %v5511_v49 = vld [vmem:[%s9134_s9 + $0x1f8] sm:$0xf0] }
 0x4ef   : > { %3189 = vmatpush.bf16.msra.mxu3 %v5630_v51 }
 0x4f0   : > { %2446 = vmatpush.bf16.msra.mxu1 %v6165_v52  ;;  %v6257_v52 = vld [vmem:[%s9134_s9 + $0x2d4] sm:$0xf] }
 0x4f1   : > { %2434 = vmatpush.bf16.msra.mxu0 %v6156_v54  ;;  %v5413_v54 = vld [vmem:[%s9134_s9 + $0x120] sm:$0xf] }
 0x4f4   : > { %2447 = vmatpush.bf16.msra.mxu1 %v6164_v57 }
 0x4f5   : > { %2435 = vmatpush.bf16.msra.mxu0 %v6155_v58  ;;  %v6206_v58 = vld [vmem:[%s9134_s9 + $0x134] sm:$0xf0] }
 0x4f8   : > { %2448 = vmatpush.bf16.msra.mxu1 %v6163_v61  ;;  %v6203_v61 = vld [vmem:[%s9134_s9 + $0x124] sm:$0xf] }
 0x4f9   : > { %2436 = vmatpush.bf16.msra.mxu0 %v6154_v1  ;;  %v5605_v1 = vld [vmem:[%s9134_s9 + $0x2a0] sm:$0xf] }
 0x4fd   : > { %2437 = vmatpush.bf16.msra.mxu0 %v6153_v4 }
 0x54d   : > { %v2082_v42 = vpop.xlane.xlu1 %2081 }
 0x54e   : > { %v2083_v43 = vmul.f32 0.0052083335, %v2082_v42 }
 0x54f   : > { %v2088_v44 = vpop.xlane.xlu0 %2087 }
 0x550   : > { %v2089_v45 = vmul.f32 0.0052083335, %v2088_v44  ;;  %v2090_v46 = vmul.f32 %v2083_v43, %v2083_v43  ;;  %v2092_v7 = vsub.f32 %v7638_v60, %v2083_v43  ;;  %v2093_v8 = vsub.f32 %v7641_v38, %v2083_v43  ;;  %v6162_v60 = vld [vmem:[%s9132_s7 + $0x58] sm:$0xff]  ;;  %v6152_v38 = vld [vmem:[%s9132_s7 + $0x8] sm:$0xff]  ;;  %v5437_v43 = vld [vmem:[%s9134_s9 + $0x150] sm:$0xf] }
 0x551   : > { %2449 = vmatpush.bf16.msra.mxu1 %v6162_v60  ;;  %2438 = vmatpush.bf16.msra.mxu0 %v6152_v38  ;;  %v6209_v44 = vld [vmem:[%s9134_s9 + $0x154] sm:$0xf]  ;;  %v5367_v38 = vld [vmem:[%s9134_s9 + $0xd8] sm:$0xf0] }
 0x552   : > { %v2091_v50 = vsub.f32 %v2089_v45, %v2090_v46  ;;  %v5438_v45 = vor.u32 %v6212_v48, %v5437_v43  ;;  %v5439_v46 = vld [vmem:[%s9134_s9 + $0x168] sm:$0xf0] }
 0x554   : > { %v2094_v53 = vadd.f32 1e-05, %v2091_v50  ;;  %v5442_v50 = vor.u32 %v6209_v44, %v5439_v46  ;;  %3176 = vmatpush.bf16.msra.mxu2 %v5438_v45  ;;  %v5319_v44 = vld [vmem:[%s9134_s9 + $0x78] sm:$0xf0]  ;;  %v5509_v45 = vld [vmem:[%s9134_s9 + $0x1e0] sm:$0xf] }
 0x555   : > { %2450 = vmatpush.bf16.msra.mxu1 %v6161_v21  ;;  %2439 = vmatpush.bf16.msra.mxu0 %v6151_v22  ;;  %v5557_v21 = vld [vmem:[%s9134_s9 + $0x240] sm:$0xf]  ;;  %v6242_v22 = vld [vmem:[%s9134_s9 + $0x254] sm:$0xf0] }
 0x556   : > { %6447 = vrsqrt.f32 %v2094_v53  ;;  %vm2101_vm6 = vweird.f32 %v2094_v53  ;;  %v6230_v46 = vld [vmem:[%s9134_s9 + $0x1f4] sm:$0xf0] }
 0x559   : > { %2451 = vmatpush.bf16.msra.mxu1 %v6160_v23  ;;  %v6239_v23 = vld [vmem:[%s9134_s9 + $0x244] sm:$0xf] }
 0x55c   : > { %v6448_v62 = vpop.eup %6447 }
 0x55d   : > { %v2096_v63 = vmul.f32 %v6448_v62, %v2094_v53  ;;  %vm2102_vm5 = vweird.f32 %v6448_v62  ;;  %2452 = vmatpush.bf16.msra.mxu1 %v6159_v24  ;;  %v5631_v53 = vld [vmem:[%s9134_s9 + $0x2e8] sm:$0xf0]  ;;  %v5559_v24 = vld [vmem:[%s9134_s9 + $0x258] sm:$0xf0] }
 0x55e   : > { %vm2103_vm7 = vmor %vm2101_vm6, %vm2102_vm5  ;;  %v5634_v57 = vor.u32 %v6257_v52, %v5631_v53  ;;  %v5510_v53 = vor.u32 %v6230_v46, %v5509_v45  ;;  %v5397_v45 = vld [vmem:[%s9134_s9 + $0xf8] sm:$0xf]  ;;  %v6201_v46 = vld [vmem:[%s9134_s9 + $0x10c] sm:$0xf0] }
 0x55f   : > { %v2097_v0 = vmul.f32 %v6448_v62, %v2096_v63  ;;  %v5414_v63 = vor.u32 %v6206_v58, %v5413_v54  ;;  %v5514_v54 = vor.u32 %v6227_v47, %v5511_v49  ;;  %v6198_v47 = vld [vmem:[%s9134_s9 + $0xfc] sm:$0xf]  ;;  %v5398_v49 = vor.u32 %v6201_v46, %v5397_v45  ;;  %v5277_v45 = vld [vmem:[%s9134_s9 + $0x8] sm:$0xf]  ;;  %v6171_v46 = vld [vmem:[%s9134_s9 + $0x1c] sm:$0xf0] }
 0x561   : > { %v2098_v2 = vmul.f32 0.5, %v2097_v0  ;;  %3177 = vmatpush.bf16.msra.mxu2 %v5414_v63 }
 0x563   : > { %v2099_v3 = vsub.f32 1.5, %v2098_v2  ;;  %v6254_v2 = vld [vmem:[%s9134_s9 + $0x2b4] sm:$0xf0] }
 0x564   : > { %v5606_v4 = vor.u32 %v6254_v2, %v5605_v1  ;;  %v5293_v1 = vld [vmem:[%s9134_s9 + $0x30] sm:$0xf]  ;;  %v6176_v2 = vld [vmem:[%s9134_s9 + $0x44] sm:$0xf0] }
 0x565   : > { %v2100_v5 = vmul.f32 %v6448_v62, %v2099_v3  ;;  %v6251_v3 = vld [vmem:[%s9134_s9 + $0x2a4] sm:$0xf] }
 0x566   : > { %3190 = vmatpush.bf16.msra.mxu3 %v5606_v4  ;;  %v5295_v4 = vld [vmem:[%s9134_s9 + $0x48] sm:$0xf0] }
 0x567   : > { %v2104_v10 = vsel %vm2103_vm7, %v6448_v62, %v2100_v5  ;;  %v5415_v62 = vld [vmem:[%s9134_s9 + $0x138] sm:$0xf0] }
 0x568   : > { %v2105_v11 = vmul.f32 %v2104_v10, %v2092_v7  ;;  %v2106_v13 = vmul.f32 %v2104_v10, %v2093_v8  ;;  %v5418_v0 = vor.u32 %v6203_v61, %v5415_v62  ;;  %v5607_v5 = vld [vmem:[%s9134_s9 + $0x2b8] sm:$0xf0]  ;;  %v6200_v7 = vld [vmem:[%s9134_s9 + $0x104] sm:$0xf0]  ;;  %v5391_v10 = vld [vmem:[%s9134_s9 + $0x108] sm:$0xf0] }
 0x569   : > { %v5610_v8 = vor.u32 %v6251_v3, %v5607_v5  ;;  %v5294_v3 = vor.u32 %v6176_v2, %v5293_v1  ;;  %v5375_v2 = vld [vmem:[%s9134_s9 + $0xe0] sm:$0xf0] }
 0x56a   : > { %v2109_v16 = vmul.f32 %v2107_v9, %v2105_v11  ;;  %v2110_v55 = vmul.f32 %v2108_v6, %v2106_v13  ;;  %v5389_v6 = vld [vmem:[%s9134_s9 + $0xf0] sm:$0xf]  ;;  %v6197_v9 = vld [vmem:[%s9134_s9 + $0xf4] sm:$0xf] }
 0x56b   : > { %v5581_v11 = vld [vmem:[%s9134_s9 + $0x270] sm:$0xf]  ;;  %v5390_v13 = vor.u32 %v6200_v7, %v5389_v6  ;;  %v6224_v7 = vld [vmem:[%s9134_s9 + $0x1c4] sm:$0xf0] }
 0x56c   : > { %v2113_v17 = vadd.f32 %v2111_v14, %v2109_v16  ;;  %v2114_v18 = vadd.f32 %v2112_v15, %v2110_v55  ;;  %v6248_v14 = vld [vmem:[%s9134_s9 + $0x284] sm:$0xf0]  ;;  %v6245_v15 = vld [vmem:[%s9134_s9 + $0x274] sm:$0xf]  ;;  %v5583_v16 = vld [vmem:[%s9134_s9 + $0x288] sm:$0xf0]  ;;  %v5394_v55 = vor.u32 %v6197_v9, %v5391_v10 }
 0x56d   : > { %v5586_v60 = vor.u32 %v6245_v15, %v5583_v16  ;;  %3178 = vmatpush.bf16.msra.mxu2 %v5390_v13  ;;  %v5485_v6 = vld [vmem:[%s9134_s9 + $0x1b0] sm:$0xf]  ;;  %v5487_v10 = vld [vmem:[%s9134_s9 + $0x1c8] sm:$0xf0]  ;;  %v5269_v13 = vld [vmem:[%s9134_s9] sm:$0xf] }
 0x56e   : > { %v2115_v19 = vpack.c.bf16 %v2113_v17, %v2113_v17  ;;  %v2116_v20 = vpack.c.bf16 %v2114_v18, %v2114_v18  ;;  %v5582_v17 = vor.u32 %v6248_v14, %v5581_v11  ;;  %v5365_v18 = vld [vmem:[%s9134_s9 + $0xc0] sm:$0xf]  ;;  %v5486_v9 = vor.u32 %v6224_v7, %v5485_v6  ;;  %v6170_v14 = vld [vmem:[%s9134_s9 + $0x14] sm:$0xf0]  ;;  %v6167_v16 = vld [vmem:[%s9134_s9 + $0x4] sm:$0xf] }
 0x56f   : > { %v5270_v15 = vor.u32 %v6170_v14, %v5269_v13  ;;  %v5567_v7 = vld [vmem:[%s9134_s9 + $0x260] sm:$0xf0]  ;;  %v5351_v14 = vld [vmem:[%s9134_s9 + $0xb0] sm:$0xf0] }
 0x570   : > { %2287 = vmatmul.bf16.vlgmr.msrb.gmra.mxu0 %v2115_v19  ;;  %2300 = vmatmul.bf16.vlgmr.msrb.gmra.mxu1 %v2116_v20 }
 0x571   : > { %2313 = vmatmul.bf16.vlgmr.msrb.gmra.mxu2 %v2115_v19  ;;  %2326 = vmatmul.bf16.vlgmr.msrb.gmra.mxu3 %v2116_v20  ;;  %v6194_v19 = vld [vmem:[%s9134_s9 + $0xd4] sm:$0xf0]  ;;  %v6191_v20 = vld [vmem:[%s9134_s9 + $0xc4] sm:$0xf] }
 0x572   : > { %3202 = vmatpush.bf16.msrb.mxu0 %v5442_v50  ;;  %3215 = vmatpush.bf16.msrb.mxu1 %v5634_v57  ;;  %v2335_v50 = vperm.slane %v7625_v12, 4 }
 0x573   : > { %3191 = vmatpush.bf16.msra.mxu3 %v5582_v17  ;;  %v5445_v17 = vld [vmem:[%s9134_s9 + $0x158] sm:$0xf] }
 0x576   : > { %3203 = vmatpush.bf16.msrb.mxu0 %v5418_v0  ;;  %3216 = vmatpush.bf16.msrb.mxu1 %v5610_v8  ;;  %v6221_v8 = vld [vmem:[%s9134_s9 + $0x1b4] sm:$0xf] }
 0x577   : > { %v5490_v11 = vor.u32 %v6221_v8, %v5487_v10  ;;  %v6189_v10 = vld [vmem:[%s9134_s9 + $0xac] sm:$0xf0] }
 0x57a   : > { %3204 = vmatpush.bf16.msrb.mxu0 %v5394_v55  ;;  %3217 = vmatpush.bf16.msrb.mxu1 %v5586_v60  ;;  %v5271_v55 = vld [vmem:[%s9134_s9 + $0x18] sm:$0xf0]  ;;  %v5447_v60 = vld [vmem:[%s9134_s9 + $0x170] sm:$0xf0] }
 0x5ed   : > { %v2288_v26 = vpop.f32.mrf.mxu0  ;;  %v2301_v27 = vpop.f32.mrf.mxu1 }
 0x5ee   : > { %v2289_v56 = vadd.f32 %v2288_v26, %v2117_v25  ;;  %v5366_v25 = vor.u32 %v6194_v19, %v5365_v18  ;;  %v5370_v26 = vor.u32 %v6191_v20, %v5367_v38  ;;  %v5274_v18 = vor.u32 %v6167_v16, %v5271_v55  ;;  %v6213_v19 = vld [vmem:[%s9134_s9 + $0x16c] sm:$0xf0]  ;;  %v6210_v20 = vld [vmem:[%s9134_s9 + $0x15c] sm:$0xf]  ;;  %v5541_v16 = vld [vmem:[%s9134_s9 + $0x218] sm:$0xf] }
 0x5ef   : > { %v5446_v38 = vor.u32 %v6213_v19, %v5445_v17  ;;  %v6237_v55 = vld [vmem:[%s9134_s9 + $0x22c] sm:$0xf0]  ;;  %v6234_v17 = vld [vmem:[%s9134_s9 + $0x21c] sm:$0xf]  ;;  %v5543_v19 = vld [vmem:[%s9134_s9 + $0x230] sm:$0xf0] }
 0x5f0   : > { %v2302_v28 = vadd.f32 %v2301_v27, %v2289_v56  ;;  %v5558_v27 = vor.u32 %v6242_v22, %v5557_v21  ;;  %v5341_v56 = vld [vmem:[%s9134_s9 + $0x90] sm:$0xf]  ;;  %3179 = vmatpush.bf16.msra.mxu2 %v5366_v25  ;;  %3205 = vmatpush.bf16.msrb.mxu0 %v5370_v26  ;;  %v5450_v21 = vor.u32 %v6210_v20, %v5447_v60  ;;  %v5461_v22 = vld [vmem:[%s9134_s9 + $0x180] sm:$0xf]  ;;  %v5463_v26 = vld [vmem:[%s9134_s9 + $0x198] sm:$0xf0] }
 0x5f1   : > { %v5546_v20 = vor.u32 %v6234_v17, %v5543_v19  ;;  %v5325_v60 = vld [vmem:[%s9134_s9 + $0x68] sm:$0xf]  ;;  %v6247_v17 = vld [vmem:[%s9134_s9 + $0x284] sm:$0xf]  ;;  %v5599_v19 = vld [vmem:[%s9134_s9 + $0x298] sm:$0xf0] }
 0x5f2   : > { %v2331_v30 = vmax.f32 %v2302_v28, 0.0  ;;  %v6188_v28 = vld [vmem:[%s9134_s9 + $0xa4] sm:$0xf0]  ;;  %3192 = vmatpush.bf16.msra.mxu3 %v5558_v27  ;;  %v5637_v27 = vld [vmem:[%s9134_s9 + $0x2d8] sm:$0xf] }
 0x5f4   : > { %v2333_v31 = vpack.c.bf16 %v2331_v30, %v2331_v30  ;;  %v2314_v32 = vpop.f32.mrf.mxu2  ;;  %v2327_v33 = vpop.f32.mrf.mxu3  ;;  %v5562_v30 = vor.u32 %v6239_v23, %v5559_v24  ;;  %v6218_v23 = vld [vmem:[%s9134_s9 + $0x194] sm:$0xf0]  ;;  %v6215_v24 = vld [vmem:[%s9134_s9 + $0x184] sm:$0xf] }
 0x5f5   : > { %v2315_v34 = vadd.f32 %v2314_v32, %v2118_v29  ;;  %v2290_v35 = vpop.f32.mrf.mxu0  ;;  %v2303_v36 = vpop.f32.mrf.mxu1  ;;  %v6185_v29 = vld [vmem:[%s9134_s9 + $0x94] sm:$0xf]  ;;  %v5533_v32 = vld [vmem:[%s9134_s9 + $0x210] sm:$0xf]  ;;  %v5462_v25 = vor.u32 %v6218_v23, %v5461_v22  ;;  %v5327_v23 = vld [vmem:[%s9134_s9 + $0x80] sm:$0xf0] }
 0x5f6   : > { %2440 = vmatmul.bf16.vlgmr.msra.gmra.mxu0 %v2333_v31  ;;  %v5343_v31 = vld [vmem:[%s9134_s9 + $0xa8] sm:$0xf0]  ;;  %v5342_v36 = vor.u32 %v6188_v28, %v5341_v56  ;;  %3218 = vmatpush.bf16.msrb.mxu1 %v5562_v30  ;;  %v6261_v56 = vld [vmem:[%s9134_s9 + $0x2ec] sm:$0xf0]  ;;  %v5466_v28 = vor.u32 %v6215_v24, %v5463_v26  ;;  %v6258_v30 = vld [vmem:[%s9134_s9 + $0x2dc] sm:$0xf] }
 0x5f7   : > { %v2328_v37 = vadd.f32 %v2327_v33, %v2315_v34  ;;  %v6236_v33 = vld [vmem:[%s9134_s9 + $0x224] sm:$0xf0]  ;;  %v6233_v34 = vld [vmem:[%s9134_s9 + $0x214] sm:$0xf]  ;;  %v5535_v35 = vld [vmem:[%s9134_s9 + $0x228] sm:$0xf0] }
 0x5f8   : > { %v5538_v48 = vor.u32 %v6233_v34, %v5535_v35  ;;  %3180 = vmatpush.bf16.msra.mxu2 %v5342_v36  ;;  %v6207_v34 = vld [vmem:[%s9134_s9 + $0x13c] sm:$0xf0]  ;;  %v6204_v35 = vld [vmem:[%s9134_s9 + $0x12c] sm:$0xf]  ;;  %v5423_v36 = vld [vmem:[%s9134_s9 + $0x140] sm:$0xf0] }
 0x5f9   : > { %v2332_v39 = vmax.f32 %v2328_v37, 0.0  ;;  %v5346_v37 = vor.u32 %v6185_v29, %v5343_v31  ;;  %v5638_v29 = vor.u32 %v6261_v56, %v5637_v27  ;;  %v5639_v31 = vld [vmem:[%s9134_s9 + $0x2f0] sm:$0xf0]  ;;  %v5517_v26 = vld [vmem:[%s9134_s9 + $0x1e8] sm:$0xf] }
 0x5fa   : > { %3219 = vmatpush.bf16.msrb.mxu1 %v5538_v48  ;;  %v5615_v48 = vld [vmem:[%s9134_s9 + $0x2c0] sm:$0xf0]  ;;  %v6231_v27 = vld [vmem:[%s9134_s9 + $0x1fc] sm:$0xf0] }
 0x5fb   : > { %v2334_v40 = vpack.c.bf16 %v2332_v39, %v2332_v39  ;;  %v5534_v39 = vor.u32 %v6236_v33, %v5533_v32  ;;  %3206 = vmatpush.bf16.msrb.mxu0 %v5346_v37  ;;  %v5421_v32 = vld [vmem:[%s9134_s9 + $0x128] sm:$0xf]  ;;  %v5642_v33 = vor.u32 %v6258_v30, %v5639_v31  ;;  %v5519_v30 = vld [vmem:[%s9134_s9 + $0x200] sm:$0xf0] }
 0x5fc   : > { %v2316_v41 = vpop.f32.mrf.mxu2  ;;  %v2329_v42 = vpop.f32.mrf.mxu3  ;;  %v5422_v37 = vor.u32 %v6207_v34, %v5421_v32  ;;  %v5301_v32 = vld [vmem:[%s9134_s9 + $0x38] sm:$0xf]  ;;  %v6174_v34 = vld [vmem:[%s9134_s9 + $0x3c] sm:$0xf] }
 0x5fd   : > { %2453 = vmatmul.bf16.vlgmr.msra.gmra.mxu1 %v2334_v40  ;;  %v5317_v40 = vld [vmem:[%s9134_s9 + $0x60] sm:$0xf]  ;;  %v6182_v41 = vld [vmem:[%s9134_s9 + $0x74] sm:$0xf0]  ;;  %v6179_v42 = vld [vmem:[%s9134_s9 + $0x64] sm:$0xf]  ;;  %3193 = vmatpush.bf16.msra.mxu3 %v5534_v39  ;;  %v5426_v39 = vor.u32 %v6204_v35, %v5423_v36 }
 0x5fe   : > { %v5318_v51 = vor.u32 %v6182_v41, %v5317_v40  ;;  %v5322_v52 = vor.u32 %v6179_v42, %v5319_v44  ;;  %3220 = vmatpush.bf16.msrb.mxu1 %v5514_v54  ;;  %v5613_v40 = vld [vmem:[%s9134_s9 + $0x2a8] sm:$0xf]  ;;  %v6255_v41 = vld [vmem:[%s9134_s9 + $0x2bc] sm:$0xf0]  ;;  %v6252_v42 = vld [vmem:[%s9134_s9 + $0x2ac] sm:$0xf] }
 0x5ff   : > { %v5618_v44 = vor.u32 %v6252_v42, %v5615_v48  ;;  %v6246_v54 = vld [vmem:[%s9134_s9 + $0x27c] sm:$0xf]  ;;  %v5303_v36 = vld [vmem:[%s9134_s9 + $0x50] sm:$0xf0] }
 0x600   : > { %3181 = vmatpush.bf16.msra.mxu2 %v5318_v51  ;;  %3207 = vmatpush.bf16.msrb.mxu0 %v5322_v52  ;;  %v5589_v52 = vld [vmem:[%s9134_s9 + $0x278] sm:$0xf] }
 0x601   : > { %3194 = vmatpush.bf16.msra.mxu3 %v5510_v53  ;;  %v6249_v53 = vld [vmem:[%s9134_s9 + $0x28c] sm:$0xf0] }
 0x602   : > { %3221 = vmatpush.bf16.msrb.mxu1 %v5490_v11  ;;  %v6186_v11 = vld [vmem:[%s9134_s9 + $0x9c] sm:$0xf] }
 0x604   : > { %3182 = vmatpush.bf16.msra.mxu2 %v5294_v3  ;;  %v5565_v3 = vld [vmem:[%s9134_s9 + $0x248] sm:$0xf] }
 0x605   : > { %3195 = vmatpush.bf16.msra.mxu3 %v5486_v9  ;;  %v5349_v9 = vld [vmem:[%s9134_s9 + $0x98] sm:$0xf] }
 0x606   : > { %3222 = vmatpush.bf16.msrb.mxu1 %v5466_v28  ;;  %v5350_v13 = vor.u32 %v6189_v10, %v5349_v9  ;;  %v5518_v28 = vor.u32 %v6231_v27, %v5517_v26  ;;  %v5621_v9 = vld [vmem:[%s9134_s9 + $0x2b0] sm:$0xf]  ;;  %v6256_v10 = vld [vmem:[%s9134_s9 + $0x2c4] sm:$0xf0] }
 0x608   : > { %3183 = vmatpush.bf16.msra.mxu2 %v5270_v15  ;;  %v5354_v15 = vor.u32 %v6186_v11, %v5351_v14  ;;  %v6253_v11 = vld [vmem:[%s9134_s9 + $0x2b4] sm:$0xf]  ;;  %v5622_v14 = vor.u32 %v6256_v10, %v5621_v9  ;;  %v5431_v10 = vld [vmem:[%s9134_s9 + $0x148] sm:$0xf0] }
 0x609   : > { %3196 = vmatpush.bf16.msra.mxu3 %v5462_v25  ;;  %v2485_v25 = vld [vmem:[%s8220_s24] sm:$0xff]  ;;  %v6205_v9 = vld [vmem:[%s9134_s9 + $0x134] sm:$0xf] }
 0x60a   : > { %3267 = vmatpush.bf16.msra.mxu1 %v5642_v33  ;;  %v8241_v56 = vpack.c.bf16 %v2485_v25, %v2485_v25  ;;  %v6177_v33 = vld [vmem:[%s9134_s9 + $0x4c] sm:$0xf0]  ;;  %v5575_v25 = vld [vmem:[%s9134_s9 + $0x268] sm:$0xf0] }
 0x60b   : > { %v5302_v35 = vor.u32 %v6177_v33, %v5301_v32  ;;  %v5551_v33 = vld [vmem:[%s9134_s9 + $0x238] sm:$0xf0] }
 0x60c   : > { %3228 = vmatpush.bf16.msrb.mxu2 %v5446_v38  ;;  %v6183_v38 = vld [vmem:[%s9134_s9 + $0x7c] sm:$0xf0]  ;;  %3197 = vmatmul.bf16.vlgmr.msra.gmra.mxu3 %v8241_v56 }
 0x60d   : > { %3241 = vmatpush.bf16.msrb.mxu3 %v5638_v29  ;;  %v5326_v22 = vor.u32 %v6183_v38, %v5325_v60  ;;  %v6228_v29 = vld [vmem:[%s9134_s9 + $0x1ec] sm:$0xf]  ;;  %3223 = vmatmul.bf16.vlgmr.msrb.gmra.mxu1 %v8241_v56  ;;  %v5573_v38 = vld [vmem:[%s9134_s9 + $0x250] sm:$0xf] }
 0x60e   : > { %3268 = vmatpush.bf16.msra.mxu1 %v5618_v44  ;;  %v5522_v31 = vor.u32 %v6228_v29, %v5519_v30  ;;  %v6238_v29 = vld [vmem:[%s9134_s9 + $0x234] sm:$0xf0]  ;;  %v6235_v30 = vld [vmem:[%s9134_s9 + $0x224] sm:$0xf] }
 0x610   : > { %3229 = vmatpush.bf16.msrb.mxu2 %v5422_v37  ;;  %v5306_v37 = vor.u32 %v6174_v34, %v5303_v36  ;;  %v5554_v34 = vor.u32 %v6235_v30, %v5551_v33  ;;  %v5525_v36 = vld [vmem:[%s9134_s9 + $0x1f0] sm:$0xf]  ;;  %v5335_v33 = vld [vmem:[%s9134_s9 + $0x88] sm:$0xf0] }
 0x611   : > { %v5333_v30 = vld [vmem:[%s9134_s9 + $0x70] sm:$0xf] }
 0x614   : > { %3230 = vmatpush.bf16.msrb.mxu2 %v5398_v49 }
 0x673   : > { %v2441_v43 = vpop.f32.mrf.mxu0 }
 0x674   : > { %v2442_v57 = vadd.f32 %v2441_v43, %v2335_v50  ;;  %v5614_v43 = vor.u32 %v6255_v41, %v5613_v40  ;;  %v5399_v50 = vld [vmem:[%s9134_s9 + $0x110] sm:$0xf0]  ;;  %v6225_v40 = vld [vmem:[%s9134_s9 + $0x1cc] sm:$0xf0]  ;;  %v6222_v41 = vld [vmem:[%s9134_s9 + $0x1bc] sm:$0xf] }
 0x675   : > { %v5402_v51 = vor.u32 %v6198_v47, %v5399_v50  ;;  %v6168_v47 = vld [vmem:[%s9134_s9 + $0xc] sm:$0xf]  ;;  %v5278_v50 = vor.u32 %v6171_v46, %v5277_v45 }
 0x676   : > { %3242 = vmatpush.bf16.msrb.mxu3 %v5614_v43  ;;  %v5495_v43 = vld [vmem:[%s9134_s9 + $0x1d0] sm:$0xf0] }
 0x677   : > { %v5498_v44 = vor.u32 %v6222_v41, %v5495_v43 }
 0x67a   : > { %v2454_v58 = vpop.f32.mrf.mxu1 }
 0x67b   : > { %v2455_v61 = vadd.f32 %v2454_v58, %v2442_v57  ;;  %v2443_v62 = vpop.f32.mrf.mxu0  ;;  %v5590_v57 = vor.u32 %v6249_v53, %v5589_v52  ;;  %v5591_v58 = vld [vmem:[%s9134_s9 + $0x290] sm:$0xf0] }
 0x67c   : > { %v5373_v62 = vld [vmem:[%s9134_s9 + $0xc8] sm:$0xf] }
 0x67d   : > { %v8043_v63 = vadd.f32 %v7635_v59, %v2455_v61  ;;  %v6173_v59 = vld [vmem:[%s9134_s9 + $0x34] sm:$0xf]  ;;  %v5594_v61 = vor.u32 %v6246_v54, %v5591_v58  ;;  %3243 = vmatpush.bf16.msrb.mxu3 %v5590_v57  ;;  %v5469_v58 = vld [vmem:[%s9134_s9 + $0x188] sm:$0xf] }
 0x67e   : > { %v5298_v5 = vor.u32 %v6173_v59, %v5295_v4  ;;  %v6243_v4 = vld [vmem:[%s9134_s9 + $0x25c] sm:$0xf0] }
 0x67f   : > { %2459 = vadd.xlane.f32.xlu2 %v8043_v63  ;;  %v2462_v12 = vmul.f32 %v8043_v63, %v8043_v63  ;;  %3269 = vmatpush.bf16.msra.mxu1 %v5594_v61  ;;  %v5566_v6 = vor.u32 %v6243_v4, %v5565_v3  ;;  %v6219_v61 = vld [vmem:[%s9134_s9 + $0x19c] sm:$0xf0]  ;;  %v6262_v3 = vld [vmem:[%s9134_s9 + $0x2f4] sm:$0xf0]  ;;  %v6259_v4 = vld [vmem:[%s9134_s9 + $0x2e4] sm:$0xf] }
 0x680   : > { %3208 = vmatpush.bf16.msrb.mxu0 %v5298_v5  ;;  %v6240_v5 = vld [vmem:[%s9134_s9 + $0x24c] sm:$0xf] }
 0x681   : > { %2463 = vadd.xlane.f32.xlu1 %v2462_v12  ;;  %v6195_v12 = vld [vmem:[%s9134_s9 + $0xdc] sm:$0xf0]  ;;  %v5570_v8 = vor.u32 %v6240_v5, %v5567_v7  ;;  %3244 = vmatpush.bf16.msrb.mxu3 %v5566_v6  ;;  %v5647_v5 = vld [vmem:[%s9134_s9 + $0x2f8] sm:$0xf0] }
 0x682   : > { %v2456_v0 = vpop.f32.mrf.mxu1  ;;  %v5374_v1 = vor.u32 %v6195_v12, %v5373_v62  ;;  %v5470_v62 = vor.u32 %v6219_v61, %v5469_v58  ;;  %v6216_v12 = vld [vmem:[%s9134_s9 + $0x18c] sm:$0xf]  ;;  %v5650_v7 = vor.u32 %v6259_v4, %v5647_v5  ;;  %v6214_v58 = vld [vmem:[%s9134_s9 + $0x174] sm:$0xf0]  ;;  %v6211_v61 = vld [vmem:[%s9134_s9 + $0x164] sm:$0xf] }
 0x683   : > { %v6192_v0 = vld [vmem:[%s9134_s9 + $0xcc] sm:$0xf]  ;;  %3270 = vmatpush.bf16.msra.mxu1 %v5570_v8  ;;  %v5429_v5 = vld [vmem:[%s9134_s9 + $0x130] sm:$0xf] }
 0x684   : > { %3209 = vmatpush.bf16.msrb.mxu0 %v5274_v18  ;;  %v5378_v59 = vor.u32 %v6192_v0, %v5375_v2  ;;  %3231 = vmatpush.bf16.msrb.mxu2 %v5374_v1  ;;  %v5542_v18 = vor.u32 %v6237_v55, %v5541_v16  ;;  %v5471_v0 = vld [vmem:[%s9134_s9 + $0x1a0] sm:$0xf0]  ;;  %v5645_v1 = vld [vmem:[%s9134_s9 + $0x2e0] sm:$0xf]  ;;  %v6250_v55 = vld [vmem:[%s9134_s9 + $0x294] sm:$0xf0] }
 0x685   : > { %v5646_v6 = vor.u32 %v6262_v3, %v5645_v1  ;;  %v5597_v16 = vld [vmem:[%s9134_s9 + $0x280] sm:$0xf]  ;;  %v5477_v1 = vld [vmem:[%s9134_s9 + $0x190] sm:$0xf] }
 0x686   : > { %3245 = vmatpush.bf16.msrb.mxu3 %v5542_v18  ;;  %v5598_v18 = vor.u32 %v6250_v55, %v5597_v16  ;;  %v5405_v16 = vld [vmem:[%s9134_s9 + $0x100] sm:$0xf]  ;;  %v6202_v55 = vld [vmem:[%s9134_s9 + $0x114] sm:$0xf0] }
 0x687   : > { %3271 = vmatpush.bf16.msra.mxu1 %v5546_v20  ;;  %v5602_v20 = vor.u32 %v6247_v17, %v5599_v19  ;;  %v6199_v17 = vld [vmem:[%s9134_s9 + $0x104] sm:$0xf]  ;;  %v5406_v19 = vor.u32 %v6202_v55, %v5405_v16 }
 0x688   : > { %3254 = vmatpush.bf16.msra.mxu0 %v5450_v21  ;;  %3232 = vmatpush.bf16.msrb.mxu2 %v5350_v13  ;;  %v6180_v21 = vld [vmem:[%s9134_s9 + $0x6c] sm:$0xf] }
 0x689   : > { %v5330_v24 = vor.u32 %v6180_v21, %v5327_v23  ;;  %v5623_v13 = vld [vmem:[%s9134_s9 + $0x2c8] sm:$0xf0]  ;;  %v6244_v21 = vld [vmem:[%s9134_s9 + $0x264] sm:$0xf0] }
 0x68a   : > { %3246 = vmatpush.bf16.msrb.mxu3 %v5518_v28  ;;  %v5549_v28 = vld [vmem:[%s9134_s9 + $0x220] sm:$0xf] }
 0x68b   : > { %3272 = vmatpush.bf16.msra.mxu1 %v5522_v31  ;;  %v5550_v32 = vor.u32 %v6238_v29, %v5549_v28 }
 0x68c   : > { %3255 = vmatpush.bf16.msra.mxu0 %v5426_v39  ;;  %3233 = vmatpush.bf16.msrb.mxu2 %v5326_v22  ;;  %v5493_v39 = vld [vmem:[%s9134_s9 + $0x1b8] sm:$0xf]  ;;  %v6241_v22 = vld [vmem:[%s9134_s9 + $0x254] sm:$0xf] }
 0x68d   : > { %v5494_v42 = vor.u32 %v6225_v40, %v5493_v39  ;;  %v5578_v26 = vor.u32 %v6241_v22, %v5575_v25  ;;  %v6229_v39 = vld [vmem:[%s9134_s9 + $0x1f4] sm:$0xf]  ;;  %v5383_v22 = vld [vmem:[%s9134_s9 + $0xe8] sm:$0xf0]  ;;  %v5357_v25 = vld [vmem:[%s9134_s9 + $0xa0] sm:$0xf] }
 0x68f   : > { %3247 = vmatpush.bf16.msrb.mxu3 %v5494_v42  ;;  %3273 = vmatpush.bf16.msra.mxu1 %v5498_v44  ;;  %v5527_v42 = vld [vmem:[%s9134_s9 + $0x208] sm:$0xf0] }
 0x690   : > { %3256 = vmatpush.bf16.msra.mxu0 %v5402_v51  ;;  %3234 = vmatpush.bf16.msrb.mxu2 %v5302_v35  ;;  %v5279_v51 = vld [vmem:[%s9134_s9 + $0x20] sm:$0xf0]  ;;  %v5530_v45 = vor.u32 %v6229_v39, %v5527_v42 }
 0x691   : > { %v5282_v53 = vor.u32 %v6168_v47, %v5279_v51  ;;  %v5501_v51 = vld [vmem:[%s9134_s9 + $0x1c0] sm:$0xf]  ;;  %v6175_v39 = vld [vmem:[%s9134_s9 + $0x44] sm:$0xf] }
 0x693   : > { %3248 = vmatpush.bf16.msrb.mxu3 %v5470_v62  ;;  %v5455_v62 = vld [vmem:[%s9134_s9 + $0x178] sm:$0xf0] }
 0x694   : > { %3257 = vmatpush.bf16.msra.mxu0 %v5378_v59  ;;  %3235 = vmatpush.bf16.msrb.mxu2 %v5278_v50  ;;  %v5474_v59 = vor.u32 %v6216_v12, %v5471_v0  ;;  %v5458_v4 = vor.u32 %v6211_v61, %v5455_v62 }
 0x696   : > { %3274 = vmatpush.bf16.msra.mxu1 %v5474_v59  ;;  %3249 = vmatmul.bf16.vlgmr.msrb.gmra.mxu3 %v8241_v56  ;;  %v6217_v59 = vld [vmem:[%s9134_s9 + $0x194] sm:$0xf] }
 0x697   : > { %3293 = vmatpush.bf16.msra.mxu3 %v5646_v6  ;;  %v5479_v6 = vld [vmem:[%s9134_s9 + $0x1a8] sm:$0xf0] }
 0x698   : > { %3258 = vmatpush.bf16.msra.mxu0 %v5354_v15  ;;  %v5626_v15 = vor.u32 %v6253_v11, %v5623_v13  ;;  %v5482_v13 = vor.u32 %v6217_v59, %v5479_v6 }
 0x699   : > { %3275 = vmatmul.bf16.vlgmr.msra.gmra.mxu1 %v8241_v56 }
 0x69a   : > { %3319 = vmatpush.bf16.msrb.mxu1 %v5650_v7 }
 0x69b   : > { %3294 = vmatpush.bf16.msra.mxu3 %v5622_v14 }
 0x69c   : > { %3259 = vmatpush.bf16.msra.mxu0 %v5330_v24  ;;  %v5574_v24 = vor.u32 %v6244_v21, %v5573_v38  ;;  %v6196_v38 = vld [vmem:[%s9134_s9 + $0xe4] sm:$0xf0]  ;;  %v6193_v21 = vld [vmem:[%s9134_s9 + $0xd4] sm:$0xf] }
 0x69e   : > { %3320 = vmatpush.bf16.msrb.mxu1 %v5626_v15  ;;  %v5434_v15 = vor.u32 %v6205_v9, %v5431_v10 }
 0x69f   : > { %3295 = vmatpush.bf16.msra.mxu3 %v5598_v18  ;;  %v5407_v18 = vld [vmem:[%s9134_s9 + $0x118] sm:$0xf0] }
 0x6a0   : > { %3260 = vmatpush.bf16.msra.mxu0 %v5306_v37  ;;  %v6232_v37 = vld [vmem:[%s9134_s9 + $0x204] sm:$0xf0] }
 0x6a1   : > { %v5526_v41 = vor.u32 %v6232_v37, %v5525_v36  ;;  %v5309_v36 = vld [vmem:[%s9134_s9 + $0x40] sm:$0xf]  ;;  %v6178_v37 = vld [vmem:[%s9134_s9 + $0x54] sm:$0xf0] }
 0x6a2   : > { %3321 = vmatpush.bf16.msrb.mxu1 %v5602_v20  ;;  %v5410_v20 = vor.u32 %v6199_v17, %v5407_v18 }
 0x6a3   : > { %3296 = vmatpush.bf16.msra.mxu3 %v5574_v24  ;;  %v5386_v24 = vor.u32 %v6193_v21, %v5383_v22 }
 0x6a4   : > { %3261 = vmatpush.bf16.msra.mxu0 %v5282_v53 }
 0x6a6   : > { %3322 = vmatpush.bf16.msrb.mxu1 %v5578_v26  ;;  %v6190_v26 = vld [vmem:[%s9134_s9 + $0xb4] sm:$0xf0] }
 0x6a7   : > { %3297 = vmatpush.bf16.msra.mxu3 %v5550_v32  ;;  %v5358_v28 = vor.u32 %v6190_v26, %v5357_v25  ;;  %v6181_v32 = vld [vmem:[%s9134_s9 + $0x74] sm:$0xf] }
 0x6aa   : > { %3323 = vmatpush.bf16.msrb.mxu1 %v5554_v34 }
 0x6ab   : > { %3298 = vmatpush.bf16.msra.mxu3 %v5526_v41  ;;  %v5310_v41 = vor.u32 %v6178_v37, %v5309_v36 }
 0x6ae   : > { %3324 = vmatpush.bf16.msrb.mxu1 %v5530_v45  ;;  %v5287_v45 = vld [vmem:[%s9134_s9 + $0x28] sm:$0xf0] }
 0x6f2   : > { %v2460_v48 = vpop.xlane.xlu2 %2459 }
 0x6f3   : > { %v8284_v49 = vmul.f32 0.0078125, %v2460_v48  ;;  %v6489_v48 = vld [vmem:[%s9133_s8] sm:$0xff] }
 0x6f4   : > { %v2464_v52 = vpop.xlane.xlu1 %2463  ;;  %v2481_v44 = vperm.slane %v6489_v48, 5  ;;  %v2483_v46 = vperm.slane %v6489_v48, 6  ;;  %v6172_v48 = vld [vmem:[%s9134_s9 + $0x24] sm:$0xf0] }
 0x6f5   : > { %v2466_v54 = vmul.f32 %v8284_v49, %v8284_v49  ;;  %v2465_v57 = vmul.f32 0.0078125, %v2464_v52  ;;  %v2468_v43 = vsub.f32 %v8043_v63, %v8284_v49  ;;  %v6226_v52 = vld [vmem:[%s9134_s9 + $0x1d4] sm:$0xf0]  ;;  %v6223_v63 = vld [vmem:[%s9134_s9 + $0x1c4] sm:$0xf] }
 0x6f6   : > { %v5453_v49 = vld [vmem:[%s9134_s9 + $0x160] sm:$0xf]  ;;  %v5502_v53 = vor.u32 %v6226_v52, %v5501_v51  ;;  %v3224_v51 = vpop.f32.mrf.mxu1 }
 0x6f7   : > { %v2467_v2 = vsub.f32 %v2465_v57, %v2466_v54  ;;  %v5503_v54 = vld [vmem:[%s9134_s9 + $0x1d8] sm:$0xf0]  ;;  %v5454_v3 = vor.u32 %v6214_v58, %v5453_v49  ;;  %v2582_v58 = vld [vmem:[%s9135_s10] sm:$0x3f] }
 0x6f8   : > { %v5506_v12 = vor.u32 %v6223_v63, %v5503_v54  ;;  %3299 = vmatpush.bf16.msra.mxu3 %v5502_v53  ;;  %v2685_v62 = vperm.slane %v2582_v58, 1  ;;  %v2686_v16 = vperm.slane %v2582_v58, 2 }
 0x6f9   : > { %v2469_v8 = vadd.f32 1e-05, %v2467_v2  ;;  %v6220_v2 = vld [vmem:[%s9134_s9 + $0x1a4] sm:$0xf0] }
 0x6fa   : > { %3325 = vmatpush.bf16.msrb.mxu1 %v5506_v12  ;;  %v5478_v11 = vor.u32 %v6220_v2, %v5477_v1  ;;  %v2684_v12 = vperm.slane %v2582_v58, 0 }
 0x6fb   : > { %6449 = vrsqrt.f32 %v2469_v8  ;;  %vm2476_vm9 = vweird.f32 %v2469_v8 }
 0x6fc   : > { %3300 = vmatpush.bf16.msra.mxu3 %v5478_v11 }
 0x6fe   : > { %3326 = vmatpush.bf16.msrb.mxu1 %v5482_v13  ;;  %v3226_v63 = vpop.f32.mrf.mxu1 }
 0x6ff   : > { %3301 = vmatmul.bf16.vlgmr.msra.gmra.mxu3 %v8241_v56 }
 0x701   : > { %v6450_v60 = vpop.eup %6449  ;;  %3327 = vmatmul.bf16.vlgmr.msrb.gmra.mxu1 %v8241_v56  ;;  %v5359_v56 = vld [vmem:[%s9134_s9 + $0xb8] sm:$0xf0] }
 0x702   : > { %v2471_v23 = vmul.f32 %v6450_v60, %v2469_v8  ;;  %vm2477_vm8 = vweird.f32 %v6450_v60  ;;  %v6208_v8 = vld [vmem:[%s9134_s9 + $0x144] sm:$0xf0] }
 0x703   : > { %vm2478_vm10 = vmor %vm2476_vm9, %vm2477_vm8  ;;  %v5430_v14 = vor.u32 %v6208_v8, %v5429_v5 }
 0x704   : > { %v2472_v27 = vmul.f32 %v6450_v60, %v2471_v23 }
 0x706   : > { %v2473_v31 = vmul.f32 0.5, %v2472_v27  ;;  %v6187_v27 = vld [vmem:[%s9134_s9 + $0xa4] sm:$0xf] }
 0x707   : > { %v5362_v29 = vor.u32 %v6187_v27, %v5359_v56  ;;  %v2689_v27 = vperm.slane %v2582_v58, 5  ;;  %v2688_v56 = vperm.slane %v2582_v58, 4 }
 0x708   : > { %v2474_v35 = vsub.f32 1.5, %v2473_v31  ;;  %v6184_v31 = vld [vmem:[%s9134_s9 + $0x84] sm:$0xf0] }
 0x709   : > { %v5334_v34 = vor.u32 %v6184_v31, %v5333_v30 }
 0x70a   : > { %v2475_v40 = vmul.f32 %v6450_v60, %v2474_v35  ;;  %v5338_v35 = vor.u32 %v6181_v32, %v5335_v33 }
 0x70c   : > { %v2479_v47 = vsel %vm2478_vm10, %v6450_v60, %v2475_v40  ;;  %v5381_v60 = vld [vmem:[%s9134_s9 + $0xd0] sm:$0xf]  ;;  %v5311_v40 = vld [vmem:[%s9134_s9 + $0x58] sm:$0xf0] }
 0x70d   : > { %v2480_v50 = vmul.f32 %v2479_v47, %v2468_v43  ;;  %v5382_v23 = vor.u32 %v6196_v38, %v5381_v60  ;;  %v5314_v42 = vor.u32 %v6175_v39, %v5311_v40  ;;  %v5285_v43 = vld [vmem:[%s9134_s9 + $0x10] sm:$0xf] }
 0x70f   : > { %v2482_v57 = vmul.f32 %v2481_v44, %v2480_v50  ;;  %v6169_v44 = vld [vmem:[%s9134_s9 + $0x14] sm:$0xf]  ;;  %v3198_v50 = vpop.f32.mrf.mxu3 }
 0x710   : > { %v5290_v47 = vor.u32 %v6169_v44, %v5287_v45 }
 0x711   : > { %v8406_v0 = vadd.f32 %v2483_v46, %v2482_v57  ;;  %v5286_v46 = vor.u32 %v6172_v48, %v5285_v43 }
 0x713   : > { %v8425_v7 = vpack.c.bf16 %v8406_v0, %v8406_v0 }
 0x715   : > { %3184 = vmatmul.bf16.vlgmr.msra.gmra.mxu2 %v8425_v7  ;;  %3210 = vmatmul.bf16.vlgmr.msrb.gmra.mxu0 %v8425_v7 }
 0x716   : > { %3280 = vmatpush.bf16.msra.mxu2 %v5454_v3  ;;  %3306 = vmatpush.bf16.msrb.mxu0 %v5458_v4  ;;  %v3276_v53 = vpop.f32.mrf.mxu1 }
 0x717   : > { %v3200_v52 = vpop.f32.mrf.mxu3 }
 0x71a   : > { %3281 = vmatpush.bf16.msra.mxu2 %v5430_v14  ;;  %3307 = vmatpush.bf16.msrb.mxu0 %v5434_v15  ;;  %v2687_v15 = vperm.slane %v2582_v58, 3 }
 0x71e   : > { %3282 = vmatpush.bf16.msra.mxu2 %v5406_v19  ;;  %3308 = vmatpush.bf16.msrb.mxu0 %v5410_v20  ;;  %v3278_v57 = vpop.f32.mrf.mxu1 }
 0x71f   : > { %v3250_v49 = vpop.f32.mrf.mxu3 }
 0x722   : > { %3283 = vmatpush.bf16.msra.mxu2 %v5382_v23  ;;  %3309 = vmatpush.bf16.msrb.mxu0 %v5386_v24 }
 0x725   : > { %3236 = vmatmul.bf16.vlgmr.msrb.gmra.mxu2 %v8425_v7  ;;  %3262 = vmatmul.bf16.vlgmr.msra.gmra.mxu0 %v8425_v7 }
 0x726   : > { %3284 = vmatpush.bf16.msra.mxu2 %v5358_v28  ;;  %3310 = vmatpush.bf16.msrb.mxu0 %v5362_v29 }
 0x727   : > { %v3252_v54 = vpop.f32.mrf.mxu3 }
 0x72a   : > { %3285 = vmatpush.bf16.msra.mxu2 %v5334_v34  ;;  %3311 = vmatpush.bf16.msrb.mxu0 %v5338_v35 }
 0x72e   : > { %3286 = vmatpush.bf16.msra.mxu2 %v5310_v41  ;;  %3312 = vmatpush.bf16.msrb.mxu0 %v5314_v42 }
 0x732   : > { %3287 = vmatpush.bf16.msra.mxu2 %v5286_v46  ;;  %3313 = vmatpush.bf16.msrb.mxu0 %v5290_v47 }
 0x735   : > { %3288 = vmatmul.bf16.vlgmr.msra.gmra.mxu2 %v8425_v7  ;;  %3314 = vmatmul.bf16.vlgmr.msrb.gmra.mxu0 %v8425_v7 }
 0x77e   : > { %v3328_v59 = vpop.f32.mrf.mxu1 }
 0x782   : > { %v3302_v8 = vpop.f32.mrf.mxu3 }
 0x786   : > { %v3330_v11 = vpop.f32.mrf.mxu1 }
 0x78a   : > { %v3304_v55 = vpop.f32.mrf.mxu3 }
 0x792   : > { %v3211_v61 = vpop.f32.mrf.mxu0 }
 0x793   : > { %v3212_v1 = vadd.f32 %v3211_v61, %v2685_v62 }
 0x795   : > { %v3225_v5 = vadd.f32 %v3224_v51, %v3212_v1 }
 0x798   : > { %v3185_v2 = vpop.f32.mrf.mxu2 }
 0x799   : > { %v3186_v3 = vadd.f32 %v3185_v2, %v2684_v12 }
 0x79a   : > { %v3213_v4 = vpop.f32.mrf.mxu0 }
 0x79b   : > { %v3199_v6 = vadd.f32 %v3198_v50, %v3186_v3 }
 0x79d   : > { %v3332_v7 = vpack.c.bf16 %v3225_v5, %v3199_v6 }
 0x79f   : > { %v3386_v9 = vunpack.c.l.b16 %v3332_v7  ;;  %v3562_v28 = vunpack.c.h.b16 %v3332_v7 }
 0x7a0   : > { %v3187_v10 = vpop.f32.mrf.mxu2 }
 0x7a1   : > { %v3387_v13 = vpack.c.b16 %v3386_v9, %v3386_v9  ;;  %v3563_v33 = vpack.c.b16 %v3562_v28, %v3562_v28 }
 0x7a2   : > { %v3263_v14 = vpop.f32.mrf.mxu0 }
 0x7a3   : > { %3388 = vrot.lane.b32.xlu1 %v3387_v13, %s9169_s25  ;;  %v3264_v17 = vadd.f32 %v3263_v14, %v2687_v15 }
 0x7a5   : > { %v3277_v60 = vadd.f32 %v3276_v53, %v3264_v17 }
 0x7a8   : > { %v3237_v18 = vpop.f32.mrf.mxu2 }
 0x7a9   : > { %v3238_v19 = vadd.f32 %v3237_v18, %v2686_v16 }
 0x7aa   : > { %v3265_v20 = vpop.f32.mrf.mxu0 }
 0x7ab   : > { %v3251_v38 = vadd.f32 %v3250_v49, %v3238_v19 }
 0x7ad   : > { %v3333_v21 = vpack.c.bf16 %v3277_v60, %v3251_v38 }
 0x7af   : > { %v3339_v22 = vsel %vm1376_vm0, %v3333_v21, 0  ;;  %v3391_v23 = vunpack.c.l.b16 %v3333_v21  ;;  %v3564_v37 = vunpack.c.h.b16 %v3333_v21 }
 0x7b0   : > { %v3239_v24 = vpop.f32.mrf.mxu2  ;;  %3348 = vmatpush.bf16.xpose.msrb.mxu2 %v3339_v22 }
 0x7b1   : > { %v3392_v25 = vpack.c.b16 %v3391_v23, %v3391_v23  ;;  %v3565_v41 = vpack.c.b16 %v3564_v37, %v3564_v37 }
 0x7b2   : > { %v3315_v26 = vpop.f32.mrf.mxu0 }
 0x7b3   : > { %3508 = vrot.lane.b32.xlu2 %v3392_v25, %s9170_s20  ;;  %3393 = vrot.lane.b32.xlu0 %v3392_v25, %s9169_s25  ;;  %v3316_v29 = vadd.f32 %v3315_v26, %v2689_v27  ;;  %v3570_v50 = vsel %vm1376_vm0, %v3565_v41, 0 }
 0x7b4   : > { %3452 = vrot.lane.b32.xlu1 %v3392_v25, %s9168_s1 }
 0x7b5   : > { %v3329_v34 = vadd.f32 %v3328_v59, %v3316_v29 }
 0x7b7   : > { %5651 = vmatmul.msk.bf16.vlgmr.msrb.gmra.mxu2 %vm1376_vm0, %v3332_v7 }
 0x7b8   : > { %v3289_v30 = vpop.f32.mrf.mxu2 }
 0x7b9   : > { %v3290_v31 = vadd.f32 %v3289_v30, %v2688_v56 }
 0x7ba   : > { %v3317_v32 = vpop.f32.mrf.mxu0 }
 0x7bb   : > { %v3303_v35 = vadd.f32 %v3302_v8, %v3290_v31  ;;  %3450 = vrot.lane.b32.xlu2 %v3387_v13, %s9168_s1  ;;  %3506 = vrot.lane.b32.xlu0 %v3387_v13, %s9170_s20 }
 0x7bc   : > { %3618 = vrot.lane.b32.xlu1 %v3563_v33, %s9169_s25 }
 0x7bd   : > { %v8528_v36 = vpack.c.bf16 %v3329_v34, %v3303_v35 }
 0x7bf   : > { %v3370_v39 = vsel %vm1412_vm2, %v8528_v36, 0  ;;  %v3427_v22 = vunpack.c.l.b16 %v8528_v36 }
 0x7c0   : > { %v3291_v40 = vpop.f32.mrf.mxu2  ;;  %3379 = vmatpush.bf16.msrb.mxu3 %v3370_v39 }
 0x7c1   : > { %v3428_v24 = vpack.c.b16 %v3427_v22, %v3427_v22 }
 0x7c3   : > { %3730 = vrot.lane.b32.xlu2 %v3563_v33, %s9170_s20  ;;  %3620 = vrot.lane.b32.xlu0 %v3565_v41, %s9169_s25 }
 0x7c4   : > { %3676 = vrot.lane.b32.xlu1 %v3565_v41, %s9168_s1 }
 0x7cb   : > { %3732 = vrot.lane.b32.xlu0 %v3565_v41, %s9170_s20 }
 0x7d3   : > { %3674 = vrot.lane.b32.xlu0 %v3563_v33, %s9168_s1 }
 0x80d   : > { %v3509_v43 = vpop.permute.xlu2 %3508 }
 0x80e   : > { %v3514_v46 = vsel %vm1376_vm0, %v3509_v43, 0 }
 0x815   : > { %v3389_v42 = vpop.permute.xlu1 %3388  ;;  %v3451_v52 = vpop.permute.xlu2 %3450 }
 0x81d   : > { %v3731_v59 = vpop.permute.xlu2 %3730 }
 0x825   : > { %v3394_v48 = vpop.permute.xlu0 %3393 }
 0x826   : > { %v3399_v44 = vsel %vm1376_vm0, %v3394_v48, 0  ;;  %v3453_v45 = vpop.permute.xlu1 %3452 }
 0x827   : > { %v3458_v47 = vsel %vm1376_vm0, %v3453_v45, 0  ;;  %3408 = vmatpush.bf16.xpose.msra.mxu2 %v3399_v44 }
 0x828   : > { %3467 = vmatpush.bf16.xpose.msra.mxu0 %v3458_v47 }
 0x82d   : > { %v3507_v51 = vpop.permute.xlu0 %3506 }
 0x82e   : > { %v3619_v63 = vpop.permute.xlu1 %3618  ;;  %5653 = vmatmul.msk.bf16.vlgmr.msra.gmra.mxu2 %vm1376_vm0, %v3389_v42 }
 0x82f   : > { %3523 = vmatpush.bf16.xpose.msrb.mxu2 %v3514_v46  ;;  %5655 = vmatmul.msk.bf16.vlgmr.msra.gmra.mxu0 %vm1376_vm0, %v3451_v52 }
 0x830   : > { %3579 = vmatpush.bf16.xpose.msrb.mxu0 %v3570_v50 }
 0x835   : > { %v3621_v49 = vpop.permute.xlu0 %3620 }
 0x836   : > { %v3626_v53 = vsel %vm1376_vm0, %v3621_v49, 0  ;;  %v3677_v54 = vpop.permute.xlu1 %3676 }
 0x837   : > { %v3682_v57 = vsel %vm1376_vm0, %v3677_v54, 0  ;;  %3635 = vmatpush.bf16.xpose.msra.mxu2 %v3626_v53 }
 0x838   : > { %3691 = vmatpush.bf16.xpose.msra.mxu0 %v3682_v57 }
 0x83a   : > { %v3350_v58 = vpop.f32.mrf.mxu2 }
 0x83b   : > { %v3354_v61 = vsel %vm1396_vm1, %v3350_v58, -inf }
 0x83c   : > { %3355 = vmax.xlane.f32.xlu2 %v3354_v61 }
 0x83d   : > { %v3733_v62 = vpop.permute.xlu0 %3732 }
 0x83e   : > { %v3738_v12 = vsel %vm1376_vm0, %v3733_v62, 0  ;;  %5657 = vmatmul.msk.bf16.vlgmr.msrb.gmra.mxu2 %vm1376_vm0, %v3507_v51 }
 0x83f   : > { %5659 = vmatmul.msk.bf16.vlgmr.msrb.gmra.mxu0 %vm1376_vm0, %v3563_v33  ;;  %3747 = vmatpush.bf16.xpose.msrb.mxu2 %v3738_v12 }
 0x842   : > { %v3352_v1 = vpop.f32.mrf.mxu2 }
 0x845   : > { %v3675_v2 = vpop.permute.xlu0 %3674 }
 0x84e   : > { %5661 = vmatmul.msk.bf16.vlgmr.msra.gmra.mxu2 %vm1376_vm0, %v3619_v63  ;;  %v3597_v63 = vunpack.c.h.b16 %v8528_v36 }
 0x84f   : > { %5663 = vmatmul.msk.bf16.vlgmr.msra.gmra.mxu0 %vm1376_vm0, %v3675_v2 }
 0x850   : > { %v3598_v57 = vpack.c.b16 %v3597_v63, %v3597_v63 }
 0x852   : > { %v3603_v36 = vsel %vm1412_vm2, %v3598_v57, 0 }
 0x85e   : > { %5665 = vmatmul.msk.bf16.vlgmr.msrb.gmra.mxu2 %vm1376_vm0, %v3731_v59 }
 0x8ac   : > { %v3469_v3 = vpop.f32.mrf.mxu0 }
 0x8ad   : > { %v3473_v4 = vsel %vm1396_vm1, %v3469_v3, -inf }
 0x8ae   : > { %3474 = vmax.xlane.f32.xlu2 %v3473_v4 }
 0x8af   : > { %v3356_v5 = vpop.xlane.xlu2 %3355 }
 0x8b0   : > { %v3357_v6 = vsub.f32 %v3350_v58, %v3356_v5 }
 0x8b1   : > { %v3410_v7 = vpop.f32.mrf.mxu2 }
 0x8b2   : > { %v3358_v8 = vmul.f32 1.442695, %v3357_v6  ;;  %v3414_v9 = vsel %vm1396_vm1, %v3410_v7, -inf }
 0x8b3   : > { %3415 = vmax.xlane.f32.xlu1 %v3414_v9 }
 0x8b4   : > { %6451 = vpow2.f32 %v3358_v8  ;;  %v3471_v10 = vpop.f32.mrf.mxu0 }
 0x8b9   : > { %v3412_v11 = vpop.f32.mrf.mxu2 }
 0x8ba   : > { %v6452_v13 = vpop.eup %6451 }
 0x8bb   : > { %v3360_v14 = vsel %vm1396_vm1, %v6452_v13, 0.0 }
 0x8bc   : > { %v3581_v15 = vpop.f32.mrf.mxu0  ;;  %3361 = vadd.xlane.f32.xlu0 %v3360_v14 }
 0x8bd   : > { %v3585_v16 = vsel %vm1396_vm1, %v3581_v15, -inf }
 0x8be   : > { %3586 = vmax.xlane.f32.xlu2 %v3585_v16 }
 0x8c1   : > { %v3525_v55 = vpop.f32.mrf.mxu2 }
 0x8c2   : > { %v3529_v17 = vsel %vm1396_vm1, %v3525_v55, -inf }
 0x8c4   : > { %v3583_v18 = vpop.f32.mrf.mxu0  ;;  %3530 = vmax.xlane.f32.xlu0 %v3529_v17 }
 0x8c9   : > { %v3527_v19 = vpop.f32.mrf.mxu2 }
 0x8cc   : > { %v8557_v20 = vpop.f32.mrf.mxu0 }
 0x8cd   : > { %v3697_v60 = vsel %vm1396_vm1, %v8557_v20, -inf }
 0x8ce   : > { %3698 = vmax.xlane.f32.xlu2 %v3697_v60 }
 0x8d1   : > { %v3637_v38 = vpop.f32.mrf.mxu2 }
 0x8d2   : > { %v3641_v21 = vsel %vm1396_vm1, %v3637_v38, -inf }
 0x8d3   : > { %3642 = vmax.xlane.f32.xlu1 %v3641_v21 }
 0x8d4   : > { %v3695_v23 = vpop.f32.mrf.mxu0 }
 0x8d8   : > { %3541 = vrot.lane.b32.xlu0 %v3428_v24, %s9170_s20 }
 0x8d9   : > { %v3639_v25 = vpop.f32.mrf.mxu2 }
 0x8e1   : > { %v8564_v26 = vpop.f32.mrf.mxu2 }
 0x8e2   : > { %v3753_v27 = vsel %vm1396_vm1, %v8564_v26, -inf }
 0x8e3   : > { %3754 = vmax.xlane.f32.xlu1 %v3753_v27 }
 0x8e6   : > { %3485 = vrot.lane.b32.xlu2 %v3428_v24, %s9168_s1 }
 0x8e9   : > { %v3751_v56 = vpop.f32.mrf.mxu2 }
 0x8fc   : > { %3429 = vrot.lane.b32.xlu1 %v3428_v24, %s9169_s25 }
 0x921   : > { %v3475_v28 = vpop.xlane.xlu2 %3474 }
 0x922   : > { %v3476_v29 = vsub.f32 %v3469_v3, %v3475_v28 }
 0x924   : > { %v3477_v30 = vmul.f32 1.442695, %v3476_v29 }
 0x926   : > { %6453 = vpow2.f32 %v3477_v30  ;;  %v3416_v31 = vpop.xlane.xlu1 %3415 }
 0x927   : > { %v3417_v32 = vsub.f32 %v3410_v7, %v3416_v31 }
 0x929   : > { %v3418_v33 = vmul.f32 1.442695, %v3417_v32 }
 0x92b   : > { %6455 = vpow2.f32 %v3418_v33 }
 0x92c   : > { %v8570_v34 = vpop.eup %6453 }
 0x92d   : > { %v3479_v35 = vsel %vm1396_vm1, %v8570_v34, 0.0 }
 0x92e   : > { %3480 = vadd.xlane.f32.xlu2 %v3479_v35 }
 0x92f   : > { %v3362_v37 = vpop.xlane.xlu0 %3361 }
 0x930   : > { %6457 = vrcp.f32 %v3362_v37 }
 0x931   : > { %v8574_v39 = vpop.eup %6455  ;;  %v3587_v40 = vpop.xlane.xlu2 %3586 }
 0x932   : > { %v3588_v41 = vsub.f32 %v3581_v15, %v3587_v40  ;;  %v3420_v42 = vsel %vm1396_vm1, %v8574_v39, 0.0 }
 0x933   : > { %3421 = vadd.xlane.f32.xlu0 %v3420_v42 }
 0x934   : > { %v3589_v43 = vmul.f32 1.442695, %v3588_v41 }
 0x936   : > { %v6458_v48 = vpop.eup %6457  ;;  %6459 = vpow2.f32 %v3589_v43 }
 0x937   : > { %v3364_v44 = vmul.f32 %v6458_v48, %v6452_v13  ;;  %v3531_v45 = vpop.xlane.xlu0 %3530 }
 0x938   : > { %v3532_v46 = vsub.f32 %v3525_v55, %v3531_v45 }
 0x939   : > { %v3365_v47 = vpack.c.bf16 %v3364_v44, %v3364_v44 }
 0x93a   : > { %v3533_v50 = vmul.f32 1.442695, %v3532_v46 }
 0x93b   : > { %5652 = vmatmul.msk.bf16.vlgmr.msrb.gmra.mxu3 %vm1396_vm1, %v3365_v47 }
 0x93c   : > { %v6460_v51 = vpop.eup %6459  ;;  %6461 = vpow2.f32 %v3533_v50 }
 0x93d   : > { %v3591_v52 = vsel %vm1396_vm1, %v6460_v51, 0.0 }
 0x93e   : > { %3592 = vadd.xlane.f32.xlu0 %v3591_v52 }
 0x941   : > { %v3699_v49 = vpop.xlane.xlu2 %3698 }
 0x942   : > { %v8581_v53 = vpop.eup %6461  ;;  %v3700_v62 = vsub.f32 %v8557_v20, %v3699_v49 }
 0x943   : > { %v3535_v54 = vsel %vm1396_vm1, %v8581_v53, 0.0 }
 0x944   : > { %v3701_v59 = vmul.f32 1.442695, %v3700_v62 }
 0x946   : > { %3653 = vrot.lane.b32.xlu2 %v3598_v57, %s9169_s25  ;;  %3536 = vadd.xlane.f32.xlu0 %v3535_v54  ;;  %v3643_v58 = vpop.xlane.xlu1 %3642 }
 0x947   : > { %v3644_v61 = vsub.f32 %v3637_v38, %v3643_v58 }
 0x949   : > { %v3645_v12 = vmul.f32 1.442695, %v3644_v61  ;;  %v3486_v1 = vpop.permute.xlu2 %3485 }
 0x94a   : > { %v3491_v2 = vsel %vm1412_vm2, %v3486_v1, 0  ;;  %v3542_v11 = vpop.permute.xlu0 %3541 }
 0x94b   : > { %6463 = vpow2.f32 %v3645_v12  ;;  %3500 = vmatpush.bf16.msra.mxu1 %v3491_v2  ;;  %v3547_v16 = vsel %vm1412_vm2, %v3542_v11, 0  ;;  %v6277_v11 = vld [vmem:[%s9136_s11 + $0x74] sm:$0xf] }
 0x94c   : > { %6465 = vpow2.f32 %v3701_v59 }
 0x94f   : > { %3612 = vmatpush.bf16.msrb.mxu1 %v3603_v36 }
 0x951   : > { %v6464_v3 = vpop.eup %6463 }
 0x952   : > { %v3647_v4 = vsel %vm1396_vm1, %v6464_v3, 0.0  ;;  %v6466_v5 = vpop.eup %6465 }
 0x953   : > { %3648 = vadd.xlane.f32.xlu1 %v3647_v4  ;;  %v3703_v7 = vsel %vm1396_vm1, %v6466_v5, 0.0 }
 0x956   : > { %v3755_v6 = vpop.xlane.xlu1 %3754 }
 0x957   : > { %v3756_v8 = vsub.f32 %v8564_v26, %v3755_v6  ;;  %v5725_v6 = vld [vmem:[%s9136_s11 + $0x70] sm:$0xf] }
 0x959   : > { %v3757_v9 = vmul.f32 1.442695, %v3756_v8  ;;  %v5789_v8 = vld [vmem:[%s9136_s11 + $0xf0] sm:$0xf] }
 0x95a   : > { %3765 = vrot.lane.b32.xlu0 %v3598_v57, %s9170_s20 }
 0x95b   : > { %3704 = vadd.xlane.f32.xlu1 %v3703_v7  ;;  %6467 = vpow2.f32 %v3757_v9  ;;  %v6278_v7 = vld [vmem:[%s9136_s11 + $0x74] sm:$0xf0] }
 0x95c   : > { %v5726_v9 = vor.u32 %v6278_v7, %v5725_v6  ;;  %v6268_v6 = vld [vmem:[%s9136_s11 + $0x24] sm:$0xf0]  ;;  %v5749_v7 = vld [vmem:[%s9136_s11 + $0xa0] sm:$0xf] }
 0x95e   : > { %3980 = vmatpush.bf16.msrb.mxu0 %v5726_v9  ;;  %v6284_v9 = vld [vmem:[%s9136_s11 + $0xa4] sm:$0xf0] }
 0x961   : > { %v6468_v10 = vpop.eup %6467 }
 0x962   : > { %v3759_v13 = vsel %vm1396_vm1, %v6468_v10, 0.0 }
 0x96e   : > { %v3430_v14 = vpop.permute.xlu1 %3429 }
 0x96f   : > { %3760 = vadd.xlane.f32.xlu2 %v3759_v13  ;;  %v3435_v15 = vsel %vm1412_vm2, %v3430_v14, 0  ;;  %v5727_v13 = vld [vmem:[%s9136_s11 + $0x78] sm:$0xf0] }
 0x970   : > { %3444 = vmatpush.bf16.msra.mxu3 %v3435_v15  ;;  %v5730_v15 = vor.u32 %v6277_v11, %v5727_v13  ;;  %v5687_v11 = vld [vmem:[%s9136_s11 + $0x28] sm:$0xf0]  ;;  %v5750_v13 = vor.u32 %v6284_v9, %v5749_v7 }
 0x972   : > { %4006 = vmatpush.bf16.msra.mxu2 %v5730_v15  ;;  %v6283_v15 = vld [vmem:[%s9136_s11 + $0xa4] sm:$0xf] }
 0x974   : > { %3556 = vmatpush.bf16.msrb.mxu3 %v3547_v16  ;;  %3709 = vrot.lane.b32.xlu1 %v3598_v57, %s9168_s1  ;;  %v6293_v16 = vld [vmem:[%s9136_s11 + $0xf4] sm:$0xf] }
 0x9a1   : > { %v3481_v55 = vpop.xlane.xlu2 %3480 }
 0x9a2   : > { %6469 = vrcp.f32 %v3481_v55  ;;  %v5791_v55 = vld [vmem:[%s9136_s11 + $0xf8] sm:$0xf0] }
 0x9a6   : > { %v3422_v17 = vpop.xlane.xlu0 %3421 }
 0x9a7   : > { %6471 = vrcp.f32 %v3422_v17  ;;  %v5717_v17 = vld [vmem:[%s9136_s11 + $0x60] sm:$0xf] }
 0x9a8   : > { %v6470_v18 = vpop.eup %6469 }
 0x9a9   : > { %v3483_v19 = vmul.f32 %v6470_v18, %v8570_v34  ;;  %v3654_v21 = vpop.permute.xlu2 %3653  ;;  %v5794_v18 = vor.u32 %v6293_v16, %v5791_v55  ;;  %v5751_v16 = vld [vmem:[%s9136_s11 + $0xa8] sm:$0xf0]  ;;  %v5677_v55 = vld [vmem:[%s9136_s11 + $0x10] sm:$0xf] }
 0x9aa   : > { %v3659_v24 = vsel %vm1412_vm2, %v3654_v21, 0 }
 0x9ab   : > { %v3484_v20 = vpack.c.bf16 %v3483_v19, %v3483_v19  ;;  %v6276_v19 = vld [vmem:[%s9136_s11 + $0x64] sm:$0xf0] }
 0x9ad   : > { %v6472_v60 = vpop.eup %6471  ;;  %5656 = vmatmul.msk.bf16.vlgmr.msra.gmra.mxu1 %vm1396_vm1, %v3484_v20  ;;  %v5781_v20 = vld [vmem:[%s9136_s11 + $0xe0] sm:$0xf] }
 0x9ae   : > { %v3424_v38 = vmul.f32 %v6472_v60, %v8574_v39  ;;  %v6292_v60 = vld [vmem:[%s9136_s11 + $0xe4] sm:$0xf0] }
 0x9af   : > { %v5782_v21 = vor.u32 %v6292_v60, %v5781_v20  ;;  %v6282_v20 = vld [vmem:[%s9136_s11 + $0x94] sm:$0xf0] }
 0x9b0   : > { %v3425_v22 = vpack.c.bf16 %v3424_v38, %v3424_v38  ;;  %v5718_v38 = vor.u32 %v6276_v19, %v5717_v17  ;;  %v5754_v17 = vor.u32 %v6283_v15, %v5751_v16  ;;  %v5741_v19 = vld [vmem:[%s9136_s11 + $0x90] sm:$0xf] }
 0x9b1   : > { %v3593_v23 = vpop.xlane.xlu0 %3592 }
 0x9b2   : > { %6473 = vrcp.f32 %v3593_v23  ;;  %5654 = vmatmul.msk.bf16.vlgmr.msra.gmra.mxu3 %vm1396_vm1, %v3425_v22  ;;  %v6275_v22 = vld [vmem:[%s9136_s11 + $0x64] sm:$0xf]  ;;  %v5719_v23 = vld [vmem:[%s9136_s11 + $0x68] sm:$0xf0]  ;;  %3981 = vmatpush.bf16.msrb.mxu0 %v5718_v38  ;;  %v5742_v38 = vor.u32 %v6282_v20, %v5741_v19  ;;  %v6310_v19 = vld [vmem:[%s9137_s12 + $0x74] sm:$0xf0] }
 0x9b3   : > { %3668 = vmatpush.bf16.msra.mxu3 %v3659_v24  ;;  %v6291_v24 = vld [vmem:[%s9136_s11 + $0xe4] sm:$0xf]  ;;  %v5917_v20 = vld [vmem:[%s9137_s12 + $0xf0] sm:$0xf] }
 0x9b8   : > { %v6474_v25 = vpop.eup %6473 }
 0x9b9   : > { %v3595_v26 = vmul.f32 %v6474_v25, %v6460_v51  ;;  %v3537_v27 = vpop.xlane.xlu0 %3536  ;;  %v5722_v25 = vor.u32 %v6275_v22, %v5719_v23  ;;  %v5679_v22 = vld [vmem:[%s9136_s11 + $0x18] sm:$0xf0]  ;;  %v6281_v23 = vld [vmem:[%s9136_s11 + $0x94] sm:$0xf] }
 0x9ba   : > { %6475 = vrcp.f32 %v3537_v27  ;;  %v5709_v27 = vld [vmem:[%s9136_s11 + $0x50] sm:$0xf] }
 0x9bb   : > { %v3596_v56 = vpack.c.bf16 %v3595_v26, %v3595_v26  ;;  %v5783_v26 = vld [vmem:[%s9136_s11 + $0xe8] sm:$0xf0]  ;;  %4007 = vmatpush.bf16.msra.mxu2 %v5722_v25  ;;  %v5743_v25 = vld [vmem:[%s9136_s11 + $0x98] sm:$0xf0] }
 0x9bd   : > { %5660 = vmatmul.msk.bf16.vlgmr.msrb.gmra.mxu1 %vm1396_vm1, %v3596_v56  ;;  %v6274_v56 = vld [vmem:[%s9136_s11 + $0x54] sm:$0xf0] }
 0x9be   : > { %v8603_v28 = vpop.f32.mrf.mxu3 }
 0x9c0   : > { %v6476_v29 = vpop.eup %6475 }
 0x9c1   : > { %v3539_v30 = vmul.f32 %v6476_v29, %v8581_v53  ;;  %v5786_v29 = vor.u32 %v6291_v24, %v5783_v26  ;;  %v5746_v26 = vor.u32 %v6281_v23, %v5743_v25  ;;  %v6325_v25 = vld [vmem:[%s9137_s12 + $0xf4] sm:$0xf] }
 0x9c3   : > { %v3540_v31 = vpack.c.bf16 %v3539_v30, %v3539_v30  ;;  %v5773_v30 = vld [vmem:[%s9136_s11 + $0xd0] sm:$0xf] }
 0x9c5   : > { %5658 = vmatmul.msk.bf16.vlgmr.msrb.gmra.mxu3 %vm1396_vm1, %v3540_v31  ;;  %v6290_v31 = vld [vmem:[%s9136_s11 + $0xd4] sm:$0xf0] }
 0x9c6   : > { %v3383_v32 = vpop.f32.mrf.mxu3  ;;  %v3649_v33 = vpop.xlane.xlu1 %3648 }
 0x9c7   : > { %6477 = vrcp.f32 %v3649_v33  ;;  %v6273_v32 = vld [vmem:[%s9136_s11 + $0x54] sm:$0xf]  ;;  %v5710_v33 = vor.u32 %v6274_v56, %v5709_v27  ;;  %v5669_v27 = vld [vmem:[%s9136_s11] sm:$0xf]  ;;  %v6264_v56 = vld [vmem:[%s9136_s11 + $0x4] sm:$0xf0] }
 0x9c9   : > { %3982 = vmatpush.bf16.msrb.mxu0 %v5710_v33  ;;  %v5671_v33 = vld [vmem:[%s9136_s11 + $0x8] sm:$0xf0] }
 0x9cc   : > { %v3766_v34 = vpop.permute.xlu0 %3765 }
 0x9cd   : > { %v6478_v35 = vpop.eup %6477  ;;  %v3771_v37 = vsel %vm1412_vm2, %v3766_v34, 0  ;;  %v5711_v34 = vld [vmem:[%s9136_s11 + $0x58] sm:$0xf0] }
 0x9ce   : > { %3780 = vmatpush.bf16.msrb.mxu3 %v3771_v37  ;;  %v3651_v39 = vmul.f32 %v6478_v35, %v6464_v3  ;;  %v3705_v41 = vpop.xlane.xlu1 %3704  ;;  %v6289_v35 = vld [vmem:[%s9136_s11 + $0xd4] sm:$0xf]  ;;  %v5775_v37 = vld [vmem:[%s9136_s11 + $0xd8] sm:$0xf0] }
 0x9cf   : > { %6479 = vrcp.f32 %v3705_v41  ;;  %v5701_v41 = vld [vmem:[%s9136_s11 + $0x40] sm:$0xf] }
 0x9d0   : > { %v3652_v40 = vpack.c.bf16 %v3651_v39, %v3651_v39  ;;  %v5774_v39 = vor.u32 %v6290_v31, %v5773_v30  ;;  %v5670_v30 = vor.u32 %v6264_v56, %v5669_v27  ;;  %v6280_v31 = vld [vmem:[%s9136_s11 + $0x84] sm:$0xf0]  ;;  %v5845_v56 = vld [vmem:[%s9137_s12 + $0x60] sm:$0xf] }
 0x9d5   : > { %5662 = vmatmul.msk.bf16.vlgmr.msra.gmra.mxu3 %vm1396_vm1, %v3652_v40  ;;  %v6480_v42 = vpop.eup %6479  ;;  %v5714_v40 = vor.u32 %v6273_v32, %v5711_v34  ;;  %v6263_v32 = vld [vmem:[%s9136_s11 + $0x4] sm:$0xf] }
 0x9d6   : > { %v3707_v48 = vmul.f32 %v6480_v42, %v6466_v5  ;;  %4019 = vmatpush.bf16.msra.mxu3 %v5794_v18  ;;  %v6272_v42 = vld [vmem:[%s9136_s11 + $0x44] sm:$0xf0]  ;;  %v6266_v18 = vld [vmem:[%s9136_s11 + $0x14] sm:$0xf0] }
 0x9d7   : > { %4008 = vmatpush.bf16.msra.mxu2 %v5714_v40  ;;  %v5678_v60 = vor.u32 %v6266_v18, %v5677_v55  ;;  %v5853_v18 = vld [vmem:[%s9137_s12 + $0x70] sm:$0xf] }
 0x9d8   : > { %v3708_v47 = vpack.c.bf16 %v3707_v48, %v3707_v48  ;;  %v5778_v48 = vor.u32 %v6289_v35, %v5775_v37  ;;  %v5674_v35 = vor.u32 %v6263_v32, %v5671_v33  ;;  %v6279_v37 = vld [vmem:[%s9136_s11 + $0x84] sm:$0xf]  ;;  %v6324_v32 = vld [vmem:[%s9137_s12 + $0xe4] sm:$0xf0] }
 0x9d9   : > { %v6307_v33 = vld [vmem:[%s9137_s12 + $0x64] sm:$0xf] }
 0x9da   : > { %4020 = vmatpush.bf16.msra.mxu3 %v5786_v29  ;;  %v5733_v29 = vld [vmem:[%s9136_s11 + $0x80] sm:$0xf] }
 0x9db   : > { %v5734_v34 = vor.u32 %v6280_v31, %v5733_v29  ;;  %v6308_v29 = vld [vmem:[%s9137_s12 + $0x64] sm:$0xf0] }
 0x9dc   : > { %v5846_v31 = vor.u32 %v6308_v29, %v5845_v56  ;;  %v5805_v29 = vld [vmem:[%s9137_s12 + $0x10] sm:$0xf] }
 0x9de   : > { %4021 = vmatpush.bf16.msra.mxu3 %v5778_v48 }
 0x9e2   : > { %v3761_v43 = vpop.xlane.xlu2 %3760 }
 0x9e3   : > { %6481 = vrcp.f32 %v3761_v43  ;;  %v5765_v43 = vld [vmem:[%s9136_s11 + $0xc0] sm:$0xf] }
 0x9e6   : > { %v3710_v44 = vpop.permute.xlu1 %3709 }
 0x9e7   : > { %v3715_v45 = vsel %vm1412_vm2, %v3710_v44, 0  ;;  %v6288_v44 = vld [vmem:[%s9136_s11 + $0xc4] sm:$0xf0] }
 0x9e8   : > { %3724 = vmatpush.bf16.msra.mxu1 %v3715_v45  ;;  %v6271_v45 = vld [vmem:[%s9136_s11 + $0x44] sm:$0xf] }
 0x9e9   : > { %v6482_v46 = vpop.eup %6481 }
 0x9ea   : > { %v3763_v50 = vmul.f32 %v6482_v46, %v6468_v10  ;;  %v6294_v10 = vld [vmem:[%s9136_s11 + $0xf4] sm:$0xf0]  ;;  %v5703_v46 = vld [vmem:[%s9136_s11 + $0x48] sm:$0xf0] }
 0x9eb   : > { %5664 = vmatmul.msk.bf16.vlgmr.msra.gmra.mxu1 %vm1396_vm1, %v3708_v47  ;;  %v5790_v14 = vor.u32 %v6294_v10, %v5789_v8  ;;  %v6287_v47 = vld [vmem:[%s9136_s11 + $0xc4] sm:$0xf] }
 0x9ec   : > { %v3764_v51 = vpack.c.bf16 %v3763_v50, %v3763_v50  ;;  %v5767_v50 = vld [vmem:[%s9136_s11 + $0xc8] sm:$0xf0]  ;;  %v6267_v10 = vld [vmem:[%s9136_s11 + $0x24] sm:$0xf] }
 0x9ed   : > { %3993 = vmatpush.bf16.msrb.mxu1 %v5790_v14  ;;  %v5690_v14 = vor.u32 %v6267_v10, %v5687_v11  ;;  %v6490_v10 = vld [vmem:[%s8220_s24] sm:$0xff]  ;;  %s511_s24 = scalar_lea.vmem [#allocation2], %s4543_s23 }
 0x9ee   : > { %5666 = vmatmul.msk.bf16.vlgmr.msrb.gmra.mxu3 %vm1396_vm1, %v3764_v51  ;;  %v5702_v51 = vor.u32 %v6272_v42, %v5701_v41  ;;  %s4453_s26 = sshll.u32 %s511_s24, 4  ;;  %s4454_s26 = int_to_ptr.vmem [resolvable:$true] %s4453_s26 }
 0x9f0   : > { %3983 = vmatpush.bf16.msrb.mxu0 %v5702_v51 }
 0x9f1   : > { %3994 = vmatpush.bf16.msrb.mxu1 %v5782_v21  ;;  %v6265_v21 = vld [vmem:[%s9136_s11 + $0x14] sm:$0xf] }
 0x9f2   : > { %v5682_v24 = vor.u32 %v6265_v21, %v5679_v22  ;;  %v6309_v21 = vld [vmem:[%s9137_s12 + $0x74] sm:$0xf]  ;;  %v5855_v22 = vld [vmem:[%s9137_s12 + $0x78] sm:$0xf0] }
 0x9f5   : > { %3995 = vmatpush.bf16.msrb.mxu1 %v5774_v39  ;;  %v5735_v39 = vld [vmem:[%s9136_s11 + $0x88] sm:$0xf0] }
 0x9f6   : > { %v5738_v40 = vor.u32 %v6279_v37, %v5735_v39  ;;  %v6323_v39 = vld [vmem:[%s9137_s12 + $0xe4] sm:$0xf] }
 0xa2a   : > { %v3502_v52 = vpop.f32.mrf.mxu1 }
 0xa32   : > { %v3504_v63 = vpop.f32.mrf.mxu1 }
 0xa33   : > { %v5706_v63 = vor.u32 %v6271_v45, %v5703_v46 }
 0xa35   : > { %v3446_v49 = vpop.f32.mrf.mxu3  ;;  %4009 = vmatpush.bf16.msra.mxu2 %v5706_v63 }
 0xa3a   : > { %v8612_v53 = vpop.f32.mrf.mxu1 }
 0xa3d   : > { %v3448_v54 = vpop.f32.mrf.mxu3 }
 0xa3e   : > { %v6270_v54 = vld [vmem:[%s9136_s11 + $0x34] sm:$0xf0] }
 0xa42   : > { %v3616_v57 = vpop.f32.mrf.mxu1 }
 0xa43   : > { %v5757_v57 = vld [vmem:[%s9136_s11 + $0xb0] sm:$0xf] }
 0xa48   : > { %v3558_v58 = vpop.f32.mrf.mxu3 }
 0xa50   : > { %v3560_v61 = vpop.f32.mrf.mxu3 }
 0xa51   : > { %v6286_v61 = vld [vmem:[%s9136_s11 + $0xb4] sm:$0xf0] }
 0xa58   : > { %v3670_v62 = vpop.f32.mrf.mxu3 }
 0xa59   : > { %v6400_v12 = vpack.i.bf16 %v3670_v62, %v3446_v49  ;;  %v5693_v49 = vld [vmem:[%s9136_s11 + $0x30] sm:$0xf]  ;;  %v6269_v62 = vld [vmem:[%s9136_s11 + $0x34] sm:$0xf] }
 0xa5b   : > { %6401 = vrot.lane.b32.xlu2 %v6400_v12, %s9170_s20  ;;  %v5695_v12 = vld [vmem:[%s9136_s11 + $0x38] sm:$0xf0] }
 0xa60   : > { %v3672_v1 = vpop.f32.mrf.mxu3 }
 0xa61   : > { %v6285_v1 = vld [vmem:[%s9136_s11 + $0xb4] sm:$0xf] }
 0xa68   : > { %v3726_v2 = vpop.f32.mrf.mxu1 }
 0xa69   : > { %v6405_v36 = vpack.i.bf16 %v3726_v2, %v3502_v52  ;;  %v5766_v52 = vor.u32 %v6288_v44, %v5765_v43  ;;  %v5759_v2 = vld [vmem:[%s9136_s11 + $0xb8] sm:$0xf0] }
 0xa6b   : > { %6406 = vrot.lane.b32.xlu0 %v6405_v36, %s9168_s1  ;;  %v5694_v36 = vor.u32 %v6270_v54, %v5693_v49  ;;  %3996 = vmatpush.bf16.msrb.mxu1 %v5766_v52  ;;  %s4451_s1 = scalar_lea.hbm %s9140_s15, %s5988_s21 }
 0xa6c   : > { %s4455_s17 = sshll.u32 %s4451_s1, 4  ;;  %s4456_s17 = int_to_ptr.hbm [resolvable:$true] %s4455_s17 }
 0xa6d   : > { %3984 = vmatpush.bf16.msrb.mxu0 %v5694_v36  ;;  %s6505_s28 = sshra.s32 %s4456_s17, 4  ;;  %s6506_s28 = int_to_ptr.hbm [resolvable:$true] %s6505_s28 }
 0xa6e   : > { %s6507_s0 = scalar_lea.hbm %s6506_s28, 8  ;;  %p6512_p0 = scmp.lt.s32.totalorder %s6506_s28, %s9140_s15 }
 0xa6f   : > { %p6508_p11 = scmp.ne.s32.totalorder %s6506_s28, %s6507_s0  ;;  %p6513_p1 = scmp.lt.s32.totalorder %s6511_s29, %s6507_s0 }
 0xa70   : > { %v3728_v59 = vpop.f32.mrf.mxu1 }
 0xa71   : > { %v3782_v3 = vpop.f32.mrf.mxu3  ;;  %v5758_v59 = vor.u32 %v6286_v61, %v5757_v57  ;;  %p6509_p12 = pnand %p6508_p11, %p6676_p5  ;;  %p6514_p2 = por %p6513_p1, %p6512_p0 }
 0xa72   : > { %v6410_v4 = vpack.i.bf16 %v3782_v3, %v3558_v58  ;;  %v5770_v58 = vor.u32 %v6287_v47, %v5767_v50  ;;  %v5698_v3 = vor.u32 %v6269_v62, %v5695_v12 }
 0xa73   : > { %3997 = vmatpush.bf16.msrb.mxu1 %v5758_v59  ;;  %p6510_p13 = pneg %p6509_p12 }
 0xa74   : > { %6411 = vrot.lane.b32.xlu0 %v6410_v4, %s9169_s25  ;;  %4022 = vmatpush.bf16.msra.mxu3 %v5770_v58  ;;  %v5762_v4 = vor.u32 %v6285_v1, %v5759_v2  ;;  %v8826_v1 = vld [vmem:[%s9139_s14 + $0x8] sm:$0xff] }
 0xa75   : > { %4010 = vmatpush.bf16.msra.mxu2 %v5698_v3  ;;  %v3819_v36 = vperm.slane %v8826_v1, 0  ;;  %p6515_p3 = pnand %p6514_p2, %p6510_p13 }
 0xa77   : > { %3998 = vmatpush.bf16.msrb.mxu1 %v5750_v13 }
 0xa78   : > { %4023 = vmatpush.bf16.msra.mxu3 %v5762_v4 }
 0xa79   : > { %v3784_v5 = vpop.f32.mrf.mxu3  ;;  %4011 = vmatpush.bf16.msra.mxu2 %v5690_v14 }
 0xa7a   : > { %v5685_v5 = vld [vmem:[%s9136_s11 + $0x20] sm:$0xf] }
 0xa7b   : > { %v5686_v8 = vor.u32 %v6268_v6, %v5685_v5  ;;  %3999 = vmatpush.bf16.msrb.mxu1 %v5742_v38  ;;  %v6326_v38 = vld [vmem:[%s9137_s12 + $0xf4] sm:$0xf0] }
 0xa7c   : > { %4024 = vmatpush.bf16.msra.mxu3 %v5754_v17  ;;  %v5918_v23 = vor.u32 %v6326_v38, %v5917_v20  ;;  %v6300_v20 = vld [vmem:[%s9137_s12 + $0x24] sm:$0xf0] }
 0xa7d   : > { %3985 = vmatpush.bf16.msrb.mxu0 %v5686_v8  ;;  %4012 = vmatpush.bf16.msra.mxu2 %v5682_v24  ;;  %v5858_v24 = vor.u32 %v6309_v21, %v5855_v22  ;;  %v6316_v21 = vld [vmem:[%s9137_s12 + $0xa4] sm:$0xf0]  ;;  %v6299_v22 = vld [vmem:[%s9137_s12 + $0x24] sm:$0xf] }
 0xa7f   : > { %4000 = vmatpush.bf16.msrb.mxu1 %v5734_v34  ;;  %v5847_v34 = vld [vmem:[%s9137_s12 + $0x68] sm:$0xf0] }
 0xa80   : > { %4025 = vmatpush.bf16.msra.mxu3 %v5746_v26  ;;  %v5919_v26 = vld [vmem:[%s9137_s12 + $0xf8] sm:$0xf0]  ;;  %v5850_v37 = vor.u32 %v6307_v33, %v5847_v34  ;;  %v6314_v33 = vld [vmem:[%s9137_s12 + $0x94] sm:$0xf0]  ;;  %v6297_v34 = vld [vmem:[%s9137_s12 + $0x14] sm:$0xf] }
 0xa81   : > { %3986 = vmatpush.bf16.msrb.mxu0 %v5678_v60  ;;  %4013 = vmatpush.bf16.msra.mxu2 %v5674_v35  ;;  %v5854_v60 = vor.u32 %v6310_v19, %v5853_v18  ;;  %v5922_v27 = vor.u32 %v6325_v25, %v5919_v26  ;;  %v5813_v19 = vld [vmem:[%s9137_s12 + $0x20] sm:$0xf]  ;;  %v6315_v26 = vld [vmem:[%s9137_s12 + $0xa4] sm:$0xf] }
 0xa82   : > { %v5814_v38 = vor.u32 %v6300_v20, %v5813_v19  ;;  %v4062_v19 = vperm.slane %v8826_v1, 1 }
 0xa83   : > { %4246 = vmatpush.bf16.msra.mxu1 %v5918_v23  ;;  %v5815_v23 = vld [vmem:[%s9137_s12 + $0x28] sm:$0xf0] }
 0xa84   : > { %4026 = vmatpush.bf16.msra.mxu3 %v5738_v40  ;;  %v5911_v40 = vld [vmem:[%s9137_s12 + $0xe8] sm:$0xf0]  ;;  %v5818_v25 = vor.u32 %v6299_v22, %v5815_v23  ;;  %v4066_v22 = vperm.slane %v8826_v1, 2 }
 0xa85   : > { %3987 = vmatpush.bf16.msrb.mxu0 %v5670_v30  ;;  %4259 = vmatpush.bf16.msrb.mxu2 %v5858_v24  ;;  %v5909_v30 = vld [vmem:[%s9137_s12 + $0xe0] sm:$0xf] }
 0xa86   : > { %v5910_v35 = vor.u32 %v6324_v32, %v5909_v30  ;;  %v6298_v30 = vld [vmem:[%s9137_s12 + $0x14] sm:$0xf0] }
 0xa87   : > { %v5806_v32 = vor.u32 %v6298_v30, %v5805_v29 }
 0xa88   : > { %4272 = vmatpush.bf16.msrb.mxu3 %v5922_v27  ;;  %4247 = vmatpush.bf16.msra.mxu1 %v5910_v35  ;;  %v5879_v27 = vld [vmem:[%s9137_s12 + $0xa8] sm:$0xf0]  ;;  %v5807_v35 = vld [vmem:[%s9137_s12 + $0x18] sm:$0xf0] }
 0xa89   : > { %4233 = vmatpush.bf16.msra.mxu0 %v5854_v60  ;;  %4260 = vmatpush.bf16.msrb.mxu2 %v5850_v37  ;;  %v5877_v60 = vld [vmem:[%s9137_s12 + $0xa0] sm:$0xf]  ;;  %v5882_v56 = vor.u32 %v6315_v26, %v5879_v27 }
 0xa8a   : > { %v5878_v24 = vor.u32 %v6316_v21, %v5877_v60 }
 0xa8d   : > { %4234 = vmatpush.bf16.msra.mxu0 %v5846_v31  ;;  %v5869_v31 = vld [vmem:[%s9137_s12 + $0x90] sm:$0xf] }
 0xa8e   : > { %v5870_v37 = vor.u32 %v6314_v33, %v5869_v31  ;;  %v6327_v33 = vld [vmem:[%s9138_s13] sm:$0xff] }
 0xab5   : > { %v6402_v42 = vpop.permute.xlu2 %6401 }
 0xab6   : > { %v6404_v43 = vunpack.i.h.bf16 %v6402_v42  ;;  %v6403_v48 = vunpack.i.l.bf16 %v6402_v42  ;;  %v5837_v42 = vld [vmem:[%s9137_s12 + $0x50] sm:$0xf] }
 0xab8   : > { %v3813_v47 = vsel %vm1376_vm0, %v8612_v53, %v6404_v43  ;;  %v3810_v50 = vsel %vm1376_vm0, %v8603_v28, %v6403_v48  ;;  %v8820_v28 = vld [vmem:[%s9139_s14] sm:$0xff]  ;;  %v6306_v43 = vld [vmem:[%s9137_s12 + $0x54] sm:$0xf0]  ;;  %v5901_v48 = vld [vmem:[%s9137_s12 + $0xd0] sm:$0xf] }
 0xab9   : > { %v3818_v53 = vperm.slane %v8820_v28, 0 }
 0xadd   : > { %v6407_v41 = vpop.permute.xlu0 %6406 }
 0xade   : > { %v6409_v44 = vunpack.i.h.bf16 %v6407_v41  ;;  %v6408_v45 = vunpack.i.l.bf16 %v6407_v41  ;;  %v5914_v41 = vor.u32 %v6323_v39, %v5911_v40  ;;  %v5810_v39 = vor.u32 %v6297_v34, %v5807_v35  ;;  %v6313_v40 = vld [vmem:[%s9137_s12 + $0x94] sm:$0xf]  ;;  %v6336_v34 = vld [vmem:[%s9138_s13 + $0x48] sm:$0xff]  ;;  %v6335_v35 = vld [vmem:[%s9138_s13 + $0x40] sm:$0xff] }
 0xae0   : > { %v3814_v63 = vsel %vm1855_vm3, %v3813_v47, %v6409_v44  ;;  %v3811_v49 = vsel %vm1855_vm3, %v3810_v50, %v6408_v45  ;;  %4273 = vmatpush.bf16.msrb.mxu3 %v5914_v41  ;;  %v5838_v44 = vor.u32 %v6306_v43, %v5837_v42  ;;  %v6322_v45 = vld [vmem:[%s9137_s12 + $0xd4] sm:$0xf0]  ;;  %v5839_v47 = vld [vmem:[%s9137_s12 + $0x58] sm:$0xf0]  ;;  %v5797_v43 = vld [vmem:[%s9137_s12] sm:$0xf] }
 0xae1   : > { %v5902_v50 = vor.u32 %v6322_v45, %v5901_v48  ;;  %v5871_v41 = vld [vmem:[%s9137_s12 + $0x98] sm:$0xf0]  ;;  %v6296_v48 = vld [vmem:[%s9137_s12 + $0x4] sm:$0xf0] }
 0xae2   : > { %4235 = vmatpush.bf16.msra.mxu0 %v5838_v44  ;;  %v5874_v42 = vor.u32 %v6313_v40, %v5871_v41  ;;  %v5861_v44 = vld [vmem:[%s9137_s12 + $0x80] sm:$0xf]  ;;  %v5798_v45 = vor.u32 %v6296_v48, %v5797_v43  ;;  %v4072_v43 = vperm.slane %v8826_v1, 3 }
 0xae3   : > { %4248 = vmatpush.bf16.msra.mxu1 %v5902_v50  ;;  %v5799_v50 = vld [vmem:[%s9137_s12 + $0x8] sm:$0xf0] }
 0xae6   : > { %v6412_v46 = vpop.permute.xlu0 %6411 }
 0xae7   : > { %v6414_v51 = vunpack.i.h.bf16 %v6412_v46  ;;  %v6413_v52 = vunpack.i.l.bf16 %v6412_v46  ;;  %v6305_v46 = vld [vmem:[%s9137_s12 + $0x54] sm:$0xf] }
 0xae9   : > { %v3812_v54 = vsel %vm1857_vm4, %v3811_v49, %v6413_v52  ;;  %v3815_v57 = vsel %vm1857_vm4, %v3814_v63, %v6414_v51  ;;  %v5842_v51 = vor.u32 %v6305_v46, %v5839_v47  ;;  %v6321_v52 = vld [vmem:[%s9137_s12 + $0xd4] sm:$0xf]  ;;  %v5903_v63 = vld [vmem:[%s9137_s12 + $0xd8] sm:$0xf0]  ;;  %v6312_v46 = vld [vmem:[%s9137_s12 + $0x84] sm:$0xf0] }
 0xaea   : > { %v3816_v58 = vpack.c.bf16 %v3812_v54, %v3812_v54  ;;  %v3817_v61 = vpack.c.bf16 %v3815_v57, %v3815_v57  ;;  %v5906_v49 = vor.u32 %v6321_v52, %v5903_v63  ;;  %v5829_v54 = vld [vmem:[%s9137_s12 + $0x40] sm:$0xf]  ;;  %v6304_v57 = vld [vmem:[%s9137_s12 + $0x44] sm:$0xf0]  ;;  %v6295_v47 = vld [vmem:[%s9137_s12 + $0x4] sm:$0xf] }
 0xaeb   : > { %4261 = vmatpush.bf16.msrb.mxu2 %v5842_v51  ;;  %v5862_v51 = vor.u32 %v6312_v46, %v5861_v44  ;;  %v5802_v52 = vor.u32 %v6295_v47, %v5799_v50  ;;  %v6311_v63 = vld [vmem:[%s9137_s12 + $0x84] sm:$0xf] }
 0xaec   : > { %3988 = vmatmul.bf16.vlgmr.msrb.gmra.mxu0 %v3816_v58  ;;  %4001 = vmatmul.bf16.vlgmr.msrb.gmra.mxu1 %v3817_v61 }
 0xaed   : > { %4014 = vmatmul.bf16.vlgmr.msra.gmra.mxu2 %v3816_v58  ;;  %4027 = vmatmul.bf16.vlgmr.msra.gmra.mxu3 %v3817_v61  ;;  %v5893_v58 = vld [vmem:[%s9137_s12 + $0xc0] sm:$0xf]  ;;  %v5830_v61 = vor.u32 %v6304_v57, %v5829_v54 }
 0xaee   : > { %4274 = vmatpush.bf16.msrb.mxu3 %v5906_v49  ;;  %v5863_v49 = vld [vmem:[%s9137_s12 + $0x88] sm:$0xf0] }
 0xaef   : > { %4236 = vmatpush.bf16.msra.mxu0 %v5830_v61  ;;  %v5866_v57 = vor.u32 %v6311_v63, %v5863_v49 }
 0xb69   : > { %v3989_v62 = vpop.f32.mrf.mxu0  ;;  %v4002_v12 = vpop.f32.mrf.mxu1 }
 0xb6a   : > { %v3990_v2 = vadd.f32 %v3989_v62, %v3818_v53  ;;  %v6320_v53 = vld [vmem:[%s9137_s12 + $0xc4] sm:$0xf0]  ;;  %v6303_v62 = vld [vmem:[%s9137_s12 + $0x44] sm:$0xf] }
 0xb6c   : > { %v4003_v59 = vadd.f32 %v4002_v12, %v3990_v2  ;;  %v5831_v12 = vld [vmem:[%s9137_s12 + $0x48] sm:$0xf0]  ;;  %v5894_v2 = vor.u32 %v6320_v53, %v5893_v58 }
 0xb6e   : > { %v8830_v8 = vadd.f32 %v4003_v59, %v8406_v0  ;;  %v6319_v59 = vld [vmem:[%s9137_s12 + $0xc4] sm:$0xf]  ;;  %4249 = vmatpush.bf16.msra.mxu1 %v5894_v2  ;;  %v6342_v2 = vld [vmem:[%s9138_s13 + $0x78] sm:$0xff] }
 0xb70   : > { %v4015_v3 = vpop.f32.mrf.mxu2  ;;  %v4028_v4 = vpop.f32.mrf.mxu3  ;;  %v4038_v14 = vmul.f32 %v8830_v8, %v8830_v8 }
 0xb71   : > { %v4016_v5 = vadd.f32 %v4015_v3, %v3819_v36  ;;  %v3991_v6 = vpop.f32.mrf.mxu0  ;;  %v4004_v7 = vpop.f32.mrf.mxu1  ;;  %v5834_v36 = vor.u32 %v6303_v62, %v5831_v12  ;;  %v5895_v3 = vld [vmem:[%s9137_s12 + $0xc8] sm:$0xf0]  ;;  %v6334_v12 = vld [vmem:[%s9138_s13 + $0x38] sm:$0xff] }
 0xb72   : > { %v6302_v6 = vld [vmem:[%s9137_s12 + $0x34] sm:$0xf0]  ;;  %v5885_v7 = vld [vmem:[%s9137_s12 + $0xb0] sm:$0xf] }
 0xb73   : > { %v4029_v9 = vadd.f32 %v4028_v4, %v4016_v5  ;;  %v5898_v4 = vor.u32 %v6319_v59, %v5895_v3  ;;  %4262 = vmatpush.bf16.msrb.mxu2 %v5834_v36  ;;  %v5821_v5 = vld [vmem:[%s9137_s12 + $0x30] sm:$0xf] }
 0xb74   : > { %v6333_v59 = vld [vmem:[%s9138_s13 + $0x30] sm:$0xff] }
 0xb75   : > { %v8833_v11 = vadd.f32 %v6490_v10, %v4029_v9  ;;  %4275 = vmatpush.bf16.msrb.mxu3 %v5898_v4  ;;  %v5822_v9 = vor.u32 %v6302_v6, %v5821_v5  ;;  %v6318_v10 = vld [vmem:[%s9137_s12 + $0xb4] sm:$0xf0]  ;;  %v6341_v3 = vld [vmem:[%s9138_s13 + $0x70] sm:$0xff]  ;;  %v6332_v5 = vld [vmem:[%s9138_s13 + $0x28] sm:$0xff] }
 0xb76   : > { %v6340_v6 = vld [vmem:[%s9138_s13 + $0x68] sm:$0xff] }
 0xb77   : > { %v4034_v13 = vadd.f32 %v8833_v11, %v8830_v8  ;;  %v4039_v15 = vmul.f32 %v8833_v11, %v8833_v11  ;;  %4237 = vmatpush.bf16.msra.mxu0 %v5822_v9  ;;  %v6339_v9 = vld [vmem:[%s9138_s13 + $0x60] sm:$0xff] }
 0xb78   : > { %v4017_v16 = vpop.f32.mrf.mxu2  ;;  %v4030_v55 = vpop.f32.mrf.mxu3 }
 0xb79   : > { %4035 = vadd.xlane.f32.xlu1 %v4034_v13  ;;  %v4040_v17 = vadd.f32 %v4039_v15, %v4038_v14  ;;  %v6301_v13 = vld [vmem:[%s9137_s12 + $0x34] sm:$0xf]  ;;  %v5823_v14 = vld [vmem:[%s9137_s12 + $0x38] sm:$0xf0]  ;;  %v5886_v15 = vor.u32 %v6318_v10, %v5885_v7  ;;  %v6331_v7 = vld [vmem:[%s9138_s13 + $0x20] sm:$0xff] }
 0xb7a   : > { %v5826_v16 = vor.u32 %v6301_v13, %v5823_v14  ;;  %v6317_v55 = vld [vmem:[%s9137_s12 + $0xb4] sm:$0xf] }
 0xb7b   : > { %4041 = vadd.xlane.f32.xlu2 %v4040_v17  ;;  %v5887_v17 = vld [vmem:[%s9137_s12 + $0xb8] sm:$0xf0]  ;;  %4250 = vmatpush.bf16.msra.mxu1 %v5886_v15 }
 0xb7c   : > { %v5890_v18 = vor.u32 %v6317_v55, %v5887_v17  ;;  %4263 = vmatpush.bf16.msrb.mxu2 %v5826_v16  ;;  %4238 = vmatpush.bf16.msra.mxu0 %v5814_v38  ;;  %v6330_v15 = vld [vmem:[%s9138_s13 + $0x18] sm:$0xff]  ;;  %v6329_v17 = vld [vmem:[%s9138_s13 + $0x10] sm:$0xff]  ;;  %v4061_v38 = vperm.slane %v8820_v28, 1 }
 0xb7e   : > { %4276 = vmatpush.bf16.msrb.mxu3 %v5890_v18 }
 0xb7f   : > { %4251 = vmatpush.bf16.msra.mxu1 %v5878_v24 }
 0xb80   : > { %4264 = vmatpush.bf16.msrb.mxu2 %v5818_v25  ;;  %4239 = vmatpush.bf16.msra.mxu0 %v5806_v32  ;;  %v4065_v25 = vperm.slane %v8820_v28, 2  ;;  %v6337_v32 = vld [vmem:[%s9138_s13 + $0x50] sm:$0xff] }
 0xb82   : > { %4277 = vmatpush.bf16.msrb.mxu3 %v5882_v56 }
 0xb83   : > { %4252 = vmatpush.bf16.msra.mxu1 %v5870_v37  ;;  %v4071_v37 = vperm.slane %v8820_v28, 3 }
 0xb84   : > { %4265 = vmatpush.bf16.msrb.mxu2 %v5810_v39  ;;  %4240 = vmatpush.bf16.msra.mxu0 %v5798_v45 }
 0xb86   : > { %4278 = vmatpush.bf16.msrb.mxu3 %v5874_v42 }
 0xb87   : > { %4253 = vmatpush.bf16.msra.mxu1 %v5862_v51 }
 0xb88   : > { %4266 = vmatpush.bf16.msrb.mxu2 %v5802_v52  ;;  %4386 = vmatpush.bf16.msrb.mxu0 %v6334_v12 }
 0xb8a   : > { %4279 = vmatpush.bf16.msrb.mxu3 %v5866_v57 }
 0xb8b   : > { %4399 = vmatpush.bf16.msrb.mxu1 %v6342_v2 }
 0xb8c   : > { %4387 = vmatpush.bf16.msrb.mxu0 %v6333_v59 }
 0xb8f   : > { %4400 = vmatpush.bf16.msrb.mxu1 %v6341_v3 }
 0xb90   : > { %4388 = vmatpush.bf16.msrb.mxu0 %v6332_v5 }
 0xb93   : > { %4401 = vmatpush.bf16.msrb.mxu1 %v6340_v6 }
 0xb94   : > { %4389 = vmatpush.bf16.msrb.mxu0 %v6331_v7 }
 0xb97   : > { %4402 = vmatpush.bf16.msrb.mxu1 %v6339_v9 }
 0xb98   : > { %4390 = vmatpush.bf16.msrb.mxu0 %v6330_v15 }
 0xb9c   : > { %4391 = vmatpush.bf16.msrb.mxu0 %v6329_v17 }
 0xbec   : > { %v4036_v54 = vpop.xlane.xlu1 %4035 }
 0xbed   : > { %v4037_v58 = vmul.f32 0.0052083335, %v4036_v54 }
 0xbee   : > { %v4042_v61 = vpop.xlane.xlu2 %4041 }
 0xbef   : > { %v4043_v53 = vmul.f32 0.0052083335, %v4042_v61  ;;  %v4044_v62 = vmul.f32 %v4037_v58, %v4037_v58  ;;  %v4046_v20 = vsub.f32 %v8830_v8, %v4037_v58  ;;  %v4047_v60 = vsub.f32 %v8833_v11, %v4037_v58  ;;  %v6338_v8 = vld [vmem:[%s9138_s13 + $0x58] sm:$0xff]  ;;  %v6328_v11 = vld [vmem:[%s9138_s13 + $0x8] sm:$0xff] }
 0xbf0   : > { %4403 = vmatpush.bf16.msrb.mxu1 %v6338_v8  ;;  %4392 = vmatpush.bf16.msrb.mxu0 %v6328_v11  ;;  %v4289_v61 = vperm.slane %v8820_v28, 4 }
 0xbf1   : > { %v4045_v36 = vsub.f32 %v4043_v53, %v4044_v62 }
 0xbf3   : > { %v4048_v4 = vadd.f32 1e-05, %v4045_v36 }
 0xbf4   : > { %4404 = vmatpush.bf16.msrb.mxu1 %v6337_v32  ;;  %4393 = vmatpush.bf16.msrb.mxu0 %v6327_v33 }
 0xbf5   : > { %6483 = vrsqrt.f32 %v4048_v4  ;;  %vm4055_vm12 = vweird.f32 %v4048_v4 }
 0xbf8   : > { %4405 = vmatpush.bf16.msrb.mxu1 %v6336_v34 }
 0xbfb   : > { %v6484_v10 = vpop.eup %6483 }
 0xbfc   : > { %v4050_v13 = vmul.f32 %v6484_v10, %v4048_v4  ;;  %vm4056_vm11 = vweird.f32 %v6484_v10  ;;  %4406 = vmatpush.bf16.msrb.mxu1 %v6335_v35 }
 0xbfd   : > { %vm4057_vm13 = vmor %vm4055_vm12, %vm4056_vm11 }
 0xbfe   : > { %v4051_v14 = vmul.f32 %v6484_v10, %v4050_v13 }
 0xc00   : > { %v4052_v16 = vmul.f32 0.5, %v4051_v14 }
 0xc02   : > { %v4053_v55 = vsub.f32 1.5, %v4052_v16 }
 0xc04   : > { %v4054_v18 = vmul.f32 %v6484_v10, %v4053_v55 }
 0xc06   : > { %v4058_v21 = vsel %vm4057_vm13, %v6484_v10, %v4054_v18  ;;  %v4435_v18 = vperm.slane %v8820_v28, 5 }
 0xc07   : > { %v4059_v23 = vmul.f32 %v4058_v21, %v4046_v20  ;;  %v4060_v24 = vmul.f32 %v4058_v21, %v4047_v60  ;;  %v4437_v60 = vperm.slane %v8820_v28, 6 }
 0xc09   : > { %v4063_v26 = vmul.f32 %v4061_v38, %v4059_v23  ;;  %v4064_v27 = vmul.f32 %v4062_v19, %v4060_v24 }
 0xc0b   : > { %v4067_v56 = vadd.f32 %v4065_v25, %v4063_v26  ;;  %v4068_v29 = vadd.f32 %v4066_v22, %v4064_v27 }
 0xc0d   : > { %v4069_v30 = vpack.c.bf16 %v4067_v56, %v4067_v56  ;;  %v4070_v31 = vpack.c.bf16 %v4068_v29, %v4068_v29 }
 0xc0f   : > { %4241 = vmatmul.bf16.vlgmr.msra.gmra.mxu0 %v4069_v30  ;;  %4254 = vmatmul.bf16.vlgmr.msra.gmra.mxu1 %v4070_v31 }
 0xc10   : > { %4267 = vmatmul.bf16.vlgmr.msrb.gmra.mxu2 %v4069_v30  ;;  %4280 = vmatmul.bf16.vlgmr.msrb.gmra.mxu3 %v4070_v31 }
 0xc8c   : > { %v4242_v39 = vpop.f32.mrf.mxu0  ;;  %v4255_v40 = vpop.f32.mrf.mxu1 }
 0xc8d   : > { %v4243_v41 = vadd.f32 %v4242_v39, %v4071_v37 }
 0xc8f   : > { %v4256_v42 = vadd.f32 %v4255_v40, %v4243_v41 }
 0xc91   : > { %v4285_v48 = vmax.f32 %v4256_v42, 0.0 }
 0xc93   : > { %v4287_v44 = vpack.c.bf16 %v4285_v48, %v4285_v48  ;;  %v4268_v45 = vpop.f32.mrf.mxu2  ;;  %v4281_v46 = vpop.f32.mrf.mxu3 }
 0xc94   : > { %v4269_v47 = vadd.f32 %v4268_v45, %v4072_v43  ;;  %v4244_v50 = vpop.f32.mrf.mxu0  ;;  %v4257_v51 = vpop.f32.mrf.mxu1 }
 0xc95   : > { %4394 = vmatmul.bf16.vlgmr.msrb.gmra.mxu0 %v4287_v44 }
 0xc96   : > { %v4282_v52 = vadd.f32 %v4281_v46, %v4269_v47 }
 0xc98   : > { %v4286_v63 = vmax.f32 %v4282_v52, 0.0 }
 0xc9a   : > { %v4288_v49 = vpack.c.bf16 %v4286_v63, %v4286_v63 }
 0xc9b   : > { %v4270_v54 = vpop.f32.mrf.mxu2  ;;  %v4283_v57 = vpop.f32.mrf.mxu3 }
 0xc9c   : > { %4407 = vmatmul.bf16.vlgmr.msrb.gmra.mxu1 %v4288_v49 }
 0xd12   : > { %v4395_v58 = vpop.f32.mrf.mxu0 }
 0xd13   : > { %v4396_v53 = vadd.f32 %v4395_v58, %v4289_v61 }
 0xd19   : > { %v4408_v62 = vpop.f32.mrf.mxu1 }
 0xd1a   : > { %v4409_v1 = vadd.f32 %v4408_v62, %v4396_v53  ;;  %v4397_v12 = vpop.f32.mrf.mxu0 }
 0xd1c   : > { %v4412_v2 = vadd.f32 %v4409_v1, %v8406_v0 }
 0xd1e   : > { %4413 = vadd.xlane.f32.xlu0 %v4412_v2  ;;  %v4416_v36 = vmul.f32 %v4412_v2, %v4412_v2 }
 0xd20   : > { %4417 = vadd.xlane.f32.xlu1 %v4416_v36 }
 0xd21   : > { %v4410_v59 = vpop.f32.mrf.mxu1 }
 0xd91   : > { %v4414_v3 = vpop.xlane.xlu0 %4413 }
 0xd92   : > { %v4415_v4 = vmul.f32 0.0078125, %v4414_v3 }
 0xd93   : > { %v4418_v5 = vpop.xlane.xlu1 %4417 }
 0xd94   : > { %v4420_v6 = vmul.f32 %v4415_v4, %v4415_v4  ;;  %v4419_v7 = vmul.f32 0.0078125, %v4418_v5  ;;  %v4422_v17 = vsub.f32 %v4412_v2, %v4415_v4 }
 0xd96   : > { %v4421_v9 = vsub.f32 %v4419_v7, %v4420_v6 }
 0xd98   : > { %v4423_v10 = vadd.f32 1e-05, %v4421_v9 }
 0xd9a   : > { %6485 = vrsqrt.f32 %v4423_v10  ;;  %vm4430_vm15 = vweird.f32 %v4423_v10 }
 0xda0   : > { %v6486_v13 = vpop.eup %6485 }
 0xda1   : > { %v4425_v14 = vmul.f32 %v6486_v13, %v4423_v10  ;;  %vm4431_vm14 = vweird.f32 %v6486_v13 }
 0xda2   : > { %vm4432_vm0 = vmor %vm4430_vm15, %vm4431_vm14 }
 0xda3   : > { %v4426_v15 = vmul.f32 %v6486_v13, %v4425_v14 }
 0xda5   : > { %v4427_v16 = vmul.f32 0.5, %v4426_v15 }
 0xda7   : > { %v4428_v0 = vsub.f32 1.5, %v4427_v16 }
 0xda9   : > { %v4429_v55 = vmul.f32 %v6486_v13, %v4428_v0 }
 0xdab   : > { %v4433_v19 = vsel %vm4432_vm0, %v6486_v13, %v4429_v55 }
 0xdac   : > { %v4434_v20 = vmul.f32 %v4433_v19, %v4422_v17 }
 0xdae   : > { %v4436_v38 = vmul.f32 %v4435_v18, %v4434_v20 }
 0xdb0   : > { %v4438_v21 = vadd.f32 %v4437_v60, %v4436_v38 }
 0xdb2   : > { %4439 = vst [vmem:[%s511_s24] sm:$0xff] %v4438_v21 }
 0xdb3   : > { %6518 = shalt.err (!%p6515_p3)
}
 0xdb4   : > { %6343 = dma.vmem_to_hbm [thread:$0]  (%p6676_p5), %s4454_s26, 128, %s4456_s17, %s4441_s22  }
 0xdb5 PF: > { %s9172_s18 = sld [smem:[#allocation7_spill]] }
 0xdb6   : > { %s9173_s27 = sld [smem:[#allocation5_spill]] }
 0xdbb   : > { %p6349_p4 = scmp.ge.s32.totalorder %s9172_s18, 2 }
 0xdbc   : > { %s4467_s1 = sand.u32 1, %s9173_s27  }
 0xdbd   : > { %p6346_p7 = pnand %p6349_p4, %p6680_p6  ;;  %s4468_s24 = scalar_lea.sflag [#allocation3], %s4467_s1 }
 0xdbf   : > { %p6347_p8 = pneg %p6346_p7 }
 0xdc1   : > { %6536 = dma.done.wait (%p6347_p8), %s4468_s24, 128  }
 0xdc2   : > { %6538 = vsyncadd (%p6347_p8), %s4468_s24, 4294967168  ;;  %s9175_s21 = sld [smem:[#allocation8_spill]]  ;;  %s9178_s18 = smov %s6545_s19 }
 0xdc3   : > { %s9176_s28 = sld [smem:[#allocation6_spill]] }
 0xdc4   : > { %s9177_s20 = sld [smem:[#allocation9_spill]] }
 0xdc8   : > { %p25_p9 = scmp.ge.s32.totalorder %s9175_s21, 4  }
 0xdc9   : > { %s9179_s19 = smov %s9176_s28 }
 0xdca   :  { %27 = sbr.rel (!%p25_p9) target bundleno = 6 (0x6), region = 121 }
 0xdcf   :  { %4474 = vsyncpa [#allocation3], 1 }
 0xdd0   :  { %4476 = vsyncpa [#allocation3 + $0x1], 1 }

</bundles_post_ra>
